<compile_context>
chip_gen: v6e
topology: v6e:2x2x1
jax: 0.10.0
libtpu: 0.0.40
codegen_flags: <defaults>
</compile_context>

<pallas_src>
import jax
import jax.numpy as jnp
from jax.experimental import pallas as pl
from jax.experimental.pallas import tpu as pltpu

NEG_SLOPE = 0.1


# ---------------------------------------------------------------------------
# Kernels
# ---------------------------------------------------------------------------
def _conv3_bn_lrelu_kernel(x_ref, xt_ref, xb_ref, w_ref, b_ref, o_ref, xbuf_ref):
    """3x3 conv (9 shifted MXU matmuls) + folded-BN bias + LeakyReLU.

    x_ref : (1, 1, TH, W+2, Cin_p)  bf16  row tile (zero SAME-padding columns)
    xt_ref: (1, 1, 1,  W+2, Cin_p)  bf16  last row of the tile above
    xb_ref: (1, 1, 1,  W+2, Cin_p)  bf16  first row of the tile below
    w_ref : (9, Cin_p, Cout_p)      bf16  BN scale folded in
    b_ref : (1, Cout_p)             f32   folded BN bias
    o_ref : (1, 1, TH, W+2, Cout_p) bf16  output (zero padding columns rewritten)
    xbuf_ref: VMEM (TH+2, W+2, Cin_p) bf16 scratch for the halo'd tile
    """
    th = x_ref.shape[2]
    wp = x_ref.shape[3]
    cin = x_ref.shape[4]
    wd = wp - 2
    cout = o_ref.shape[4]
    t = pl.program_id(1)
    t_last = pl.num_programs(1) - 1

    # Assemble the vertically-halo'd tile in VMEM scratch; halo rows come from
    # the neighbouring row tiles and are zeroed at the image top / bottom.
    xbuf_ref[1:1 + th] = x_ref[0, 0]
    xbuf_ref[0:1] = jnp.where(t > 0, xt_ref[0, 0], jnp.zeros_like(xt_ref[0, 0]))
    xbuf_ref[th + 1:th + 2] = jnp.where(
        t < t_last, xb_ref[0, 0], jnp.zeros_like(xb_ref[0, 0]))
    x = xbuf_ref[...]                                    # (TH+2, W+2, Cin_p)

    acc = jnp.zeros((th * wd, cout), jnp.float32)
    for k in range(9):
        dh, dw = k // 3, k % 3
        xs = x[dh:dh + th, dw:dw + wd, :].reshape(th * wd, cin)
        acc = acc + jnp.dot(xs, w_ref[k], preferred_element_type=jnp.float32)
    y = acc + b_ref[...]
    y = jnp.where(y > 0, y, NEG_SLOPE * y).astype(o_ref.dtype).reshape(th, wd, cout)

    # Lane-dense store; keep the zero SAME-padding columns so the next layer
    # consumes this buffer directly (no wrapper-side re-padding / re-tiling).
    zc = jnp.zeros((th, 1, cout), o_ref.dtype)
    o_ref[0, 0, :, 0:1, :] = zc
    o_ref[0, 0, :, wp - 1:wp, :] = zc
    o_ref[0, 0, :, 1:1 + wd, :] = y


def _resblock_kernel(h_ref, ht_ref, hb_ref, w1_ref, b1_ref, w2_ref, b2_ref,
                     o_ref, hbuf_ref):
    """Fused ResidualBlock: out = h + LReLU(BN(3x3(LReLU(BN(1x1(h)))))).

    h_ref : (1, 1, TH, W+2, Cp) bf16   row tile of h (zero padding columns)
    ht_ref: (1, 1, 1,  W+2, Cp) bf16   last row of the tile above
    hb_ref: (1, 1, 1,  W+2, Cp) bf16   first row of the tile below
    w1_ref: (Cp, Cm)            bf16   1x1 weights (BN scale folded)
    b1_ref: (1, Cm)             f32
    w2_ref: (9, Cm, Cp)         bf16   3x3 weights (BN scale folded)
    b2_ref: (1, Cp)             f32
    o_ref : (1, 1, TH, W+2, Cp) bf16
    hbuf_ref: VMEM (TH+2, W+2, Cp) bf16 scratch for the halo'd tile
    """
    th = h_ref.shape[2]
    wp = h_ref.shape[3]
    cp = h_ref.shape[4]
    wd = wp - 2
    cm = w1_ref.shape[1]
    t = pl.program_id(1)
    t_last = pl.num_programs(1) - 1

    hbuf_ref[1:1 + th] = h_ref[0, 0]
    hbuf_ref[0:1] = jnp.where(t > 0, ht_ref[0, 0], jnp.zeros_like(ht_ref[0, 0]))
    hbuf_ref[th + 1:th + 2] = jnp.where(
        t < t_last, hb_ref[0, 0], jnp.zeros_like(hb_ref[0, 0]))
    h = hbuf_ref[...]                                    # (TH+2, W+2, Cp) bf16

    # --- 1x1 conv + bias + LReLU over the whole halo tile (f32 epilogue) ---
    m = jnp.dot(h.reshape((th + 2) * wp, cp), w1_ref[...],
                preferred_element_type=jnp.float32)
    m = m + b1_ref[...]
    m = jnp.where(m > 0, m, NEG_SLOPE * m).reshape(th + 2, wp, cm)

    # --- re-impose the 3x3 conv's SAME zero padding on m (the 1x1 conv of a
    #     zero-padded h is NOT zero at padding positions: it equals LReLU(b1)).
    row = jax.lax.broadcasted_iota(jnp.int32, m.shape, 0)
    col = jax.lax.broadcasted_iota(jnp.int32, m.shape, 1)
    valid = (col >= 1) & (col <= wd)
    valid &= jnp.logical_not((row == 0) & (t == 0))            # above image top
    valid &= jnp.logical_not((row == th + 1) & (t == t_last))  # below image bottom
    mb = jnp.where(valid, m, 0.0).astype(jnp.bfloat16)

    # --- 3x3 conv as 9 shifted matmuls, f32 accumulation ---
    acc = jnp.zeros((th * wd, cp), jnp.float32)
    for k in range(9):
        dh, dw = k // 3, k % 3
        ms = mb[dh:dh + th, dw:dw + wd, :].reshape(th * wd, cm)
        acc = acc + jnp.dot(ms, w2_ref[k], preferred_element_type=jnp.float32)
    y = acc + b2_ref[...]
    y = jnp.where(y > 0, y, NEG_SLOPE * y)

    # --- skip add (skip reused from the resident halo tile) ---
    skip = h[1:1 + th, 1:1 + wd, :].reshape(th * wd, cp).astype(jnp.float32)
    out = (skip + y).astype(o_ref.dtype).reshape(th, wd, cp)

    zc = jnp.zeros((th, 1, cp), o_ref.dtype)
    o_ref[0, 0, :, 0:1, :] = zc
    o_ref[0, 0, :, wp - 1:wp, :] = zc
    o_ref[0, 0, :, 1:1 + wd, :] = out


# ---------------------------------------------------------------------------
# Glue: tiling, channel padding, param folding
# ---------------------------------------------------------------------------
def _rup128(c):
    return ((c + 127) // 128) * 128


def _pick_tile_rows(H, W, cin_p, cmid_p, cout_p,
                    budget_bytes=6 * 1024 * 1024, max_rows=None):
    """Largest divisor TH of H whose per-step VMEM footprint fits the budget."""
    best = 1
    wp = W + 2
    for th in range(1, H + 1):
        if H % th:
            continue
        if max_rows is not None and th > max_rows:
            continue
        est = 2 * th * wp * cin_p * 2                 # input tile, 2 buffers
        est += 4 * wp * cin_p * 2                     # halo rows, 2x, 2 buffers
        est += (th + 2) * wp * cin_p * 2              # assembled halo scratch
        est += (th + 2) * wp * cmid_p * (4 + 2)       # m (f32) + mb (bf16)
        est += th * W * cout_p * 4                    # f32 accumulator
        est += th * W * max(cin_p, cmid_p) * 2        # tap slice staging
        est += 2 * th * wp * cout_p * 2               # output tile, 2 buffers
        est += 9 * max(cin_p, cmid_p) * cout_p * 2 + cin_p * cmid_p * 2
        if est <= budget_bytes:
            best = th
    return best


def _prep_conv3(w, scale, bias, cin_p, cout_p):
    kh, kw, cin, cout = w.shape
    wf = (w * scale.reshape(1, 1, 1, cout)).reshape(kh * kw, cin, cout)
    wf = jnp.pad(wf, ((0, 0), (0, cin_p - cin), (0, cout_p - cout)))
    bf = jnp.pad(bias.reshape(1, cout), ((0, 0), (0, cout_p - cout)))
    return wf.astype(jnp.bfloat16), bf.astype(jnp.float32)


def _prep_conv1(w, scale, bias, cin_p, cout_p):
    cin, cout = w.shape[2], w.shape[3]
    wf = (w * scale.reshape(1, 1, 1, cout)).reshape(cin, cout)
    wf = jnp.pad(wf, ((0, cin_p - cin), (0, cout_p - cout)))
    bf = jnp.pad(bias.reshape(1, cout), ((0, 0), (0, cout_p - cout)))
    return wf.astype(jnp.bfloat16), bf.astype(jnp.float32)


def _halo_in_specs(T, th, wp, cp):
    """Main row-tile block + 1-row halo blocks from the neighbouring tiles."""
    main = pl.BlockSpec((1, 1, th, wp, cp), lambda n, t: (n, t, 0, 0, 0))
    top = pl.BlockSpec((1, 1, 1, wp, cp),
                       lambda n, t: (n, jnp.maximum(t - 1, 0), th - 1, 0, 0))
    bot = pl.BlockSpec((1, 1, 1, wp, cp),
                       lambda n, t: (n, jnp.minimum(t + 1, T - 1), 0, 0, 0))
    return [main, top, bot]


def _conv3_call(x, w9, b):
    N, T, th, wp, cin_p = x.shape
    cout_p = w9.shape[-1]
    return pl.pallas_call(
        _conv3_bn_lrelu_kernel,
        out_shape=jax.ShapeDtypeStruct((N, T, th, wp, cout_p), jnp.bfloat16),
        grid=(N, T),
        in_specs=_halo_in_specs(T, th, wp, cin_p) + [
            pl.BlockSpec((9, cin_p, cout_p), lambda n, t: (0, 0, 0)),
            pl.BlockSpec((1, cout_p), lambda n, t: (0, 0)),
        ],
        out_specs=pl.BlockSpec((1, 1, th, wp, cout_p),
                               lambda n, t: (n, t, 0, 0, 0)),
        scratch_shapes=[pltpu.VMEM((th + 2, wp, cin_p), jnp.bfloat16)],
        compiler_params=pltpu.CompilerParams(
            dimension_semantics=("parallel", "parallel")),
    )(x, x, x, w9, b)


def _resblock_call(h, w1, b1, w2, b2):
    N, T, th, wp, cp = h.shape
    cm = w1.shape[1]
    return pl.pallas_call(
        _resblock_kernel,
        out_shape=jax.ShapeDtypeStruct((N, T, th, wp, cp), jnp.bfloat16),
        grid=(N, T),
        in_specs=_halo_in_specs(T, th, wp, cp) + [
            pl.BlockSpec((cp, cm), lambda n, t: (0, 0)),
            pl.BlockSpec((1, cm), lambda n, t: (0, 0)),
            pl.BlockSpec((9, cm, cp), lambda n, t: (0, 0, 0)),
            pl.BlockSpec((1, cp), lambda n, t: (0, 0)),
        ],
        out_specs=pl.BlockSpec((1, 1, th, wp, cp),
                               lambda n, t: (n, t, 0, 0, 0)),
        scratch_shapes=[pltpu.VMEM((th + 2, wp, cp), jnp.bfloat16)],
        compiler_params=pltpu.CompilerParams(
            dimension_semantics=("parallel", "parallel")),
    )(h, h, h, w1, b1, w2, b2)


# ---------------------------------------------------------------------------
# Block forward (mode="same")
# ---------------------------------------------------------------------------
def block_forward(x_nchw, params, max_rows_per_tile=None):
    N, Cin, H, W = x_nchw.shape
    Cout = params["w0"].shape[-1]
    Cmid = params["res"][0][0].shape[-1] if params["res"] else Cin
    cin_p, cout_p, cmid_p = _rup128(Cin), _rup128(Cout), _rup128(Cmid)

    th = _pick_tile_rows(H, W, max(cin_p, cout_p), cmid_p, cout_p,
                         max_rows=max_rows_per_tile)
    T = H // th
    wp = W + 2

    # NCHW -> (N, T, th, W+2, Cp): channel-pad to 128 (lane-dense), zero-pad W,
    # bf16.  This layout is produced/consumed unchanged by every layer, so no
    # per-layer halo materialization or re-tiling happens in HBM.
    x = jnp.transpose(x_nchw, (0, 2, 3, 1))
    x = jnp.pad(x, ((0, 0), (0, 0), (1, 1), (0, cin_p - Cin)))
    x = x.astype(jnp.bfloat16).reshape(N, T, th, wp, cin_p)

    w0, b0 = _prep_conv3(params["w0"], params["s0"], params["b0"], cin_p, cout_p)
    h = _conv3_call(x, w0, b0)                           # (N,T,th,W+2,cout_p) bf16
    for (w1, s1, b1, w2, s2, b2) in params["res"]:
        w1p, b1p = _prep_conv1(w1, s1, b1, cout_p, cmid_p)
        w2p, b2p = _prep_conv3(w2, s2, b2, cmid_p, cout_p)
        h = _resblock_call(h, w1p, b1p, w2p, b2p)

    out = h.reshape(N, H, wp, cout_p)[:, :, 1:1 + W, :Cout].astype(jnp.float32)
    return jnp.transpose(out, (0, 3, 1, 2))              # NHWC -> NCHW


# ---------------------------------------------------------------------------
# References
# ---------------------------------------------------------------------------
def ref_forward(x_nchw, params):
    """Full-f32 reference (HIGHEST precision)."""
    x = jnp.transpose(x_nchw, (0, 2, 3, 1))

    def cbl(h, w, s, b):
        y = jax.lax.conv_general_dilated(
            h, w, (1, 1), "SAME",
            dimension_numbers=("NHWC", "HWIO", "NHWC"),
            precision=jax.lax.Precision.HIGHEST)
        y = y * s.reshape(1, 1, 1, -1) + b.reshape(1, 1, 1, -1)
        return jnp.where(y > 0, y, NEG_SLOPE * y)

    h = cbl(x, params["w0"], params["s0"], params["b0"])
    for (w1, s1, b1, w2, s2, b2) in params["res"]:
        m = cbl(h, w1, s1, b1)
        h = h + cbl(m, w2, s2, b2)
    return jnp.transpose(h, (0, 3, 1, 2))


def ref_forward_bf16(x_nchw, params):
    """Mirrors the kernel's numerics: bf16 operands, f32 accumulation/epilogue,
    BN scale folded into weights, activations stored in bf16 between layers."""
    x = jnp.transpose(x_nchw, (0, 2, 3, 1)).astype(jnp.bfloat16)

    def cbl(h, w, s, b):
        wq = (w * s.reshape(1, 1, 1, -1)).astype(jnp.bfloat16)
        y = jax.lax.conv_general_dilated(
            h, wq, (1, 1), "SAME",
            dimension_numbers=("NHWC", "HWIO", "NHWC"),
            preferred_element_type=jnp.float32)
        y = y + b.reshape(1, 1, 1, -1)
        return jnp.where(y > 0, y, NEG_SLOPE * y)        # f32

    h = cbl(x, params["w0"], params["s0"], params["b0"]).astype(jnp.bfloat16)
    for (w1, s1, b1, w2, s2, b2) in params["res"]:
        m = cbl(h, w1, s1, b1).astype(jnp.bfloat16)
        y = cbl(m, w2, s2, b2)
        h = (h.astype(jnp.float32) + y).astype(jnp.bfloat16)
    return jnp.transpose(h.astype(jnp.float32), (0, 3, 1, 2))


# ---------------------------------------------------------------------------
# Deterministic parameter init (BN folded to scale/bias, eval mode)
# ---------------------------------------------------------------------------
def _conv_w(key, kh, kw, cin, cout):
    fan_in = kh * kw * cin
    return jax.random.normal(key, (kh, kw, cin, cout), jnp.float32) / jnp.sqrt(fan_in)


def _fold_bn(key, cout):
    kg, kb, km, kv = jax.random.split(key, 4)
    gamma = 1.0 + 0.1 * jax.random.normal(kg, (cout,), jnp.float32)
    beta = 0.1 * jax.random.normal(kb, (cout,), jnp.float32)
    rmean = 0.1 * jax.random.normal(km, (cout,), jnp.float32)
    rvar = 1.0 + 0.1 * jnp.abs(jax.random.normal(kv, (cout,), jnp.float32))
    eps = 1e-5
    scale = gamma / jnp.sqrt(rvar + eps)
    bias = beta - rmean * scale
    return scale.reshape(1, cout), bias.reshape(1, cout)


def init_params(key, in_ch, out_ch, num_blocks):
    keys = jax.random.split(key, 1 + num_blocks)
    kw0, kbn0 = jax.random.split(keys[0])
    w0 = _conv_w(kw0, 3, 3, in_ch, out_ch)               # Block conv: 3x3, in->out
    s0, b0 = _fold_bn(kbn0, out_ch)
    res = []
    for i in range(num_blocks):
        k1, k2, k3, k4 = jax.random.split(keys[1 + i], 4)
        w1 = _conv_w(k1, 1, 1, out_ch, in_ch)            # ResidualBlock: 1x1, out->mid
        s1, b1 = _fold_bn(k2, in_ch)
        w2 = _conv_w(k3, 3, 3, in_ch, out_ch)            # ResidualBlock: 3x3, mid->out
        s2, b2 = _fold_bn(k4, out_ch)
        res.append((w1, s1, b1, w2, s2, b2))
    return {"w0": w0, "s0": s0, "b0": b0, "res": res}


if __name__ == "__main__":
    in_ch, out_ch, num_blocks = 4, 8, 2
    N, H, W = 2, 16, 16

    key = jax.random.PRNGKey(0)
    kx, kp = jax.random.split(key)
    x = jax.random.normal(kx, (N, in_ch, H, W), jnp.float32)   # NCHW, like PyTorch
    params = init_params(kp, in_ch, out_ch, num_blocks)

    # max_rows_per_tile=8 -> 2 row tiles per image (exercises halo fetch + masks).
    fwd = jax.jit(lambda inp: block_forward(inp, params, max_rows_per_tile=8))
    out = jax.block_until_ready(fwd(x))
    assert out.shape == (N, out_ch, H, W), out.shape

    ref_b = ref_forward_bf16(x, params)       # same numerics as the kernel path
    ref_f = ref_forward(x, params)            # full f32 reference
    err_b = float(jnp.max(jnp.abs(out - ref_b)))
    rel_f = float(jnp.sqrt(jnp.mean((out - ref_f) ** 2) / jnp.mean(ref_f ** 2)))
    assert jnp.allclose(out, ref_b, atol=2e-2, rtol=2e-2), f"bf16-ref max err = {err_b}"
    assert rel_f < 2e-2, f"f32-ref relative RMS err = {rel_f}"

    print("KERNEL_OK")
</pallas_src>

<mosaic_0001>
module attributes {stable_mosaic.version = 11 : i64} {
  func.func @_conv3_bn_lrelu_kernel(%arg0: i32, %arg1: i32, %arg2: memref<1x1x8x18x128xbf16, #tpu.memory_space<vmem>>, %arg3: memref<1x1x1x18x128xbf16, #tpu.memory_space<vmem>>, %arg4: memref<1x1x1x18x128xbf16, #tpu.memory_space<vmem>>, %arg5: memref<9x128x128xbf16, #tpu.memory_space<vmem>>, %arg6: memref<1x128xf32, #tpu.memory_space<vmem>>, %arg7: memref<1x1x8x18x128xbf16, #tpu.memory_space<vmem>>, %arg8: memref<10x18x128xbf16, #tpu.memory_space<vmem>>) attributes {dimension_semantics = [#tpu.dimension_semantics<parallel>, #tpu.dimension_semantics<parallel>], iteration_bounds = array<i64: 2, 2>, scalar_prefetch = 0 : i64, scratch_operands = 1 : i64, tpu.core_type = #tpu.core_type<tc>, window_params = [{transform_indices = @transform_0, window_bounds = array<i64: 1, 1, 8, 18, 128>}, {transform_indices = @transform_1, window_bounds = array<i64: 1, 1, 1, 18, 128>}, {transform_indices = @transform_2, window_bounds = array<i64: 1, 1, 1, 18, 128>}, {pipeline_mode = #tpu.pipeline_mode<synchronous>, transform_indices = @transform_3, window_bounds = array<i64: 9, 128, 128>}, {pipeline_mode = #tpu.pipeline_mode<synchronous>, transform_indices = @transform_4, window_bounds = array<i64: 1, 128>}, {transform_indices = @transform_5, window_bounds = array<i64: 1, 1, 8, 18, 128>}]} {
    %c0 = arith.constant 0 : index
    %c0_0 = arith.constant 0 : index
    %c0_1 = arith.constant 0 : index
    %c0_2 = arith.constant 0 : index
    %c0_3 = arith.constant 0 : index
    %0 = vector.load %arg2[%c0, %c0_0, %c0_1, %c0_2, %c0_3] : memref<1x1x8x18x128xbf16, #tpu.memory_space<vmem>>, vector<1x1x8x18x128xbf16>
    %1 = vector.shape_cast %0 : vector<1x1x8x18x128xbf16> to vector<8x18x128xbf16>
    %c1 = arith.constant 1 : index
    %c0_4 = arith.constant 0 : index
    %c0_5 = arith.constant 0 : index
    %2 = vector.load %arg8[%c1, %c0_4, %c0_5] : memref<10x18x128xbf16, #tpu.memory_space<vmem>>, vector<8x18x128xbf16>
    tpu.vector_store %arg8[%c1, %c0_4, %c0_5], %1 {strides = array<i32>} : memref<10x18x128xbf16, #tpu.memory_space<vmem>>, vector<8x18x128xbf16>,
    %c0_i32 = arith.constant 0 : i32
    %3 = arith.cmpi sgt, %arg1, %c0_i32 : i32
    %c0_6 = arith.constant 0 : index
    %c0_7 = arith.constant 0 : index
    %c0_8 = arith.constant 0 : index
    %c0_9 = arith.constant 0 : index
    %c0_10 = arith.constant 0 : index
    %4 = vector.load %arg3[%c0_6, %c0_7, %c0_8, %c0_9, %c0_10] : memref<1x1x1x18x128xbf16, #tpu.memory_space<vmem>>, vector<1x1x1x18x128xbf16>
    %5 = vector.shape_cast %4 : vector<1x1x1x18x128xbf16> to vector<1x18x128xbf16>
    %cst = arith.constant 0.000000e+00 : bf16
    %6 = vector.broadcast %cst : bf16 to vector<1x18x128xbf16>
    %7 = arith.select %3, %5, %6 : vector<1x18x128xbf16>
    %c0_11 = arith.constant 0 : index
    %c0_12 = arith.constant 0 : index
    %c0_13 = arith.constant 0 : index
    %8 = vector.load %arg8[%c0_11, %c0_12, %c0_13] : memref<10x18x128xbf16, #tpu.memory_space<vmem>>, vector<1x18x128xbf16>
    tpu.vector_store %arg8[%c0_11, %c0_12, %c0_13], %7 {strides = array<i32>} : memref<10x18x128xbf16, #tpu.memory_space<vmem>>, vector<1x18x128xbf16>,
    %c1_i32 = arith.constant 1 : i32
    %9 = arith.cmpi slt, %arg1, %c1_i32 : i32
    %c0_14 = arith.constant 0 : index
    %c0_15 = arith.constant 0 : index
    %c0_16 = arith.constant 0 : index
    %c0_17 = arith.constant 0 : index
    %c0_18 = arith.constant 0 : index
    %10 = vector.load %arg4[%c0_14, %c0_15, %c0_16, %c0_17, %c0_18] : memref<1x1x1x18x128xbf16, #tpu.memory_space<vmem>>, vector<1x1x1x18x128xbf16>
    %11 = vector.shape_cast %10 : vector<1x1x1x18x128xbf16> to vector<1x18x128xbf16>
    %cst_19 = arith.constant 0.000000e+00 : bf16
    %12 = vector.broadcast %cst_19 : bf16 to vector<1x18x128xbf16>
    %13 = arith.select %9, %11, %12 : vector<1x18x128xbf16>
    %c9 = arith.constant 9 : index
    %c0_20 = arith.constant 0 : index
    %c0_21 = arith.constant 0 : index
    %14 = vector.load %arg8[%c9, %c0_20, %c0_21] : memref<10x18x128xbf16, #tpu.memory_space<vmem>>, vector<1x18x128xbf16>
    tpu.vector_store %arg8[%c9, %c0_20, %c0_21], %13 {strides = array<i32>} : memref<10x18x128xbf16, #tpu.memory_space<vmem>>, vector<1x18x128xbf16>,
    %c0_22 = arith.constant 0 : index
    %c0_23 = arith.constant 0 : index
    %c0_24 = arith.constant 0 : index
    %15 = vector.load %arg8[%c0_22, %c0_23, %c0_24] : memref<10x18x128xbf16, #tpu.memory_space<vmem>>, vector<10x18x128xbf16>
    %cst_25 = arith.constant 0.000000e+00 : f32
    %16 = vector.broadcast %cst_25 : f32 to vector<128x128xf32>
    %17 = vector.extract_strided_slice %15 {offsets = [0, 0, 0], sizes = [8, 16, 128], strides = [1, 1, 1]} : vector<10x18x128xbf16> to vector<8x16x128xbf16>
    %18 = vector.shape_cast %17 : vector<8x16x128xbf16> to vector<128x128xbf16>
    %c0_26 = arith.constant 0 : index
    %c0_27 = arith.constant 0 : index
    %c0_28 = arith.constant 0 : index
    %19 = vector.load %arg5[%c0_26, %c0_27, %c0_28] : memref<9x128x128xbf16, #tpu.memory_space<vmem>>, vector<1x128x128xbf16>
    %20 = vector.shape_cast %19 : vector<1x128x128xbf16> to vector<128x128xbf16>
    %cst_29 = arith.constant dense<0.000000e+00> : vector<128x128xf32>
    %21 = tpu.matmul %18, %20, %cst_29 {dimension_numbers = #tpu.dot_dimension_numbers<[1], [0], [0], [1], [0, 0, 1, 1], [], []>} : vector<128x128xbf16>, vector<128x128xbf16>, vector<128x128xf32> -> vector<128x128xf32>
    %22 = arith.addf %16, %21 : vector<128x128xf32>
    %23 = vector.extract_strided_slice %15 {offsets = [0, 1, 0], sizes = [8, 16, 128], strides = [1, 1, 1]} : vector<10x18x128xbf16> to vector<8x16x128xbf16>
    %24 = vector.shape_cast %23 : vector<8x16x128xbf16> to vector<128x128xbf16>
    %c1_30 = arith.constant 1 : index
    %c0_31 = arith.constant 0 : index
    %c0_32 = arith.constant 0 : index
    %25 = vector.load %arg5[%c1_30, %c0_31, %c0_32] : memref<9x128x128xbf16, #tpu.memory_space<vmem>>, vector<1x128x128xbf16>
    %26 = vector.shape_cast %25 : vector<1x128x128xbf16> to vector<128x128xbf16>
    %cst_33 = arith.constant dense<0.000000e+00> : vector<128x128xf32>
    %27 = tpu.matmul %24, %26, %cst_33 {dimension_numbers = #tpu.dot_dimension_numbers<[1], [0], [0], [1], [0, 0, 1, 1], [], []>} : vector<128x128xbf16>, vector<128x128xbf16>, vector<128x128xf32> -> vector<128x128xf32>
    %28 = arith.addf %22, %27 : vector<128x128xf32>
    %29 = vector.extract_strided_slice %15 {offsets = [0, 2, 0], sizes = [8, 16, 128], strides = [1, 1, 1]} : vector<10x18x128xbf16> to vector<8x16x128xbf16>
    %30 = vector.shape_cast %29 : vector<8x16x128xbf16> to vector<128x128xbf16>
    %c2 = arith.constant 2 : index
    %c0_34 = arith.constant 0 : index
    %c0_35 = arith.constant 0 : index
    %31 = vector.load %arg5[%c2, %c0_34, %c0_35] : memref<9x128x128xbf16, #tpu.memory_space<vmem>>, vector<1x128x128xbf16>
    %32 = vector.shape_cast %31 : vector<1x128x128xbf16> to vector<128x128xbf16>
    %cst_36 = arith.constant dense<0.000000e+00> : vector<128x128xf32>
    %33 = tpu.matmul %30, %32, %cst_36 {dimension_numbers = #tpu.dot_dimension_numbers<[1], [0], [0], [1], [0, 0, 1, 1], [], []>} : vector<128x128xbf16>, vector<128x128xbf16>, vector<128x128xf32> -> vector<128x128xf32>
    %34 = arith.addf %28, %33 : vector<128x128xf32>
    %35 = vector.extract_strided_slice %15 {offsets = [1, 0, 0], sizes = [8, 16, 128], strides = [1, 1, 1]} : vector<10x18x128xbf16> to vector<8x16x128xbf16>
    %36 = vector.shape_cast %35 : vector<8x16x128xbf16> to vector<128x128xbf16>
    %c3 = arith.constant 3 : index
    %c0_37 = arith.constant 0 : index
    %c0_38 = arith.constant 0 : index
    %37 = vector.load %arg5[%c3, %c0_37, %c0_38] : memref<9x128x128xbf16, #tpu.memory_space<vmem>>, vector<1x128x128xbf16>
    %38 = vector.shape_cast %37 : vector<1x128x128xbf16> to vector<128x128xbf16>
    %cst_39 = arith.constant dense<0.000000e+00> : vector<128x128xf32>
    %39 = tpu.matmul %36, %38, %cst_39 {dimension_numbers = #tpu.dot_dimension_numbers<[1], [0], [0], [1], [0, 0, 1, 1], [], []>} : vector<128x128xbf16>, vector<128x128xbf16>, vector<128x128xf32> -> vector<128x128xf32>
    %40 = arith.addf %34, %39 : vector<128x128xf32>
    %41 = vector.extract_strided_slice %15 {offsets = [1, 1, 0], sizes = [8, 16, 128], strides = [1, 1, 1]} : vector<10x18x128xbf16> to vector<8x16x128xbf16>
    %42 = vector.shape_cast %41 : vector<8x16x128xbf16> to vector<128x128xbf16>
    %c4 = arith.constant 4 : index
    %c0_40 = arith.constant 0 : index
    %c0_41 = arith.constant 0 : index
    %43 = vector.load %arg5[%c4, %c0_40, %c0_41] : memref<9x128x128xbf16, #tpu.memory_space<vmem>>, vector<1x128x128xbf16>
    %44 = vector.shape_cast %43 : vector<1x128x128xbf16> to vector<128x128xbf16>
    %cst_42 = arith.constant dense<0.000000e+00> : vector<128x128xf32>
    %45 = tpu.matmul %42, %44, %cst_42 {dimension_numbers = #tpu.dot_dimension_numbers<[1], [0], [0], [1], [0, 0, 1, 1], [], []>} : vector<128x128xbf16>, vector<128x128xbf16>, vector<128x128xf32> -> vector<128x128xf32>
    %46 = arith.addf %40, %45 : vector<128x128xf32>
    %47 = vector.extract_strided_slice %15 {offsets = [1, 2, 0], sizes = [8, 16, 128], strides = [1, 1, 1]} : vector<10x18x128xbf16> to vector<8x16x128xbf16>
    %48 = vector.shape_cast %47 : vector<8x16x128xbf16> to vector<128x128xbf16>
    %c5 = arith.constant 5 : index
    %c0_43 = arith.constant 0 : index
    %c0_44 = arith.constant 0 : index
    %49 = vector.load %arg5[%c5, %c0_43, %c0_44] : memref<9x128x128xbf16, #tpu.memory_space<vmem>>, vector<1x128x128xbf16>
    %50 = vector.shape_cast %49 : vector<1x128x128xbf16> to vector<128x128xbf16>
    %cst_45 = arith.constant dense<0.000000e+00> : vector<128x128xf32>
    %51 = tpu.matmul %48, %50, %cst_45 {dimension_numbers = #tpu.dot_dimension_numbers<[1], [0], [0], [1], [0, 0, 1, 1], [], []>} : vector<128x128xbf16>, vector<128x128xbf16>, vector<128x128xf32> -> vector<128x128xf32>
    %52 = arith.addf %46, %51 : vector<128x128xf32>
    %53 = vector.extract_strided_slice %15 {offsets = [2, 0, 0], sizes = [8, 16, 128], strides = [1, 1, 1]} : vector<10x18x128xbf16> to vector<8x16x128xbf16>
    %54 = vector.shape_cast %53 : vector<8x16x128xbf16> to vector<128x128xbf16>
    %c6 = arith.constant 6 : index
    %c0_46 = arith.constant 0 : index
    %c0_47 = arith.constant 0 : index
    %55 = vector.load %arg5[%c6, %c0_46, %c0_47] : memref<9x128x128xbf16, #tpu.memory_space<vmem>>, vector<1x128x128xbf16>
    %56 = vector.shape_cast %55 : vector<1x128x128xbf16> to vector<128x128xbf16>
    %cst_48 = arith.constant dense<0.000000e+00> : vector<128x128xf32>
    %57 = tpu.matmul %54, %56, %cst_48 {dimension_numbers = #tpu.dot_dimension_numbers<[1], [0], [0], [1], [0, 0, 1, 1], [], []>} : vector<128x128xbf16>, vector<128x128xbf16>, vector<128x128xf32> -> vector<128x128xf32>
    %58 = arith.addf %52, %57 : vector<128x128xf32>
    %59 = vector.extract_strided_slice %15 {offsets = [2, 1, 0], sizes = [8, 16, 128], strides = [1, 1, 1]} : vector<10x18x128xbf16> to vector<8x16x128xbf16>
    %60 = vector.shape_cast %59 : vector<8x16x128xbf16> to vector<128x128xbf16>
    %c7 = arith.constant 7 : index
    %c0_49 = arith.constant 0 : index
    %c0_50 = arith.constant 0 : index
    %61 = vector.load %arg5[%c7, %c0_49, %c0_50] : memref<9x128x128xbf16, #tpu.memory_space<vmem>>, vector<1x128x128xbf16>
    %62 = vector.shape_cast %61 : vector<1x128x128xbf16> to vector<128x128xbf16>
    %cst_51 = arith.constant dense<0.000000e+00> : vector<128x128xf32>
    %63 = tpu.matmul %60, %62, %cst_51 {dimension_numbers = #tpu.dot_dimension_numbers<[1], [0], [0], [1], [0, 0, 1, 1], [], []>} : vector<128x128xbf16>, vector<128x128xbf16>, vector<128x128xf32> -> vector<128x128xf32>
    %64 = arith.addf %58, %63 : vector<128x128xf32>
    %65 = vector.extract_strided_slice %15 {offsets = [2, 2, 0], sizes = [8, 16, 128], strides = [1, 1, 1]} : vector<10x18x128xbf16> to vector<8x16x128xbf16>
    %66 = vector.shape_cast %65 : vector<8x16x128xbf16> to vector<128x128xbf16>
    %c8 = arith.constant 8 : index
    %c0_52 = arith.constant 0 : index
    %c0_53 = arith.constant 0 : index
    %67 = vector.load %arg5[%c8, %c0_52, %c0_53] : memref<9x128x128xbf16, #tpu.memory_space<vmem>>, vector<1x128x128xbf16>
    %68 = vector.shape_cast %67 : vector<1x128x128xbf16> to vector<128x128xbf16>
    %cst_54 = arith.constant dense<0.000000e+00> : vector<128x128xf32>
    %69 = tpu.matmul %66, %68, %cst_54 {dimension_numbers = #tpu.dot_dimension_numbers<[1], [0], [0], [1], [0, 0, 1, 1], [], []>} : vector<128x128xbf16>, vector<128x128xbf16>, vector<128x128xf32> -> vector<128x128xf32>
    %70 = arith.addf %64, %69 : vector<128x128xf32>
    %c0_55 = arith.constant 0 : index
    %c0_56 = arith.constant 0 : index
    %71 = vector.load %arg6[%c0_55, %c0_56] : memref<1x128xf32, #tpu.memory_space<vmem>>, vector<1x128xf32>
    %72 = vector.broadcast %71 : vector<1x128xf32> to vector<128x128xf32>
    %73 = arith.addf %70, %72 : vector<128x128xf32>
    %cst_57 = arith.constant 0.000000e+00 : f32
    %74 = vector.broadcast %cst_57 : f32 to vector<128x128xf32>
    %75 = arith.cmpf ogt, %73, %74 : vector<128x128xf32>
    %cst_58 = arith.constant 1.000000e-01 : f32
    %76 = vector.broadcast %cst_58 : f32 to vector<128x128xf32>
    %77 = arith.mulf %76, %73 : vector<128x128xf32>
    %78 = arith.select %75, %73, %77 : vector<128x128xi1>, vector<128x128xf32>
    %79 = arith.truncf %78 : vector<128x128xf32> to vector<128x128xbf16>
    %80 = vector.shape_cast %79 : vector<128x128xbf16> to vector<8x16x128xbf16>
    %cst_59 = arith.constant 0.000000e+00 : bf16
    %81 = vector.broadcast %cst_59 : bf16 to vector<8x1x128xbf16>
    %c0_60 = arith.constant 0 : index
    %c0_61 = arith.constant 0 : index
    %c0_62 = arith.constant 0 : index
    %c0_63 = arith.constant 0 : index
    %c0_64 = arith.constant 0 : index
    %82 = vector.load %arg7[%c0_60, %c0_61, %c0_62, %c0_63, %c0_64] : memref<1x1x8x18x128xbf16, #tpu.memory_space<vmem>>, vector<1x1x8x1x128xbf16>
    %83 = vector.shape_cast %82 : vector<1x1x8x1x128xbf16> to vector<8x1x128xbf16>
    %84 = vector.shape_cast %81 : vector<8x1x128xbf16> to vector<1x1x8x1x128xbf16>
    tpu.vector_store %arg7[%c0_60, %c0_61, %c0_62, %c0_63, %c0_64], %84 {strides = array<i32>} : memref<1x1x8x18x128xbf16, #tpu.memory_space<vmem>>, vector<1x1x8x1x128xbf16>,
    %c0_65 = arith.constant 0 : index
    %c0_66 = arith.constant 0 : index
    %c0_67 = arith.constant 0 : index
    %c17 = arith.constant 17 : index
    %c0_68 = arith.constant 0 : index
    %85 = vector.load %arg7[%c0_65, %c0_66, %c0_67, %c17, %c0_68] : memref<1x1x8x18x128xbf16, #tpu.memory_space<vmem>>, vector<1x1x8x1x128xbf16>
    %86 = vector.shape_cast %85 : vector<1x1x8x1x128xbf16> to vector<8x1x128xbf16>
    %87 = vector.shape_cast %81 : vector<8x1x128xbf16> to vector<1x1x8x1x128xbf16>
    tpu.vector_store %arg7[%c0_65, %c0_66, %c0_67, %c17, %c0_68], %87 {strides = array<i32>} : memref<1x1x8x18x128xbf16, #tpu.memory_space<vmem>>, vector<1x1x8x1x128xbf16>,
    %c0_69 = arith.constant 0 : index
    %c0_70 = arith.constant 0 : index
    %c0_71 = arith.constant 0 : index
    %c1_72 = arith.constant 1 : index
    %c0_73 = arith.constant 0 : index
    %88 = vector.load %arg7[%c0_69, %c0_70, %c0_71, %c1_72, %c0_73] : memref<1x1x8x18x128xbf16, #tpu.memory_space<vmem>>, vector<1x1x8x16x128xbf16>
    %89 = vector.shape_cast %88 : vector<1x1x8x16x128xbf16> to vector<8x16x128xbf16>
    %90 = vector.shape_cast %80 : vector<8x16x128xbf16> to vector<1x1x8x16x128xbf16>
    tpu.vector_store %arg7[%c0_69, %c0_70, %c0_71, %c1_72, %c0_73], %90 {strides = array<i32>} : memref<1x1x8x18x128xbf16, #tpu.memory_space<vmem>>, vector<1x1x8x16x128xbf16>,
    return
  }
  func.func @transform_0(%arg0: i32, %arg1: i32) -> (i32, i32, i32, i32, i32) {
    %c0_i32 = arith.constant 0 : i32
    %c0_i32_0 = arith.constant 0 : i32
    %c0_i32_1 = arith.constant 0 : i32
    %c0_i32_2 = arith.constant 0 : i32
    return %arg0, %arg1, %c0_i32, %c0_i32_0, %c0_i32_1 : i32, i32, i32, i32, i32
  }
  func.func @transform_1(%arg0: i32, %arg1: i32) -> (i32, i32, i32, i32, i32) {
    %c1_i32 = arith.constant 1 : i32
    %0 = arith.subi %arg1, %c1_i32 : i32
    %c0_i32 = arith.constant 0 : i32
    %1 = arith.maxsi %0, %c0_i32 : i32
    %c7_i32 = arith.constant 7 : i32
    %c0_i32_0 = arith.constant 0 : i32
    %c0_i32_1 = arith.constant 0 : i32
    %c0_i32_2 = arith.constant 0 : i32
    return %arg0, %1, %c7_i32, %c0_i32_0, %c0_i32_1 : i32, i32, i32, i32, i32
  }
  func.func @transform_2(%arg0: i32, %arg1: i32) -> (i32, i32, i32, i32, i32) {
    %c1_i32 = arith.constant 1 : i32
    %0 = arith.addi %arg1, %c1_i32 : i32
    %c1_i32_0 = arith.constant 1 : i32
    %1 = arith.minsi %0, %c1_i32_0 : i32
    %c0_i32 = arith.constant 0 : i32
    %c0_i32_1 = arith.constant 0 : i32
    %c0_i32_2 = arith.constant 0 : i32
    %c0_i32_3 = arith.constant 0 : i32
    return %arg0, %1, %c0_i32, %c0_i32_1, %c0_i32_2 : i32, i32, i32, i32, i32
  }
  func.func @transform_3(%arg0: i32, %arg1: i32) -> (i32, i32, i32) {
    %c0_i32 = arith.constant 0 : i32
    %c0_i32_0 = arith.constant 0 : i32
    %c0_i32_1 = arith.constant 0 : i32
    %c0_i32_2 = arith.constant 0 : i32
    return %c0_i32, %c0_i32_0, %c0_i32_1 : i32, i32, i32
  }
  func.func @transform_4(%arg0: i32, %arg1: i32) -> (i32, i32) {
    %c0_i32 = arith.constant 0 : i32
    %c0_i32_0 = arith.constant 0 : i32
    %c0_i32_1 = arith.constant 0 : i32
    return %c0_i32, %c0_i32_0 : i32, i32
  }
  func.func @transform_5(%arg0: i32, %arg1: i32) -> (i32, i32, i32, i32, i32) {
    %c0_i32 = arith.constant 0 : i32
    %c0_i32_0 = arith.constant 0 : i32
    %c0_i32_1 = arith.constant 0 : i32
    %c0_i32_2 = arith.constant 0 : i32
    return %arg0, %arg1, %c0_i32, %c0_i32_0, %c0_i32_1 : i32, i32, i32, i32, i32
  }
}

module attributes {stable_mosaic.version = 11 : i64} {
  func.func @_resblock_kernel(%arg0: i32, %arg1: i32, %arg2: memref<1x1x8x18x128xbf16, #tpu.memory_space<vmem>>, %arg3: memref<1x1x1x18x128xbf16, #tpu.memory_space<vmem>>, %arg4: memref<1x1x1x18x128xbf16, #tpu.memory_space<vmem>>, %arg5: memref<128x128xbf16, #tpu.memory_space<vmem>>, %arg6: memref<1x128xf32, #tpu.memory_space<vmem>>, %arg7: memref<9x128x128xbf16, #tpu.memory_space<vmem>>, %arg8: memref<1x128xf32, #tpu.memory_space<vmem>>, %arg9: memref<1x1x8x18x128xbf16, #tpu.memory_space<vmem>>, %arg10: memref<10x18x128xbf16, #tpu.memory_space<vmem>>) attributes {dimension_semantics = [#tpu.dimension_semantics<parallel>, #tpu.dimension_semantics<parallel>], iteration_bounds = array<i64: 2, 2>, scalar_prefetch = 0 : i64, scratch_operands = 1 : i64, tpu.core_type = #tpu.core_type<tc>, window_params = [{transform_indices = @transform_0, window_bounds = array<i64: 1, 1, 8, 18, 128>}, {transform_indices = @transform_1, window_bounds = array<i64: 1, 1, 1, 18, 128>}, {transform_indices = @transform_2, window_bounds = array<i64: 1, 1, 1, 18, 128>}, {pipeline_mode = #tpu.pipeline_mode<synchronous>, transform_indices = @transform_3, window_bounds = array<i64: 128, 128>}, {pipeline_mode = #tpu.pipeline_mode<synchronous>, transform_indices = @transform_4, window_bounds = array<i64: 1, 128>}, {pipeline_mode = #tpu.pipeline_mode<synchronous>, transform_indices = @transform_5, window_bounds = array<i64: 9, 128, 128>}, {pipeline_mode = #tpu.pipeline_mode<synchronous>, transform_indices = @transform_6, window_bounds = array<i64: 1, 128>}, {transform_indices = @transform_7, window_bounds = array<i64: 1, 1, 8, 18, 128>}]} {
    %c0 = arith.constant 0 : index
    %c0_0 = arith.constant 0 : index
    %c0_1 = arith.constant 0 : index
    %c0_2 = arith.constant 0 : index
    %c0_3 = arith.constant 0 : index
    %0 = vector.load %arg2[%c0, %c0_0, %c0_1, %c0_2, %c0_3] : memref<1x1x8x18x128xbf16, #tpu.memory_space<vmem>>, vector<1x1x8x18x128xbf16>
    %1 = vector.shape_cast %0 : vector<1x1x8x18x128xbf16> to vector<8x18x128xbf16>
    %c1 = arith.constant 1 : index
    %c0_4 = arith.constant 0 : index
    %c0_5 = arith.constant 0 : index
    %2 = vector.load %arg10[%c1, %c0_4, %c0_5] : memref<10x18x128xbf16, #tpu.memory_space<vmem>>, vector<8x18x128xbf16>
    tpu.vector_store %arg10[%c1, %c0_4, %c0_5], %1 {strides = array<i32>} : memref<10x18x128xbf16, #tpu.memory_space<vmem>>, vector<8x18x128xbf16>,
    %c0_i32 = arith.constant 0 : i32
    %3 = arith.cmpi sgt, %arg1, %c0_i32 : i32
    %c0_6 = arith.constant 0 : index
    %c0_7 = arith.constant 0 : index
    %c0_8 = arith.constant 0 : index
    %c0_9 = arith.constant 0 : index
    %c0_10 = arith.constant 0 : index
    %4 = vector.load %arg3[%c0_6, %c0_7, %c0_8, %c0_9, %c0_10] : memref<1x1x1x18x128xbf16, #tpu.memory_space<vmem>>, vector<1x1x1x18x128xbf16>
    %5 = vector.shape_cast %4 : vector<1x1x1x18x128xbf16> to vector<1x18x128xbf16>
    %cst = arith.constant 0.000000e+00 : bf16
    %6 = vector.broadcast %cst : bf16 to vector<1x18x128xbf16>
    %7 = arith.select %3, %5, %6 : vector<1x18x128xbf16>
    %c0_11 = arith.constant 0 : index
    %c0_12 = arith.constant 0 : index
    %c0_13 = arith.constant 0 : index
    %8 = vector.load %arg10[%c0_11, %c0_12, %c0_13] : memref<10x18x128xbf16, #tpu.memory_space<vmem>>, vector<1x18x128xbf16>
    tpu.vector_store %arg10[%c0_11, %c0_12, %c0_13], %7 {strides = array<i32>} : memref<10x18x128xbf16, #tpu.memory_space<vmem>>, vector<1x18x128xbf16>,
    %c1_i32 = arith.constant 1 : i32
    %9 = arith.cmpi slt, %arg1, %c1_i32 : i32
    %c0_14 = arith.constant 0 : index
    %c0_15 = arith.constant 0 : index
    %c0_16 = arith.constant 0 : index
    %c0_17 = arith.constant 0 : index
    %c0_18 = arith.constant 0 : index
    %10 = vector.load %arg4[%c0_14, %c0_15, %c0_16, %c0_17, %c0_18] : memref<1x1x1x18x128xbf16, #tpu.memory_space<vmem>>, vector<1x1x1x18x128xbf16>
    %11 = vector.shape_cast %10 : vector<1x1x1x18x128xbf16> to vector<1x18x128xbf16>
    %cst_19 = arith.constant 0.000000e+00 : bf16
    %12 = vector.broadcast %cst_19 : bf16 to vector<1x18x128xbf16>
    %13 = arith.select %9, %11, %12 : vector<1x18x128xbf16>
    %c9 = arith.constant 9 : index
    %c0_20 = arith.constant 0 : index
    %c0_21 = arith.constant 0 : index
    %14 = vector.load %arg10[%c9, %c0_20, %c0_21] : memref<10x18x128xbf16, #tpu.memory_space<vmem>>, vector<1x18x128xbf16>
    tpu.vector_store %arg10[%c9, %c0_20, %c0_21], %13 {strides = array<i32>} : memref<10x18x128xbf16, #tpu.memory_space<vmem>>, vector<1x18x128xbf16>,
    %c0_22 = arith.constant 0 : index
    %c0_23 = arith.constant 0 : index
    %c0_24 = arith.constant 0 : index
    %15 = vector.load %arg10[%c0_22, %c0_23, %c0_24] : memref<10x18x128xbf16, #tpu.memory_space<vmem>>, vector<10x18x128xbf16>
    %16 = vector.shape_cast %15 : vector<10x18x128xbf16> to vector<180x128xbf16>
    %c0_25 = arith.constant 0 : index
    %c0_26 = arith.constant 0 : index
    %17 = vector.load %arg5[%c0_25, %c0_26] : memref<128x128xbf16, #tpu.memory_space<vmem>>, vector<128x128xbf16>
    %cst_27 = arith.constant dense<0.000000e+00> : vector<180x128xf32>
    %18 = tpu.matmul %16, %17, %cst_27 {dimension_numbers = #tpu.dot_dimension_numbers<[1], [0], [0], [1], [0, 0, 1, 1], [], []>} : vector<180x128xbf16>, vector<128x128xbf16>, vector<180x128xf32> -> vector<180x128xf32>
    %c0_28 = arith.constant 0 : index
    %c0_29 = arith.constant 0 : index
    %19 = vector.load %arg6[%c0_28, %c0_29] : memref<1x128xf32, #tpu.memory_space<vmem>>, vector<1x128xf32>
    %20 = vector.broadcast %19 : vector<1x128xf32> to vector<180x128xf32>
    %21 = arith.addf %18, %20 : vector<180x128xf32>
    %cst_30 = arith.constant 0.000000e+00 : f32
    %22 = vector.broadcast %cst_30 : f32 to vector<180x128xf32>
    %23 = arith.cmpf ogt, %21, %22 : vector<180x128xf32>
    %cst_31 = arith.constant 1.000000e-01 : f32
    %24 = vector.broadcast %cst_31 : f32 to vector<180x128xf32>
    %25 = arith.mulf %24, %21 : vector<180x128xf32>
    %26 = arith.select %23, %21, %25 : vector<180x128xi1>, vector<180x128xf32>
    %27 = vector.shape_cast %26 : vector<180x128xf32> to vector<10x18x128xf32>
    %28 = tpu.iota {dimensions = array<i32: 0>} : vector<10x18x128xi32>
    %29 = tpu.iota {dimensions = array<i32: 1>} : vector<10x18x128xi32>
    %c1_i32_32 = arith.constant 1 : i32
    %30 = vector.broadcast %c1_i32_32 : i32 to vector<10x18x128xi32>
    %31 = arith.cmpi sge, %29, %30 : vector<10x18x128xi32>
    %c16_i32 = arith.constant 16 : i32
    %32 = vector.broadcast %c16_i32 : i32 to vector<10x18x128xi32>
    %33 = arith.cmpi sle, %29, %32 : vector<10x18x128xi32>
    %34 = arith.andi %31, %33 : vector<10x18x128xi1>
    %c0_i32_33 = arith.constant 0 : i32
    %35 = vector.broadcast %c0_i32_33 : i32 to vector<10x18x128xi32>
    %36 = arith.cmpi eq, %28, %35 : vector<10x18x128xi32>
    %c0_i32_34 = arith.constant 0 : i32
    %37 = arith.cmpi eq, %arg1, %c0_i32_34 : i32
    %38 = vector.broadcast %37 : i1 to vector<10x18x128xi1>
    %39 = arith.andi %36, %38 : vector<10x18x128xi1>
    %cst_35 = arith.constant dense<true> : vector<10x18x128xi1>
    %40 = arith.xori %39, %cst_35 : vector<10x18x128xi1>
    %41 = arith.andi %34, %40 : vector<10x18x128xi1>
    %c9_i32 = arith.constant 9 : i32
    %42 = vector.broadcast %c9_i32 : i32 to vector<10x18x128xi32>
    %43 = arith.cmpi eq, %28, %42 : vector<10x18x128xi32>
    %c1_i32_36 = arith.constant 1 : i32
    %44 = arith.cmpi eq, %arg1, %c1_i32_36 : i32
    %45 = vector.broadcast %44 : i1 to vector<10x18x128xi1>
    %46 = arith.andi %43, %45 : vector<10x18x128xi1>
    %cst_37 = arith.constant dense<true> : vector<10x18x128xi1>
    %47 = arith.xori %46, %cst_37 : vector<10x18x128xi1>
    %48 = arith.andi %41, %47 : vector<10x18x128xi1>
    %cst_38 = arith.constant 0.000000e+00 : f32
    %49 = vector.broadcast %cst_38 : f32 to vector<10x18x128xf32>
    %50 = arith.select %48, %27, %49 : vector<10x18x128xi1>, vector<10x18x128xf32>
    %51 = arith.truncf %50 : vector<10x18x128xf32> to vector<10x18x128xbf16>
    %cst_39 = arith.constant 0.000000e+00 : f32
    %52 = vector.broadcast %cst_39 : f32 to vector<128x128xf32>
    %53 = vector.extract_strided_slice %51 {offsets = [0, 0, 0], sizes = [8, 16, 128], strides = [1, 1, 1]} : vector<10x18x128xbf16> to vector<8x16x128xbf16>
    %54 = vector.shape_cast %53 : vector<8x16x128xbf16> to vector<128x128xbf16>
    %c0_40 = arith.constant 0 : index
    %c0_41 = arith.constant 0 : index
    %c0_42 = arith.constant 0 : index
    %55 = vector.load %arg7[%c0_40, %c0_41, %c0_42] : memref<9x128x128xbf16, #tpu.memory_space<vmem>>, vector<1x128x128xbf16>
    %56 = vector.shape_cast %55 : vector<1x128x128xbf16> to vector<128x128xbf16>
    %cst_43 = arith.constant dense<0.000000e+00> : vector<128x128xf32>
    %57 = tpu.matmul %54, %56, %cst_43 {dimension_numbers = #tpu.dot_dimension_numbers<[1], [0], [0], [1], [0, 0, 1, 1], [], []>} : vector<128x128xbf16>, vector<128x128xbf16>, vector<128x128xf32> -> vector<128x128xf32>
    %58 = arith.addf %52, %57 : vector<128x128xf32>
    %59 = vector.extract_strided_slice %51 {offsets = [0, 1, 0], sizes = [8, 16, 128], strides = [1, 1, 1]} : vector<10x18x128xbf16> to vector<8x16x128xbf16>
    %60 = vector.shape_cast %59 : vector<8x16x128xbf16> to vector<128x128xbf16>
    %c1_44 = arith.constant 1 : index
    %c0_45 = arith.constant 0 : index
    %c0_46 = arith.constant 0 : index
    %61 = vector.load %arg7[%c1_44, %c0_45, %c0_46] : memref<9x128x128xbf16, #tpu.memory_space<vmem>>, vector<1x128x128xbf16>
    %62 = vector.shape_cast %61 : vector<1x128x128xbf16> to vector<128x128xbf16>
    %cst_47 = arith.constant dense<0.000000e+00> : vector<128x128xf32>
    %63 = tpu.matmul %60, %62, %cst_47 {dimension_numbers = #tpu.dot_dimension_numbers<[1], [0], [0], [1], [0, 0, 1, 1], [], []>} : vector<128x128xbf16>, vector<128x128xbf16>, vector<128x128xf32> -> vector<128x128xf32>
    %64 = arith.addf %58, %63 : vector<128x128xf32>
    %65 = vector.extract_strided_slice %51 {offsets = [0, 2, 0], sizes = [8, 16, 128], strides = [1, 1, 1]} : vector<10x18x128xbf16> to vector<8x16x128xbf16>
    %66 = vector.shape_cast %65 : vector<8x16x128xbf16> to vector<128x128xbf16>
    %c2 = arith.constant 2 : index
    %c0_48 = arith.constant 0 : index
    %c0_49 = arith.constant 0 : index
    %67 = vector.load %arg7[%c2, %c0_48, %c0_49] : memref<9x128x128xbf16, #tpu.memory_space<vmem>>, vector<1x128x128xbf16>
    %68 = vector.shape_cast %67 : vector<1x128x128xbf16> to vector<128x128xbf16>
    %cst_50 = arith.constant dense<0.000000e+00> : vector<128x128xf32>
    %69 = tpu.matmul %66, %68, %cst_50 {dimension_numbers = #tpu.dot_dimension_numbers<[1], [0], [0], [1], [0, 0, 1, 1], [], []>} : vector<128x128xbf16>, vector<128x128xbf16>, vector<128x128xf32> -> vector<128x128xf32>
    %70 = arith.addf %64, %69 : vector<128x128xf32>
    %71 = vector.extract_strided_slice %51 {offsets = [1, 0, 0], sizes = [8, 16, 128], strides = [1, 1, 1]} : vector<10x18x128xbf16> to vector<8x16x128xbf16>
    %72 = vector.shape_cast %71 : vector<8x16x128xbf16> to vector<128x128xbf16>
    %c3 = arith.constant 3 : index
    %c0_51 = arith.constant 0 : index
    %c0_52 = arith.constant 0 : index
    %73 = vector.load %arg7[%c3, %c0_51, %c0_52] : memref<9x128x128xbf16, #tpu.memory_space<vmem>>, vector<1x128x128xbf16>
    %74 = vector.shape_cast %73 : vector<1x128x128xbf16> to vector<128x128xbf16>
    %cst_53 = arith.constant dense<0.000000e+00> : vector<128x128xf32>
    %75 = tpu.matmul %72, %74, %cst_53 {dimension_numbers = #tpu.dot_dimension_numbers<[1], [0], [0], [1], [0, 0, 1, 1], [], []>} : vector<128x128xbf16>, vector<128x128xbf16>, vector<128x128xf32> -> vector<128x128xf32>
    %76 = arith.addf %70, %75 : vector<128x128xf32>
    %77 = vector.extract_strided_slice %51 {offsets = [1, 1, 0], sizes = [8, 16, 128], strides = [1, 1, 1]} : vector<10x18x128xbf16> to vector<8x16x128xbf16>
    %78 = vector.shape_cast %77 : vector<8x16x128xbf16> to vector<128x128xbf16>
    %c4 = arith.constant 4 : index
    %c0_54 = arith.constant 0 : index
    %c0_55 = arith.constant 0 : index
    %79 = vector.load %arg7[%c4, %c0_54, %c0_55] : memref<9x128x128xbf16, #tpu.memory_space<vmem>>, vector<1x128x128xbf16>
    %80 = vector.shape_cast %79 : vector<1x128x128xbf16> to vector<128x128xbf16>
    %cst_56 = arith.constant dense<0.000000e+00> : vector<128x128xf32>
    %81 = tpu.matmul %78, %80, %cst_56 {dimension_numbers = #tpu.dot_dimension_numbers<[1], [0], [0], [1], [0, 0, 1, 1], [], []>} : vector<128x128xbf16>, vector<128x128xbf16>, vector<128x128xf32> -> vector<128x128xf32>
    %82 = arith.addf %76, %81 : vector<128x128xf32>
    %83 = vector.extract_strided_slice %51 {offsets = [1, 2, 0], sizes = [8, 16, 128], strides = [1, 1, 1]} : vector<10x18x128xbf16> to vector<8x16x128xbf16>
    %84 = vector.shape_cast %83 : vector<8x16x128xbf16> to vector<128x128xbf16>
    %c5 = arith.constant 5 : index
    %c0_57 = arith.constant 0 : index
    %c0_58 = arith.constant 0 : index
    %85 = vector.load %arg7[%c5, %c0_57, %c0_58] : memref<9x128x128xbf16, #tpu.memory_space<vmem>>, vector<1x128x128xbf16>
    %86 = vector.shape_cast %85 : vector<1x128x128xbf16> to vector<128x128xbf16>
    %cst_59 = arith.constant dense<0.000000e+00> : vector<128x128xf32>
    %87 = tpu.matmul %84, %86, %cst_59 {dimension_numbers = #tpu.dot_dimension_numbers<[1], [0], [0], [1], [0, 0, 1, 1], [], []>} : vector<128x128xbf16>, vector<128x128xbf16>, vector<128x128xf32> -> vector<128x128xf32>
    %88 = arith.addf %82, %87 : vector<128x128xf32>
    %89 = vector.extract_strided_slice %51 {offsets = [2, 0, 0], sizes = [8, 16, 128], strides = [1, 1, 1]} : vector<10x18x128xbf16> to vector<8x16x128xbf16>
    %90 = vector.shape_cast %89 : vector<8x16x128xbf16> to vector<128x128xbf16>
    %c6 = arith.constant 6 : index
    %c0_60 = arith.constant 0 : index
    %c0_61 = arith.constant 0 : index
    %91 = vector.load %arg7[%c6, %c0_60, %c0_61] : memref<9x128x128xbf16, #tpu.memory_space<vmem>>, vector<1x128x128xbf16>
    %92 = vector.shape_cast %91 : vector<1x128x128xbf16> to vector<128x128xbf16>
    %cst_62 = arith.constant dense<0.000000e+00> : vector<128x128xf32>
    %93 = tpu.matmul %90, %92, %cst_62 {dimension_numbers = #tpu.dot_dimension_numbers<[1], [0], [0], [1], [0, 0, 1, 1], [], []>} : vector<128x128xbf16>, vector<128x128xbf16>, vector<128x128xf32> -> vector<128x128xf32>
    %94 = arith.addf %88, %93 : vector<128x128xf32>
    %95 = vector.extract_strided_slice %51 {offsets = [2, 1, 0], sizes = [8, 16, 128], strides = [1, 1, 1]} : vector<10x18x128xbf16> to vector<8x16x128xbf16>
    %96 = vector.shape_cast %95 : vector<8x16x128xbf16> to vector<128x128xbf16>
    %c7 = arith.constant 7 : index
    %c0_63 = arith.constant 0 : index
    %c0_64 = arith.constant 0 : index
    %97 = vector.load %arg7[%c7, %c0_63, %c0_64] : memref<9x128x128xbf16, #tpu.memory_space<vmem>>, vector<1x128x128xbf16>
    %98 = vector.shape_cast %97 : vector<1x128x128xbf16> to vector<128x128xbf16>
    %cst_65 = arith.constant dense<0.000000e+00> : vector<128x128xf32>
    %99 = tpu.matmul %96, %98, %cst_65 {dimension_numbers = #tpu.dot_dimension_numbers<[1], [0], [0], [1], [0, 0, 1, 1], [], []>} : vector<128x128xbf16>, vector<128x128xbf16>, vector<128x128xf32> -> vector<128x128xf32>
    %100 = arith.addf %94, %99 : vector<128x128xf32>
    %101 = vector.extract_strided_slice %51 {offsets = [2, 2, 0], sizes = [8, 16, 128], strides = [1, 1, 1]} : vector<10x18x128xbf16> to vector<8x16x128xbf16>
    %102 = vector.shape_cast %101 : vector<8x16x128xbf16> to vector<128x128xbf16>
    %c8 = arith.constant 8 : index
    %c0_66 = arith.constant 0 : index
    %c0_67 = arith.constant 0 : index
    %103 = vector.load %arg7[%c8, %c0_66, %c0_67] : memref<9x128x128xbf16, #tpu.memory_space<vmem>>, vector<1x128x128xbf16>
    %104 = vector.shape_cast %103 : vector<1x128x128xbf16> to vector<128x128xbf16>
    %cst_68 = arith.constant dense<0.000000e+00> : vector<128x128xf32>
    %105 = tpu.matmul %102, %104, %cst_68 {dimension_numbers = #tpu.dot_dimension_numbers<[1], [0], [0], [1], [0, 0, 1, 1], [], []>} : vector<128x128xbf16>, vector<128x128xbf16>, vector<128x128xf32> -> vector<128x128xf32>
    %106 = arith.addf %100, %105 : vector<128x128xf32>
    %c0_69 = arith.constant 0 : index
    %c0_70 = arith.constant 0 : index
    %107 = vector.load %arg8[%c0_69, %c0_70] : memref<1x128xf32, #tpu.memory_space<vmem>>, vector<1x128xf32>
    %108 = vector.broadcast %107 : vector<1x128xf32> to vector<128x128xf32>
    %109 = arith.addf %106, %108 : vector<128x128xf32>
    %cst_71 = arith.constant 0.000000e+00 : f32
    %110 = vector.broadcast %cst_71 : f32 to vector<128x128xf32>
    %111 = arith.cmpf ogt, %109, %110 : vector<128x128xf32>
    %cst_72 = arith.constant 1.000000e-01 : f32
    %112 = vector.broadcast %cst_72 : f32 to vector<128x128xf32>
    %113 = arith.mulf %112, %109 : vector<128x128xf32>
    %114 = arith.select %111, %109, %113 : vector<128x128xi1>, vector<128x128xf32>
    %115 = vector.extract_strided_slice %15 {offsets = [1, 1, 0], sizes = [8, 16, 128], strides = [1, 1, 1]} : vector<10x18x128xbf16> to vector<8x16x128xbf16>
    %116 = vector.shape_cast %115 : vector<8x16x128xbf16> to vector<128x128xbf16>
    %117 = arith.extf %116 : vector<128x128xbf16> to vector<128x128xf32>
    %118 = arith.addf %117, %114 : vector<128x128xf32>
    %119 = arith.truncf %118 : vector<128x128xf32> to vector<128x128xbf16>
    %120 = vector.shape_cast %119 : vector<128x128xbf16> to vector<8x16x128xbf16>
    %cst_73 = arith.constant 0.000000e+00 : bf16
    %121 = vector.broadcast %cst_73 : bf16 to vector<8x1x128xbf16>
    %c0_74 = arith.constant 0 : index
    %c0_75 = arith.constant 0 : index
    %c0_76 = arith.constant 0 : index
    %c0_77 = arith.constant 0 : index
    %c0_78 = arith.constant 0 : index
    %122 = vector.load %arg9[%c0_74, %c0_75, %c0_76, %c0_77, %c0_78] : memref<1x1x8x18x128xbf16, #tpu.memory_space<vmem>>, vector<1x1x8x1x128xbf16>
    %123 = vector.shape_cast %122 : vector<1x1x8x1x128xbf16> to vector<8x1x128xbf16>
    %124 = vector.shape_cast %121 : vector<8x1x128xbf16> to vector<1x1x8x1x128xbf16>
    tpu.vector_store %arg9[%c0_74, %c0_75, %c0_76, %c0_77, %c0_78], %124 {strides = array<i32>} : memref<1x1x8x18x128xbf16, #tpu.memory_space<vmem>>, vector<1x1x8x1x128xbf16>,
    %c0_79 = arith.constant 0 : index
    %c0_80 = arith.constant 0 : index
    %c0_81 = arith.constant 0 : index
    %c17 = arith.constant 17 : index
    %c0_82 = arith.constant 0 : index
    %125 = vector.load %arg9[%c0_79, %c0_80, %c0_81, %c17, %c0_82] : memref<1x1x8x18x128xbf16, #tpu.memory_space<vmem>>, vector<1x1x8x1x128xbf16>
    %126 = vector.shape_cast %125 : vector<1x1x8x1x128xbf16> to vector<8x1x128xbf16>
    %127 = vector.shape_cast %121 : vector<8x1x128xbf16> to vector<1x1x8x1x128xbf16>
    tpu.vector_store %arg9[%c0_79, %c0_80, %c0_81, %c17, %c0_82], %127 {strides = array<i32>} : memref<1x1x8x18x128xbf16, #tpu.memory_space<vmem>>, vector<1x1x8x1x128xbf16>,
    %c0_83 = arith.constant 0 : index
    %c0_84 = arith.constant 0 : index
    %c0_85 = arith.constant 0 : index
    %c1_86 = arith.constant 1 : index
    %c0_87 = arith.constant 0 : index
    %128 = vector.load %arg9[%c0_83, %c0_84, %c0_85, %c1_86, %c0_87] : memref<1x1x8x18x128xbf16, #tpu.memory_space<vmem>>, vector<1x1x8x16x128xbf16>
    %129 = vector.shape_cast %128 : vector<1x1x8x16x128xbf16> to vector<8x16x128xbf16>
    %130 = vector.shape_cast %120 : vector<8x16x128xbf16> to vector<1x1x8x16x128xbf16>
    tpu.vector_store %arg9[%c0_83, %c0_84, %c0_85, %c1_86, %c0_87], %130 {strides = array<i32>} : memref<1x1x8x18x128xbf16, #tpu.memory_space<vmem>>, vector<1x1x8x16x128xbf16>,
    return
  }
  func.func @transform_0(%arg0: i32, %arg1: i32) -> (i32, i32, i32, i32, i32) {
    %c0_i32 = arith.constant 0 : i32
    %c0_i32_0 = arith.constant 0 : i32
    %c0_i32_1 = arith.constant 0 : i32
    %c0_i32_2 = arith.constant 0 : i32
    return %arg0, %arg1, %c0_i32, %c0_i32_0, %c0_i32_1 : i32, i32, i32, i32, i32
  }
  func.func @transform_1(%arg0: i32, %arg1: i32) -> (i32, i32, i32, i32, i32) {
    %c1_i32 = arith.constant 1 : i32
    %0 = arith.subi %arg1, %c1_i32 : i32
    %c0_i32 = arith.constant 0 : i32
    %1 = arith.maxsi %0, %c0_i32 : i32
    %c7_i32 = arith.constant 7 : i32
    %c0_i32_0 = arith.constant 0 : i32
    %c0_i32_1 = arith.constant 0 : i32
    %c0_i32_2 = arith.constant 0 : i32
    return %arg0, %1, %c7_i32, %c0_i32_0, %c0_i32_1 : i32, i32, i32, i32, i32
  }
  func.func @transform_2(%arg0: i32, %arg1: i32) -> (i32, i32, i32, i32, i32) {
    %c1_i32 = arith.constant 1 : i32
    %0 = arith.addi %arg1, %c1_i32 : i32
    %c1_i32_0 = arith.constant 1 : i32
    %1 = arith.minsi %0, %c1_i32_0 : i32
    %c0_i32 = arith.constant 0 : i32
    %c0_i32_1 = arith.constant 0 : i32
    %c0_i32_2 = arith.constant 0 : i32
    %c0_i32_3 = arith.constant 0 : i32
    return %arg0, %1, %c0_i32, %c0_i32_1, %c0_i32_2 : i32, i32, i32, i32, i32
  }
  func.func @transform_3(%arg0: i32, %arg1: i32) -> (i32, i32) {
    %c0_i32 = arith.constant 0 : i32
    %c0_i32_0 = arith.constant 0 : i32
    %c0_i32_1 = arith.constant 0 : i32
    return %c0_i32, %c0_i32_0 : i32, i32
  }
  func.func @transform_4(%arg0: i32, %arg1: i32) -> (i32, i32) {
    %c0_i32 = arith.constant 0 : i32
    %c0_i32_0 = arith.constant 0 : i32
    %c0_i32_1 = arith.constant 0 : i32
    return %c0_i32, %c0_i32_0 : i32, i32
  }
  func.func @transform_5(%arg0: i32, %arg1: i32) -> (i32, i32, i32) {
    %c0_i32 = arith.constant 0 : i32
    %c0_i32_0 = arith.constant 0 : i32
    %c0_i32_1 = arith.constant 0 : i32
    %c0_i32_2 = arith.constant 0 : i32
    return %c0_i32, %c0_i32_0, %c0_i32_1 : i32, i32, i32
  }
  func.func @transform_6(%arg0: i32, %arg1: i32) -> (i32, i32) {
    %c0_i32 = arith.constant 0 : i32
    %c0_i32_0 = arith.constant 0 : i32
    %c0_i32_1 = arith.constant 0 : i32
    return %c0_i32, %c0_i32_0 : i32, i32
  }
  func.func @transform_7(%arg0: i32, %arg1: i32) -> (i32, i32, i32, i32, i32) {
    %c0_i32 = arith.constant 0 : i32
    %c0_i32_0 = arith.constant 0 : i32
    %c0_i32_1 = arith.constant 0 : i32
    %c0_i32_2 = arith.constant 0 : i32
    return %arg0, %arg1, %c0_i32, %c0_i32_0, %c0_i32_1 : i32, i32, i32, i32, i32
  }
}

</mosaic_0001>

<bundles_post_ra>
// kernel: _lambda_.3
= control target key start
LH: loop header
LB: loop body
LE: loop exit
PB: predicated region body
PF: predicated region fallthrough
CT: control target
= control target key end

     0   :  { %s3991_s18 = smov 0   ;;  %s3993_s19 = smov 0   ;;  %s5074_s0 = inlined_call_operand.vmem [shape: bf16[2,2,8,18,128], index: 0, kind: input, shape index: {}, may-alias: {0,1,2}]   ;;  %s5075_s1 = inlined_call_operand.vmem [shape: bf16[2,2,8,18,128], index: 1, kind: input, shape index: {}, may-alias: {0,1,2}]   ;;  %s5076_s2 = inlined_call_operand.vmem [shape: bf16[2,2,8,18,128], index: 2, kind: input, shape index: {}, may-alias: {0,1,2}]   ;;  %s5077_s3 = inlined_call_operand.vmem [shape: bf16[9,128,128], index: 3, kind: input, shape index: {}]   ;;  %s5078_s4 = inlined_call_operand.vmem [shape: f32[1,128], index: 4, kind: input, shape index: {}]   ;;  %s5079_s5 = inlined_call_operand.vmem [shape: bf16[2,2,8,18,128], index: 5, kind: output, shape index: {}]  }
   0x1   :  { %s3995_s20 = smov 0   ;;  %s3997_s21 = smov 0  }
   0x2   :  { %s3999_s22 = smov 0  }
   0x3 LB: > { %s24_s23 = sadd.s32 1, %s3951_s20  ;;  %s27_s24 = sadd.s32 1, %s3955_s21  ;;  %s3959_s22 = sphi %s3999_s22, %s15_s22   ;;  %s3955_s21 = sphi %s3997_s21, %s5098_s21   ;;  %s3951_s20 = sphi %s3995_s20, %s5097_s20   ;;  %s3947_s19 = sphi %s3993_s19, %s5096_s19   ;;  %s3943_s18 = sphi %s3991_s18, %s5095_s18  }
   0x4   : > { %p25_p0 = scmp.ge.s32.totalorder %s24_s23, 2  ;;  %p3054_p1 = scmp.ge.s32.totalorder %s3959_s22, 1 }
   0x5   : > { %p264_p2 = scmp.lt.s32.totalorder %s3959_s22, 5 }
   0x6   : > { %s5100_s23 = smov (%p25_p0, %s24_s23), 0  ;;  %s5102_s24 = smov (!%p25_p0, %s27_s24), %s3955_s21 }
   0x7   : > { %p265_p3 = pnand %p3054_p1, %p264_p2  ;;  %p29_p4 = scmp.ge.s32.totalorder %s5102_s24, 2 }
   0x8   : > { %p325_p5 = scmp.lt.s32.totalorder (!%p265_p3), %s3947_s19, 1  ;;  %p327_p6 = scmp.lt.s32.totalorder (!%p265_p3), %s3943_s18, 1 }
   0x9   : > { %s5104_s24 = smov (%p29_p4, %s5102_s24), 0  ;;  %268 = sbr.rel (%p265_p3) target bundleno = 428 (0x1ac), region = 40 }
   0xa   : > { %s3056_s15 = sadd.s32 (!%p265_p3), 4294967295, %s3943_s18  ;;  %p424_p9 = scmp.gt.s32.totalorder (!%p265_p3), %s3943_s18, 0 }
   0xb   : > { %p335_p7 = scmp.gt.s32.totalorder (!%p265_p3), %s3056_s15, 0  ;;  %p3057_p8 = scmp.lt.s32.totalorder (!%p265_p3), %s3056_s15, 1 }
   0xc   : > { %s350_s17 = sadd.s32 (!%p265_p3), 1, %s3943_s18 }
   0xd   : > { %p4465_p10 = scmp.lt.s32.totalorder (!%p265_p3), %s350_s17, 1 }
   0xe   : > { %v3839_v0 = vld [vmem:[%s5077_s3 + $0x78] sm:$0xff]   ;;  %v3841_v2 = vld [vmem:[%s5077_s3 + $0x70] sm:$0xff]   ;;  %s5106_s19 = smov (!%p325_p5, %s3947_s19), 1  ;;  %v3843_v4 = vld [vmem:[%s5077_s3 + $0x68] sm:$0xff]   ;;  %s5108_s15 = smov (!%p335_p7, %s3056_s15), 0  ;;  %vm1087_vm4 = vcmask 1042432  }
   0xf   : > { %v3840_v1 = vld [vmem:[%s5077_s3 + $0x38] sm:$0xff]   ;;  %3492 = vmatprep.subr.bf16.mxu0 %v3839_v0  ;;  %v3842_v3 = vld [vmem:[%s5077_s3 + $0x30] sm:$0xff]   ;;  %s328_s8 = scalar_select %p327_p6, %s3943_s18, 1  ;;  %v3844_v5 = vld [vmem:[%s5077_s3 + $0x28] sm:$0xff]   ;;  %vm497_vm0 = vsmask.f32 3328 }
  0x10   : > { %3524 = vmatprep.subr.bf16.mxu1 %v3840_v1  ;;  %3493 = vmatpush3.bf16.msra.mxu0 %v3839_v0  ;;  %s4042_s11 = smul.u32 48, %s5106_s19  ;;  %v3845_v6 = vld [vmem:[%s5077_s3 + $0x60] sm:$0xff]   ;;  %v3847_v8 = vld [vmem:[%s5077_s3 + $0x58] sm:$0xff]   ;;  %s5110_s15 = smov (!%p3057_p8, %s5108_s15), 1  ;;  %v3849_v10 = vld [vmem:[%s5077_s3 + $0x50] sm:$0xff]   ;;  %vm1088_vm5 = vcmask 1046532  }
  0x11   : > { %3525 = vmatpush3.bf16.msra.mxu1 %v3840_v1  ;;  %3494 = vmatprep.subr.bf16.mxu0 %v3841_v2  ;;  %s3796_s14 = smul.u32 24, %s328_s8  ;;  %v3846_v7 = vld [vmem:[%s5077_s3 + $0x20] sm:$0xff]   ;;  %v3848_v9 = vld [vmem:[%s5077_s3 + $0x18] sm:$0xff]   ;;  %v3850_v12 = vld [vmem:[%s5077_s3 + $0x10] sm:$0xff]   ;;  %vm498_vm1 = vsmask.f32 7440 }
  0x12   : > { %3526 = vmatprep.subr.bf16.mxu1 %v3842_v3  ;;  %s2979_s10 = smul.u32 24, %s5110_s15  ;;  %v3851_v14 = vld [vmem:[%s5077_s3 + $0x48] sm:$0xff]   ;;  %v3853_v19 = vld [vmem:[%s5077_s3 + $0x40] sm:$0xff]   ;;  %v4128_v42 = vld [vmem:[%s5077_s3 + $0xb8] sm:$0xff]   ;;  %s5112_s17 = smov (!%p4465_p10, %s350_s17), 1  ;;  %vm2595_vm8 = vcmask 1040384  }
  0x13   : > { %s4052_s25 = sadd.s32 %s4042_s11, %s3796_s14  ;;  %v3852_v15 = vld [vmem:[%s5077_s3 + $0x8] sm:$0xff]   ;;  %v3854_v26 = vld [vmem:[%s5077_s3] sm:$0xff]   ;;  %v3858_v44 = vld [vmem:[%s5077_s3 + $0xf8] sm:$0xff]   ;;  %s5114_s17 = smov (!%p4465_p10, %s5112_s17), 1  ;;  %vm2596_vm9 = vsmask.f32 256 }
  0x14   : > { %3495 = vmatpush3.bf16.msra.mxu0 %v3841_v2  ;;  %s3055_s27 = sshll.u32 %s4052_s25, 2  ;;  %s2981_s14 = sadd.s32 %s4042_s11, %s2979_s10  ;;  %vm4139_vm3 = vmor %vm497_vm0, %vm498_vm1  ;;  %vm2622_vm11 = vsmask.f32 7938  ;;  %vm2850_vm13 = vcmask 1043456  }
  0x15   : > { %3527 = vmatpush3.bf16.msra.mxu1 %v3842_v3  ;;  %3496 = vmatprep.subr.bf16.mxu0 %v3843_v4  ;;  %s4069_s9 = scalar_lea.vmem %s5074_s0, %s3055_s27  ;;  %s3062_s19 = sshll.u32 %s2981_s14, 2  ;;  %vm4349_vm6 = vmor %vm1087_vm4, %vm1088_vm5  ;;  %vm2688_vm5 = vsmask.f32 4368 }
  0x16   : > { %3528 = vmatprep.subr.bf16.mxu1 %v3844_v5  ;;  %v375_v11 = vld [vmem:[%s4069_s9] sm:$0xff]   ;;  %v377_v13 = vld [vmem:[%s4069_s9 + $0x8] sm:$0x1]  ;;  %s2983_s30 = scalar_lea.vmem %s5075_s1, %s3062_s19  ;;  %v378_v21 = vld [vmem:[%s4069_s9 + $0xc] sm:$0xff]   ;;  %s3798_s26 = smul.u32 24, %s5114_s17 }
  0x17   : > { %400 = vst [vmem:[#allocation2 + $0xc] sm:$0xff] %v375_v11   ;;  %402 = vst [vmem:[#allocation2 + $0x14] sm:$0x1] %v377_v13  ;;  %v3068_v16 = vld [vmem:[%s2983_s30 + $0x54] sm:$0xf]  ;;  %v381_v24 = vld [vmem:[%s4069_s9 + $0x18] sm:$0xff]   ;;  %s4688_s7 = scalar_lea.vmem %s5079_s5, %s3055_s27 }
  0x18   : > { %3497 = vmatpush3.bf16.msra.mxu0 %v3843_v4  ;;  %v3069_v17 = vld [vmem:[%s2983_s30 + $0x58] sm:$0xf]  ;;  %v3070_v18 = vld [vmem:[%s2983_s30 + $0x5c] sm:$0x1]  ;;  %s428_s8 = scalar_select %p424_p9, 1, 0  ;;  %vm4696_vm10 = vmand %vm2595_vm8, %vm2596_vm9 }
  0x19   : > { %3529 = vmatpush3.bf16.msra.mxu1 %v3844_v5  ;;  %3498 = vmatprep.subr.bf16.mxu0 %v3845_v6  ;;  %v380_v22 = vld [vmem:[%s4069_s9 + $0x14] sm:$0x1]  ;;  %403 = vst [vmem:[#allocation2 + $0x18] sm:$0xff] %v378_v21   ;;  %v383_v25 = vld [vmem:[%s4069_s9 + $0x20] sm:$0x1]  ;;  %406 = vst [vmem:[#allocation2 + $0x24] sm:$0xff] %v381_v24   ;;  %s359_s30 = sadd.s32 %s3798_s26, %s4042_s11 }
  0x1a   : > { %3530 = vmatprep.subr.bf16.mxu1 %v3846_v7  ;;  %v429_v20 = vstv %s428_s8  ;;  %405 = vst [vmem:[#allocation2 + $0x20] sm:$0x1] %v380_v22  ;;  %408 = vst [vmem:[#allocation2 + $0x2c] sm:$0x1] %v383_v25  ;;  %v387_v21 = vld [vmem:[%s4069_s9 + $0x30] sm:$0xff]   ;;  %s3066_s10 = sshll.u32 %s359_s30, 2 }
  0x1b   : > { %vm4097_vm2 = vcmp.eq.s32.totalorder %v429_v20, 1  ;;  %v389_v22 = vld [vmem:[%s4069_s9 + $0x38] sm:$0x1]  ;;  %412 = vst [vmem:[#allocation2 + $0x3c] sm:$0xff] %v387_v21   ;;  %s361_s14 = scalar_lea.vmem %s5076_s2, %s3066_s10  ;;  %vm4720_vm12 = vmand %vm2595_vm8, %vm2622_vm11 }
  0x1c   : > { %3499 = vmatpush3.bf16.msra.mxu0 %v3845_v6  ;;  %v431_v27 = vsel %vm4097_vm2, %v3068_v16, 0  ;;  %v432_v28 = vsel %vm4097_vm2, %v3069_v17, 0  ;;  %v433_v29 = vsel %vm4097_vm2, %v3070_v18, 0  ;;  %v386_v16 = vld [vmem:[%s4069_s9 + $0x2c] sm:$0x1]  ;;  %vm4947_vm8 = vmor %vm2596_vm9, %vm2688_vm5 }
  0x1d   : > { %3531 = vmatpush3.bf16.msra.mxu1 %v3846_v7  ;;  %3500 = vmatprep.subr.bf16.mxu0 %v3847_v8  ;;  %434 = vst [vmem:[#allocation2] sm:$0xf] %v431_v27  ;;  %435 = vst [vmem:[#allocation2 + $0x4] sm:$0xf] %v432_v28  ;;  %s441_s16 = scalar_select %p327_p6, 1, 0 }
  0x1e   : > { %3532 = vmatprep.subr.bf16.mxu1 %v3848_v9  ;;  %v4112_v30 = vld [vmem:[#allocation2 + $0xc] sm:$0xf]  ;;  %436 = vst [vmem:[#allocation2 + $0x8] sm:$0x1] %v433_v29  ;;  %v4114_v31 = vld [vmem:[#allocation2 + $0x10] sm:$0xf] }
  0x1f   : > { %v4116_v32 = vld [vmem:[#allocation2 + $0x14] sm:$0x1]  ;;  %v525_v33 = vshrl.u32 %v4112_v30, 16  ;;  %v528_v34 = vshll.u32 %v4112_v30, 16  ;;  %v534_v35 = vshll.u32 %v4114_v31, 16  ;;  %v538_v36 = vshrl.u32 %v4114_v31, 16 }
  0x20   : > { %3501 = vmatpush3.bf16.msra.mxu0 %v3847_v8  ;;  %v544_v37 = vshll.u32 %v4116_v32, 16  ;;  %v4133_v46 = vld [vmem:[#allocation2 + $0x18] sm:$0xf]  ;;  %v4135_v47 = vld [vmem:[#allocation2 + $0x1c] sm:$0xf]  ;;  %v4155_v57 = vcombine.low %v4112_v30, %v4114_v31 }
  0x21   : > { %3533 = vmatpush3.bf16.msra.mxu1 %v3848_v9  ;;  %3502 = vmatprep.subr.bf16.mxu0 %v3849_v10  ;;  %v527_v38 = vrot.slane %v525_v33, 4  ;;  %v530_v39 = vrot.slane %v528_v34, 5  ;;  %v4123_v40 = vrot.slane %v534_v35, 5  ;;  %v540_v41 = vrot.slane %v538_v36, 4  ;;  %v4166_v63 = vld [vmem:[#allocation2 + $0x20] sm:$0x1] }
  0x22   : > { %3534 = vmatprep.subr.bf16.mxu1 %v3850_v12  ;;  %v546_v45 = vrot.slane %v544_v37, 5  ;;  %v549_v50 = vshrl.u32 %v4133_v46, 16  ;;  %v552_v51 = vshll.u32 %v4133_v46, 16  ;;  %v558_v52 = vshll.u32 %v4135_v47, 16  ;;  %v4175_v4 = vld [vmem:[#allocation2 + $0x24] sm:$0xf] }
  0x23   : > { %v531_v43 = vor.u32 %v530_v39, %v527_v38  ;;  %v541_v56 = vor.u32 %v540_v41, %v4123_v40  ;;  %v4160_v58 = vcombine.low %v4133_v46, %v4135_v47  ;;  %v3860_v9 = vld [vmem:[%s5077_s3 + $0xf0] sm:$0xff]   ;;  %v562_v20 = vshrl.u32 %v4135_v47, 16  ;;  %411 = vst [vmem:[#allocation2 + $0x38] sm:$0x1] %v386_v16  ;;  %414 = vst [vmem:[#allocation2 + $0x44] sm:$0x1] %v389_v22 }
  0x24   : > { %3503 = vmatpush3.bf16.msra.mxu0 %v3849_v10  ;;  %v4146_v53 = vld [vmem:[#allocation2] sm:$0xf]  ;;  %v4148_v54 = vld [vmem:[#allocation2 + $0x4] sm:$0xf]  ;;  %v551_v13 = vrot.slane %v549_v50, 4  ;;  %v568_v25 = vshll.u32 %v4166_v63, 16 }
  0x25   : > { %3535 = vmatpush3.bf16.msra.mxu1 %v3850_v12  ;;  %3504 = vmatprep.subr.bf16.mxu0 %v3851_v14  ;;  %v532_v49 = vrot.slane %v531_v43, 4  ;;  %v4150_v55 = vld [vmem:[#allocation2 + $0x8] sm:$0x1]  ;;  %v501_v59 = vshrl.u32 %v4146_v53, 16  ;;  %v504_v60 = vshll.u32 %v4146_v53, 16  ;;  %v510_v61 = vshll.u32 %v4148_v54, 16 }
  0x26   : > { %3536 = vmatprep.subr.bf16.mxu1 %v3852_v15  ;;  %v514_v62 = vshrl.u32 %v4148_v54, 16  ;;  %v520_v0 = vshll.u32 %v4150_v55, 16  ;;  %v1095_v1 = vrot.slane %v4150_v55, 5  ;;  %v3103_v2 = vcombine.low %v4146_v53, %v4148_v54  ;;  %v384_v10 = vld [vmem:[%s4069_s9 + $0x24] sm:$0xff]   ;;  %v3859_v43 = vld [vmem:[%s5077_s3 + $0xb0] sm:$0xff]  }
  0x27   : > { %v537_v3 = vsel %vm4139_vm3, %v532_v49, %v4123_v40  ;;  %v503_v5 = vrot.slane %v501_v59, 4  ;;  %v506_v6 = vrot.slane %v504_v60, 5  ;;  %v512_v7 = vrot.slane %v510_v61, 5  ;;  %409 = vst [vmem:[#allocation2 + $0x30] sm:$0xff] %v384_v10   ;;  %v3864_v35 = vld [vmem:[%s5077_s3 + $0xe8] sm:$0xff]  }
  0x28   : > { %3505 = vmatpush3.bf16.msra.mxu0 %v3851_v14  ;;  %v516_v8 = vrot.slane %v514_v62, 4  ;;  %v522_v11 = vrot.slane %v520_v0, 5  ;;  %3540 = vmatprep.mubr.bf16.mxu1 %v3103_v2  ;;  %v542_v12 = vrot.slane %v541_v56, 4  ;;  %v554_v14 = vrot.slane %v552_v51, 5  ;;  %v3866_v62 = vld [vmem:[%s5077_s3 + $0xe0] sm:$0xff]  }
  0x29   : > { %3537 = vmatpush3.bf16.msra.mxu1 %v3852_v15  ;;  %3506 = vmatprep.subr.bf16.mxu0 %v3853_v19  ;;  %v4181_v15 = vld [vmem:[#allocation2 + $0x28] sm:$0xf]  ;;  %v507_v17 = vor.u32 %v506_v6, %v503_v5  ;;  %v573_v27 = vshrl.u32 %v4175_v4, 16  ;;  %v564_v34 = vrot.slane %v562_v20, 4  ;;  %v570_v37 = vrot.slane %v568_v25, 5 }
  0x2a   : > { %3538 = vmatprep.subr.bf16.mxu1 %v3854_v26  ;;  %v517_v18 = vor.u32 %v516_v8, %v512_v7  ;;  %v547_v23 = vsel %vm4139_vm3, %v542_v12, %v546_v45  ;;  %v555_v24 = vor.u32 %v554_v14, %v551_v13  ;;  %v576_v39 = vshll.u32 %v4175_v4, 16  ;;  %v4224_v6 = vld [vmem:[#allocation2 + $0x38] sm:$0x1]  ;;  %v4233_v12 = vld [vmem:[#allocation2 + $0x3c] sm:$0xf] }
  0x2b   : > { %v508_v28 = vrot.slane %v507_v17, 4  ;;  %v4195_v33 = vcombine.low %v537_v3, %v547_v23  ;;  %v575_v38 = vrot.slane %v573_v27, 4  ;;  %v582_v45 = vshll.u32 %v4181_v15, 16  ;;  %v390_v13 = vld [vmem:[%s4069_s9 + $0x3c] sm:$0xff]   ;;  %v392_v25 = vld [vmem:[%s4069_s9 + $0x44] sm:$0x1] }
  0x2c   : > { %3507 = vmatpush3.bf16.msra.mxu0 %v3853_v19  ;;  %v560_v19 = vrot.slane %v558_v52, 5  ;;  %v518_v29 = vrot.slane %v517_v18, 4  ;;  %v556_v36 = vrot.slane %v555_v24, 4  ;;  %v578_v51 = vrot.slane %v576_v39, 5  ;;  %v3863_v18 = vld [vmem:[%s5077_s3 + $0xa8] sm:$0xff]   ;;  %415 = vst [vmem:[#allocation2 + $0x48] sm:$0xff] %v390_v13  }
  0x2d   : > { %3539 = vmatpush3.bf16.msra.mxu1 %v3854_v26  ;;  %3556 = vmatprep.subr.bf16.mxu0 %v4128_v42  ;;  %v4192_v26 = vld [vmem:[#allocation2 + $0x2c] sm:$0x1]  ;;  %v513_v40 = vsel %vm4139_vm3, %v508_v28, %v512_v7  ;;  %v586_v52 = vshrl.u32 %v4181_v15, 16  ;;  %v584_v59 = vrot.slane %v582_v45, 5  ;;  %v4215_v61 = vcombine.low %v4175_v4, %v4181_v15  ;;  %v4242_v20 = vld [vmem:[#allocation2 + $0x40] sm:$0xf] }
  0x2e   : > { %3588 = vmatprep.subr.bf16.mxu1 %v3858_v44  ;;  %v523_v41 = vsel %vm4139_vm3, %v518_v29, %v522_v11  ;;  %v561_v50 = vsel %vm4139_vm3, %v556_v36, %v560_v19  ;;  %v592_v60 = vshll.u32 %v4192_v26, 16  ;;  %v4220_v0 = vld [vmem:[#allocation2 + $0x30] sm:$0xf]  ;;  %v579_v2 = vor.u32 %v578_v51, %v575_v38  ;;  %v4222_v5 = vld [vmem:[#allocation2 + $0x34] sm:$0xf]  ;;  %v393_v36 = vld [vmem:[%s4069_s9 + $0x48] sm:$0xff]  }
  0x2f   : > { %v3087_v49 = vcombine.low %v513_v40, %v523_v41  ;;  %v588_v3 = vrot.slane %v586_v52, 4  ;;  %v597_v7 = vshrl.u32 %v4220_v0, 16  ;;  %v600_v10 = vshll.u32 %v4220_v0, 16  ;;  %v4248_v24 = vld [vmem:[#allocation2 + $0x44] sm:$0x1]  ;;  %418 = vst [vmem:[#allocation2 + $0x54] sm:$0xff] %v393_v36  }
  0x30   : > { %3541 = vmatmul.mubr.bf16.vlgmr.msra.gmra.mxu1 %v4155_v57  ;;  %v606_v11 = vshll.u32 %v4222_v5, 16  ;;  %v580_v16 = vrot.slane %v579_v2, 4  ;;  %v610_v22 = vshrl.u32 %v4222_v5, 16  ;;  %v616_v23 = vshll.u32 %v4224_v6, 16  ;;  %417 = vst [vmem:[#allocation2 + $0x50] sm:$0x1] %v392_v25 }
  0x31   : > { %3589 = vmatpush3.bf16.msra.mxu1 %v3858_v44  ;;  %3544 = vmatprep.mubr.bf16.mxu1 %v4160_v58  ;;  %v565_v44 = vor.u32 %v564_v34, %v560_v19  ;;  %v589_v17 = vor.u32 %v588_v3, %v584_v59  ;;  %v599_v19 = vrot.slane %v597_v7, 4  ;;  %v602_v21 = vrot.slane %v600_v10, 5  ;;  %v3865_v45 = vld [vmem:[%s5077_s3 + $0xa0] sm:$0xff]   ;;  %v3872_v7 = vld [vmem:[%s5077_s3 + $0xd0] sm:$0xff]   ;;  %v3869_v25 = vld [vmem:[%s5077_s3 + $0x98] sm:$0xff]  }
  0x32   : > { %3590 = vmatprep.subr.bf16.mxu1 %v3860_v9  ;;  %3508 = vmatprep.mubr.bf16.mxu0 %v3087_v49  ;;  %v585_v27 = vsel %vm4139_vm3, %v580_v16, %v584_v59  ;;  %v4256_v29 = vcombine.low %v4220_v0, %v4222_v5  ;;  %v621_v34 = vshrl.u32 %v4233_v12, 16  ;;  %v612_v39 = vrot.slane %v610_v22, 4 }
  0x33   : > { %v566_v56 = vrot.slane %v565_v44, 4  ;;  %3509 = vmatmul.mubr.bf16.vlgmr.msra.gmra.mxu0 %v4195_v33  ;;  %v590_v28 = vrot.slane %v589_v17, 4  ;;  %v603_v38 = vor.u32 %v602_v21, %v599_v19  ;;  %v618_v40 = vrot.slane %v616_v23, 5  ;;  %v4290_v13 = vld [vmem:[#allocation2 + $0x4c] sm:$0xf] }
  0x34   : > { %3557 = vmatpush3.bf16.msra.mxu0 %v4128_v42  ;;  %v4244_v42 = vrot.slane %v606_v11, 5  ;;  %v624_v41 = vshll.u32 %v4233_v12, 16  ;;  %v623_v49 = vrot.slane %v621_v34, 4  ;;  %v634_v51 = vshrl.u32 %v4242_v20, 16  ;;  %v4288_v11 = vld [vmem:[#allocation2 + $0x48] sm:$0xf] }
  0x35   : > { %3591 = vmatpush3.bf16.msra.mxu1 %v3860_v9  ;;  %v571_v8 = vsel %vm4139_vm3, %v566_v56, %v570_v37  ;;  %v594_v9 = vrot.slane %v592_v60, 5  ;;  %3558 = vmatprep.subr.bf16.mxu0 %v3859_v43  ;;  %v395_v37 = vld [vmem:[%s4069_s9 + $0x50] sm:$0x1]  ;;  %v604_v56 = vrot.slane %v603_v38, 4  ;;  %v4279_v3 = vcombine.low %v4233_v12, %v4242_v20 }
  0x36   : > { %3592 = vmatprep.subr.bf16.mxu1 %v3864_v35  ;;  %v4237_v14 = vcombine.low %v561_v50, %v571_v8  ;;  %420 = vst [vmem:[#allocation2 + $0x5c] sm:$0x1] %v395_v37  ;;  %v630_v50 = vshll.u32 %v4242_v20, 16  ;;  %v613_v59 = vor.u32 %v612_v39, %v4244_v42  ;;  %v636_v2 = vrot.slane %v634_v51, 4  ;;  %v4307_v39 = vld [vmem:[#allocation2 + $0x54] sm:$0xf] }
  0x37   : > { %v595_v44 = vsel %vm4139_vm3, %v590_v28, %v594_v9  ;;  %v609_v8 = vsel %vm4139_vm3, %v604_v56, %v4244_v42  ;;  %v3119_v16 = vrot.slane %v4146_v53, 9  ;;  %v645_v21 = vshrl.u32 %v4288_v11, 16  ;;  %v3871_v56 = vld [vmem:[%s5077_s3 + $0x90] sm:$0xff]  }
  0x38   : > { %3545 = vmatmul.mubr.bf16.gmra.mxu1 %v4215_v61  ;;  %3512 = vmatprep.mubr.bf16.mxu0 %v4237_v14  ;;  %v4272_v52 = vcombine.low %v585_v27, %v595_v44  ;;  %v632_v60 = vrot.slane %v630_v50, 5  ;;  %v614_v9 = vrot.slane %v613_v59, 4  ;;  %v648_v22 = vshll.u32 %v4288_v11, 16  ;;  %v4301_v27 = vld [vmem:[#allocation2 + $0x50] sm:$0x1] }
  0x39   : > { %3593 = vmatpush3.bf16.msra.mxu1 %v3864_v35  ;;  %v3870_v35 = vld [vmem:[%s5077_s3 + $0xd8] sm:$0xff]   ;;  %3559 = vmatpush3.bf16.msra.mxu0 %v3859_v43  ;;  %v626_v43 = vrot.slane %v624_v41, 5  ;;  %v658_v28 = vshrl.u32 %v4290_v13, 16  ;;  %v647_v37 = vrot.slane %v645_v21, 4  ;;  %v1106_v53 = vrot.slane %v4135_v47, 5 }
  0x3a   : > { %3594 = vmatprep.subr.bf16.mxu1 %v3866_v62  ;;  %3560 = vmatprep.subr.bf16.mxu0 %v3863_v18  ;;  %v637_v17 = vor.u32 %v636_v2, %v632_v60  ;;  %v619_v42 = vsel %vm4139_vm3, %v614_v9, %v618_v40  ;;  %v650_v38 = vrot.slane %v648_v22, 5  ;;  %v3876_v40 = vld [vmem:[%s5077_s3 + $0xc8] sm:$0xff]   ;;  %v4315_v50 = vld [vmem:[#allocation2 + $0x58] sm:$0xf]  ;;  %v669_v2 = vshrl.u32 %v4307_v39, 16 }
  0x3b   : > { %3548 = vmatprep.mubr.bf16.mxu1 %v4256_v29  ;;  %3513 = vmatmul.mubr.bf16.gmra.mxu0 %v4272_v52  ;;  %v627_v10 = vor.u32 %v626_v43, %v623_v49  ;;  %v4305_v34 = vcombine.low %v609_v8, %v619_v42  ;;  %v660_v44 = vrot.slane %v658_v28, 4  ;;  %v664_v49 = vshll.u32 %v4301_v27, 16 }
  0x3c   : > { %v638_v36 = vrot.slane %v637_v17, 4  ;;  %v651_v59 = vor.u32 %v650_v38, %v647_v37  ;;  %v4325_v43 = vcombine.low %v4288_v11, %v4290_v13  ;;  %v672_v9 = vshll.u32 %v4307_v39, 16 }
  0x3d   : > { %3595 = vmatpush3.bf16.msra.mxu1 %v3866_v62  ;;  %v640_v62 = vshll.u32 %v4248_v24, 16  ;;  %3561 = vmatpush3.bf16.msra.mxu0 %v3863_v18  ;;  %v628_v23 = vrot.slane %v627_v10, 4  ;;  %v654_v18 = vshll.u32 %v4290_v13, 16  ;;  %v666_v8 = vrot.slane %v664_v49, 5 }
  0x3e   : > { %3596 = vmatprep.subr.bf16.mxu1 %v3870_v35  ;;  %3562 = vmatprep.subr.bf16.mxu0 %v3865_v45  ;;  %v652_v10 = vrot.slane %v651_v59, 4  ;;  %v671_v17 = vrot.slane %v669_v2, 4  ;;  %v682_v21 = vshrl.u32 %v4315_v50, 16  ;;  %v674_v42 = vrot.slane %v672_v9, 5  ;;  %v3880_v9 = vld [vmem:[%s5077_s3 + $0x178] sm:$0xff]  }
  0x3f   : > { %v642_v19 = vrot.slane %v640_v62, 5  ;;  %v656_v41 = vrot.slane %v654_v18, 5  ;;  %3516 = vmatprep.mubr.bf16.mxu0 %v4305_v34  ;;  %v3878_v18 = vld [vmem:[%s5077_s3 + $0xc0] sm:$0xff]  }
  0x40   : > { %3549 = vmatmul.mubr.bf16.gmra.mxu1 %v4279_v3  ;;  %v684_v37 = vrot.slane %v682_v21, 4  ;;  %v675_v49 = vor.u32 %v674_v42, %v671_v17  ;;  %v1109_v21 = vrot.slane %v4166_v63, 5  ;;  %v3879_v42 = vld [vmem:[%s5077_s3 + $0x138] sm:$0xff]  }
  0x41   : > { %3597 = vmatpush3.bf16.msra.mxu1 %v3870_v35  ;;  %v633_v35 = vsel %vm4139_vm3, %v628_v23, %v632_v60  ;;  %3563 = vmatpush3.bf16.msra.mxu0 %v3865_v45  ;;  %v643_v51 = vsel %vm4139_vm3, %v638_v36, %v642_v19  ;;  %v4327_v60 = vld [vmem:[#allocation2 + $0x5c] sm:$0x1]  ;;  %v661_v45 = vor.u32 %v660_v44, %v656_v41  ;;  %v678_v19 = vshll.u32 %v4315_v50, 16 }
  0x42   : > { %3598 = vmatprep.subr.bf16.mxu1 %v3872_v7  ;;  %v4330_v62 = vcombine.low %v633_v35, %v643_v51  ;;  %3564 = vmatprep.subr.bf16.mxu0 %v3869_v25  ;;  %v688_v23 = vshll.u32 %v4327_v60, 16  ;;  %v657_v28 = vsel %vm4139_vm3, %v652_v10, %v656_v41  ;;  %v1092_v35 = vrot.slane %v4148_v54, 5 }
  0x43   : > { %3552 = vmatprep.mubr.bf16.mxu1 %v4325_v43  ;;  %v662_v22 = vrot.slane %v661_v45, 4  ;;  %v680_v36 = vrot.slane %v678_v19, 5  ;;  %v1099_v54 = vrot.slane %v4114_v31, 5  ;;  %v676_v45 = vrot.slane %v675_v49, 4 }
  0x44   : > { %3517 = vmatmul.mubr.bf16.gmra.mxu0 %v4330_v62  ;;  %v690_v51 = vrot.slane %v688_v23, 5  ;;  %v1094_v2 = vrot.slane %v1092_v35, 4  ;;  %v1102_v10 = vrot.slane %v4116_v32, 5  ;;  %v3877_v32 = vld [vmem:[%s5077_s3 + $0x80] sm:$0xff]   ;;  %v1108_v19 = vrot.slane %v1106_v53, 4 }
  0x45   : > { %3599 = vmatpush3.bf16.msra.mxu1 %v3872_v7  ;;  %v4340_v7 = vcombine.low %v4307_v39, %v4315_v50  ;;  %3565 = vmatpush3.bf16.msra.mxu0 %v3869_v25  ;;  %v667_v44 = vsel %vm4139_vm3, %v662_v22, %v666_v8  ;;  %v3875_v25 = vld [vmem:[%s5077_s3 + $0x88] sm:$0xff]   ;;  %v685_v59 = vor.u32 %v684_v37, %v680_v36  ;;  %v1101_v17 = vrot.slane %v1099_v54, 4  ;;  %v3882_v22 = vld [vmem:[%s5077_s3 + $0x170] sm:$0xff]  }
  0x46   : > { %3600 = vmatprep.subr.bf16.mxu1 %v3876_v40  ;;  %3566 = vmatprep.subr.bf16.mxu0 %v3871_v56  ;;  %v4360_v41 = vcombine.low %v657_v28, %v667_v44  ;;  %v1093_v8 = vsel %vm4349_vm6, %v3119_v16, %v1092_v35  ;;  %v1096_v31 = vsel %vm4349_vm6, %v1094_v2, %v1095_v1  ;;  %v3120_v16 = vrot.slane %v4112_v30, 9  ;;  %v396_v30 = vld [vmem:[%s4069_s9 + $0x54] sm:$0xff]   ;;  %v3884_v37 = vld [vmem:[%s5077_s3 + $0x168] sm:$0xff]  }
  0x47   : > { %v3143_v55 = vcombine.low %v1093_v8, %v1096_v31  ;;  %v3121_v1 = vrot.slane %v4133_v46, 9  ;;  %421 = vst [vmem:[#allocation2 + $0x60] sm:$0xff] %v396_v30   ;;  %v1103_v63 = vsel %vm4349_vm6, %v1101_v17, %v1102_v10  ;;  %v1113_v23 = vrot.slane %v4181_v15, 5  ;;  %v3888_v10 = vld [vmem:[%s5077_s3 + $0x158] sm:$0xff]   ;;  %v3893_v30 = vld [vmem:[%s5077_s3 + $0x148] sm:$0xff]  }
  0x48   : > { %3553 = vmatmul.mubr.bf16.gmra.mxu1 %v4340_v7  ;;  %3520 = vmatprep.mubr.bf16.mxu0 %v4360_v41  ;;  %v1100_v46 = vsel %vm4349_vm6, %v3120_v16, %v1099_v54  ;;  %v3122_v15 = vrot.slane %v4175_v4, 9  ;;  %v1123_v2 = vrot.slane %v4224_v6, 5  ;;  %v3883_v4 = vld [vmem:[%s5077_s3 + $0x128] sm:$0xff]   ;;  %v3886_v54 = vld [vmem:[%s5077_s3 + $0x160] sm:$0xff]   ;;  %v1127_v6 = vrot.slane %v4242_v20, 5 }
  0x49   : > { %3601 = vmatpush3.bf16.msra.mxu1 %v3876_v40  ;;  %3604 = vmatprep.mubr.bf16.mxu1 %v4155_v57  ;;  %v686_v40 = vrot.slane %v685_v59, 4  ;;  %v681_v57 = vsel %vm4139_vm3, %v676_v45, %v680_v36  ;;  %v1107_v28 = vsel %vm4349_vm6, %v3121_v1, %v1106_v53  ;;  %v1110_v36 = vsel %vm4349_vm6, %v1108_v19, %v1109_v21  ;;  %v3885_v20 = vld [vmem:[%s5077_s3 + $0x120] sm:$0xff]  }
  0x4a   : > { %3602 = vmatprep.subr.bf16.mxu1 %v3878_v18  ;;  %3567 = vmatpush3.bf16.msra.mxu0 %v3871_v56  ;;  %v4413_v35 = vcombine.low %v1100_v46, %v1103_v63  ;;  %v4419_v44 = vcombine.low %v1107_v28, %v1110_v36  ;;  %v1115_v49 = vrot.slane %v1113_v23, 4  ;;  %v1134_v45 = vrot.slane %v4290_v13, 5 }
  0x4b   : > { %3568 = vmatprep.subr.bf16.mxu0 %v3875_v25  ;;  %v691_v56 = vsel %vm4139_vm3, %v686_v40, %v690_v51  ;;  %v1116_v51 = vrot.slane %v4192_v26, 5  ;;  %v1114_v26 = vsel %vm4349_vm6, %v3122_v15, %v1113_v23  ;;  %v3124_v13 = vrot.slane %v4233_v12, 9  ;;  %v3890_v12 = vld [vmem:[%s5077_s3 + $0x150] sm:$0xff]  }
  0x4c   : > { %v4387_v47 = vcombine.low %v681_v57, %v691_v56  ;;  %v1130_v31 = vrot.slane %v4248_v24, 5  ;;  %v1129_v57 = vrot.slane %v1127_v6, 4  ;;  %v1136_v16 = vrot.slane %v1134_v45, 4 }
  0x4d   : > { %3603 = vmatpush3.bf16.msra.mxu1 %v3878_v18  ;;  %v1120_v18 = vrot.slane %v4222_v5, 5  ;;  %v3881_v5 = vld [vmem:[%s5077_s3 + $0x130] sm:$0xff]   ;;  %v1137_v56 = vrot.slane %v4301_v27, 5  ;;  %v1128_v24 = vsel %vm4349_vm6, %v3124_v13, %v1127_v6  ;;  %v3887_v27 = vld [vmem:[%s5077_s3 + $0x118] sm:$0xff]   ;;  %v1144_v23 = vrot.slane %v4327_v60, 5  ;;  %v3895_v60 = vld [vmem:[%s5077_s3 + $0x140] sm:$0xff]  }
  0x4e   : > { %3652 = vmatprep.subr.bf16.mxu1 %v3880_v9  ;;  %3569 = vmatpush3.bf16.msra.mxu0 %v3875_v25  ;;  %v3123_v25 = vrot.slane %v4220_v0, 9  ;;  %v1117_v0 = vsel %vm4349_vm6, %v1115_v49, %v1116_v51  ;;  %v4483_v19 = vld [vmem:[#allocation2 + $0x60] sm:$0xf]  ;;  %v4486_v21 = vld [vmem:[#allocation2 + $0x64] sm:$0xf]  ;;  %v3896_v51 = vld [vmem:[%s5077_s3 + $0x1b8] sm:$0xff]  }
  0x4f   : > { %3521 = vmatmul.mubr.bf16.gmra.mxu0 %v4387_v47  ;;  %3570 = vmatprep.subr.bf16.mxu0 %v3877_v32  ;;  %v1122_v59 = vrot.slane %v1120_v18, 4  ;;  %v4448_v40 = vcombine.low %v1114_v26, %v1117_v0  ;;  %v1138_v1 = vsel %vm4349_vm6, %v1136_v16, %v1137_v56  ;;  %v3894_v49 = vld [vmem:[%s5077_s3 + $0x100] sm:$0xff]   ;;  %v3898_v6 = vld [vmem:[%s5077_s3 + $0x1b0] sm:$0xff]   ;;  %v3900_v13 = vld [vmem:[%s5077_s3 + $0x1a8] sm:$0xff]  }
  0x50   : > { %3572 = vmatprep.mubr.bf16.mxu0 %v3143_v55  ;;  %3605 = vmatmul.mubr.bf16.vlgmr.msra.gmra.mxu1 %v4160_v58  ;;  %v1121_v8 = vsel %vm4349_vm6, %v3123_v25, %v1120_v18  ;;  %v1141_v55 = vrot.slane %v4315_v50, 5  ;;  %v3126_v50 = vrot.slane %v4307_v39, 9  ;;  %v3889_v18 = vld [vmem:[%s5077_s3 + $0x110] sm:$0xff]   ;;  %v4503_v39 = vcombine.low %v4483_v19, %v4486_v21  ;;  %v438_v25 = vld [vmem:[%s361_s14] sm:$0xf] }
  0x51   : > { %3653 = vmatpush3.bf16.msra.mxu1 %v3880_v9  ;;  %3608 = vmatprep.mubr.bf16.mxu1 %v4215_v61  ;;  %v1124_v9 = vsel %vm4349_vm6, %v1122_v59, %v1123_v2  ;;  %v439_v59 = vld [vmem:[%s361_s14 + $0x4] sm:$0xf]  ;;  %v440_v2 = vld [vmem:[%s361_s14 + $0x8] sm:$0x1] }
  0x52   : > { %3571 = vmatpush3.bf16.msra.mxu0 %v3877_v32  ;;  %3654 = vmatprep.subr.bf16.mxu1 %v3882_v22  ;;  %v4455_v53 = vcombine.low %v1121_v8, %v1124_v9  ;;  %v3125_v32 = vrot.slane %v4288_v11, 9  ;;  %v1131_v11 = vsel %vm4349_vm6, %v1129_v57, %v1130_v31  ;;  %v1143_v63 = vrot.slane %v1141_v55, 4  ;;  %v3905_v57 = vld [vmem:[%s5077_s3 + $0x1d8] sm:$0xff]  }
  0x53   : > { %3620 = vmatprep.subr.bf16.mxu0 %v3879_v42  ;;  %v1142_v28 = vsel %vm4349_vm6, %v3126_v50, %v1141_v55  ;;  %v1541_v8 = vshrl.u32 %v4483_v19, 16  ;;  %v1544_v9 = vshll.u32 %v4483_v19, 16  ;;  %v1749_v31 = vrot.slane %v4486_v21, 5 }
  0x54   : > { %v1135_v17 = vsel %vm4349_vm6, %v3125_v32, %v1134_v45  ;;  %v1145_v36 = vsel %vm4349_vm6, %v1143_v63, %v1144_v23  ;;  %v3903_v45 = vld [vmem:[%s5077_s3 + $0x1e0] sm:$0xff]   ;;  %v3909_v23 = vld [vmem:[%s5077_s3 + $0x1c8] sm:$0xff]  }
  0x55   : > { %3655 = vmatpush3.bf16.msra.mxu1 %v3882_v22  ;;  %v4488_v22 = vcombine.low %v1128_v24, %v1131_v11  ;;  %v4495_v46 = vcombine.low %v1135_v17, %v1138_v1  ;;  %v4525_v15 = vcombine.low %v1142_v28, %v1145_v36  ;;  %v1543_v32 = vrot.slane %v1541_v8, 4  ;;  %v3902_v24 = vld [vmem:[%s5077_s3 + $0x1a0] sm:$0xff]   ;;  %v3907_v1 = vld [vmem:[%s5077_s3 + $0x1d0] sm:$0xff]  }
  0x56   : > { %3656 = vmatprep.subr.bf16.mxu1 %v3884_v37  ;;  %v1546_v16 = vrot.slane %v1544_v9, 5  ;;  %v1751_v55 = vrot.slane %v1749_v31, 4  ;;  %v3906_v36 = vld [vmem:[%s5077_s3 + $0x190] sm:$0xff]   ;;  %v3915_v9 = vld [vmem:[%s5077_s3 + $0x220] sm:$0xff]  }
  0x57   : > { %3573 = vmatmul.mubr.bf16.vlgmr.msra.gmra.mxu0 %v4413_v35 }
  0x58   : > { %3621 = vmatpush3.bf16.msra.mxu0 %v3879_v42  ;;  %3576 = vmatprep.mubr.bf16.mxu0 %v4419_v44  ;;  %v398_v42 = vld [vmem:[%s4069_s9 + $0x5c] sm:$0x1] }
  0x59   : > { %3622 = vmatprep.subr.bf16.mxu0 %v3881_v5  ;;  %3609 = vmatmul.mubr.bf16.gmra.mxu1 %v4256_v29  ;;  %423 = vst [vmem:[#allocation2 + $0x68] sm:$0x1] %v398_v42 }
  0x5a   : > { %3657 = vmatpush3.bf16.msra.mxu1 %v3884_v37  ;;  %3612 = vmatprep.mubr.bf16.mxu1 %v4279_v3  ;;  %v3892_v37 = vld [vmem:[%s5077_s3 + $0x108] sm:$0xff]  }
  0x5b   : > { %3658 = vmatprep.subr.bf16.mxu1 %v3886_v54 }
  0x5c   : > { %3623 = vmatpush3.bf16.msra.mxu0 %v3881_v5  ;;  %v3897_v5 = vld [vmem:[%s5077_s3 + $0x1f8] sm:$0xff]  }
  0x5d   : > { %3624 = vmatprep.subr.bf16.mxu0 %v3883_v4 }
  0x5e   : > { %3659 = vmatpush3.bf16.msra.mxu1 %v3886_v54 }
  0x5f   : > { %3577 = vmatmul.mubr.bf16.gmra.mxu0 %v4448_v40  ;;  %3660 = vmatprep.subr.bf16.mxu1 %v3888_v10 }
  0x60   : > { %3625 = vmatpush3.bf16.msra.mxu0 %v3883_v4  ;;  %3580 = vmatprep.mubr.bf16.mxu0 %v4455_v53  ;;  %v442_v4 = vstv %s441_s16  ;;  %v477_v11 = vld [vmem:[#allocation2 + $0x68] sm:$0x1] }
  0x61   : > { %3626 = vmatprep.subr.bf16.mxu0 %v3885_v20  ;;  %3613 = vmatmul.mubr.bf16.gmra.mxu1 %v4325_v43  ;;  %vm443_vm7 = vcmp.eq.s32.totalorder %v442_v4, 1  ;;  %v1752_v17 = vrot.slane %v477_v11, 5  ;;  %v3913_v4 = vld [vmem:[%s5077_s3 + $0x230] sm:$0xff]  }
  0x62   : > { %3661 = vmatpush3.bf16.msra.mxu1 %v3888_v10  ;;  %3616 = vmatprep.mubr.bf16.mxu1 %v4340_v7  ;;  %v444_v54 = vsel %vm443_vm7, %v438_v25, 0  ;;  %v445_v26 = vsel %vm443_vm7, %v439_v59, 0  ;;  %v446_v0 = vsel %vm443_vm7, %v440_v2, 0  ;;  %v1554_v10 = vshrl.u32 %v4486_v21, 16  ;;  %v3912_v59 = vld [vmem:[%s5077_s3 + $0x238] sm:$0xff]   ;;  %v3910_v2 = vld [vmem:[%s5077_s3 + $0x180] sm:$0xff]  }
  0x63   : > { %3662 = vmatprep.subr.bf16.mxu1 %v3890_v12  ;;  %448 = vst [vmem:[#allocation2 + $0x6c] sm:$0xf] %v444_v54  ;;  %449 = vst [vmem:[#allocation2 + $0x70] sm:$0xf] %v445_v26  ;;  %v1753_v63 = vsel %vm4349_vm6, %v1751_v55, %v1752_v17 }
  0x64   : > { %3627 = vmatpush3.bf16.msra.mxu0 %v3885_v20  ;;  %450 = vst [vmem:[#allocation2 + $0x74] sm:$0x1] %v446_v0  ;;  %v1550_v20 = vshll.u32 %v4486_v21, 16  ;;  %v1547_v21 = vor.u32 %v1546_v16, %v1543_v32 }
  0x65   : > { %3628 = vmatprep.subr.bf16.mxu0 %v3887_v27 }
  0x66   : > { %3663 = vmatpush3.bf16.msra.mxu1 %v3890_v12  ;;  %v1552_v56 = vrot.slane %v1550_v20, 5  ;;  %v1556_v12 = vrot.slane %v1554_v10, 4 }
  0x67   : > { %3581 = vmatmul.mubr.bf16.gmra.mxu0 %v4488_v22  ;;  %3664 = vmatprep.subr.bf16.mxu1 %v3893_v30 }
  0x68   : > { %3629 = vmatpush3.bf16.msra.mxu0 %v3887_v27  ;;  %3584 = vmatprep.mubr.bf16.mxu0 %v4495_v46  ;;  %v3209_v27 = vrot.slane %v4483_v19, 9  ;;  %v1557_v50 = vor.u32 %v1556_v12, %v1552_v56  ;;  %v3904_v19 = vld [vmem:[%s5077_s3 + $0x198] sm:$0xff]  }
  0x69   : > { %3630 = vmatprep.subr.bf16.mxu0 %v3889_v18  ;;  %3617 = vmatmul.mubr.bf16.gmra.mxu1 %v4503_v39 }
  0x6a   : > { %3665 = vmatpush3.bf16.msra.mxu1 %v3893_v30  ;;  %3668 = vmatprep.mubr.bf16.mxu1 %v4413_v35  ;;  %v3899_v35 = vld [vmem:[%s5077_s3 + $0x1f0] sm:$0xff]   ;;  %v1560_v30 = vshll.u32 %v477_v11, 16  ;;  %v1750_v42 = vsel %vm4349_vm6, %v3209_v27, %v1749_v31 }
  0x6b   : > { %3666 = vmatprep.subr.bf16.mxu1 %v3895_v60  ;;  %v480_v10 = vld [vmem:[#allocation2 + $0x74] sm:$0x1] }
  0x6c   : > { %3631 = vmatpush3.bf16.msra.mxu0 %v3889_v18  ;;  %v1548_v18 = vrot.slane %v1547_v21, 4  ;;  %v1562_v28 = vrot.slane %v1560_v30, 5  ;;  %v2140_v31 = vshll.u32 %v480_v10, 16 }
  0x6d   : > { %3632 = vmatprep.subr.bf16.mxu0 %v3892_v37 }
  0x6e   : > { %3667 = vmatpush3.bf16.msra.mxu1 %v3895_v60  ;;  %v1558_v60 = vrot.slane %v1557_v50, 4 }
  0x6f   : > { %3585 = vmatmul.mubr.bf16.gmra.mxu0 %v4525_v15  ;;  %3716 = vmatprep.subr.bf16.mxu1 %v3897_v5 }
  0x70   : > { %3633 = vmatpush3.bf16.msra.mxu0 %v3892_v37  ;;  %3636 = vmatprep.mubr.bf16.mxu0 %v4195_v33  ;;  %v3901_v33 = vld [vmem:[%s5077_s3 + $0x1e8] sm:$0xff]   ;;  %v4597_v37 = vcombine.low %v1750_v42, %v1753_v63 }
  0x71   : > { %3634 = vmatprep.subr.bf16.mxu0 %v3894_v49  ;;  %3669 = vmatmul.mubr.bf16.vlgmr.msra.gmra.mxu1 %v4419_v44 }
  0x72   : > { %3717 = vmatpush3.bf16.msra.mxu1 %v3897_v5  ;;  %3672 = vmatprep.mubr.bf16.mxu1 %v4448_v40  ;;  %v3911_v5 = vld [vmem:[%s5077_s3 + $0x1c0] sm:$0xff]  }
  0x73   : > { %3718 = vmatprep.subr.bf16.mxu1 %v3899_v35 }
  0x74   : > { %3635 = vmatpush3.bf16.msra.mxu0 %v3894_v49  ;;  %v1553_v49 = vsel %vm4139_vm3, %v1548_v18, %v1552_v56 }
  0x75   : > { %3684 = vmatprep.subr.bf16.mxu0 %v3896_v51 }
  0x76   : > { %3719 = vmatpush3.bf16.msra.mxu1 %v3899_v35  ;;  %v1563_v35 = vsel %vm4139_vm3, %v1558_v60, %v1562_v28  ;;  %v2601_v60 = vld [vmem:[%s4688_s7 + $0xc] sm:$0x1]  ;;  %v2613_v28 = vld [vmem:[%s4688_s7 + $0x3c] sm:$0x1] }
  0x77   : > { %3637 = vmatmul.mubr.bf16.vlgmr.msra.gmra.mxu0 %v4237_v14  ;;  %3720 = vmatprep.subr.bf16.mxu1 %v3901_v33  ;;  %v3200_v25 = vcombine.low %v1553_v49, %v1563_v35  ;;  %v2614_v49 = vsel %vm4696_vm10, 0, %v2613_v28 }
  0x78   : > { %3685 = vmatpush3.bf16.msra.mxu0 %v3896_v51  ;;  %3640 = vmatprep.mubr.bf16.mxu0 %v4272_v52  ;;  %v3908_v51 = vld [vmem:[%s5077_s3 + $0x188] sm:$0xff]   ;;  %2615 = vst [vmem:[%s4688_s7 + $0x3c] sm:$0x1] %v2614_v49 }
  0x79   : > { %3686 = vmatprep.subr.bf16.mxu0 %v3898_v6  ;;  %3673 = vmatmul.mubr.bf16.gmra.mxu1 %v4455_v53 }
  0x7a   : > { %3721 = vmatpush3.bf16.msra.mxu1 %v3901_v33  ;;  %3676 = vmatprep.mubr.bf16.mxu1 %v4488_v22  ;;  %v4624_v33 = vld [vmem:[#allocation2 + $0x70] sm:$0xf] }
  0x7b   : > { %3722 = vmatprep.subr.bf16.mxu1 %v3903_v45  ;;  %v2134_v0 = vshrl.u32 %v4624_v33, 16  ;;  %v2329_v48 = vrot.slane %v4624_v33, 5 }
  0x7c   : > { %3687 = vmatpush3.bf16.msra.mxu0 %v3898_v6  ;;  %v2130_v6 = vshll.u32 %v4624_v33, 16 }
  0x7d   : > { %3688 = vmatprep.subr.bf16.mxu0 %v3900_v13  ;;  %v2331_v12 = vrot.slane %v2329_v48, 4 }
  0x7e   : > { %3723 = vmatpush3.bf16.msra.mxu1 %v3903_v45  ;;  %v3914_v45 = vld [vmem:[%s5077_s3 + $0x228] sm:$0xff]   ;;  %v2132_v8 = vrot.slane %v2130_v6, 5 }
  0x7f   : > { %3641 = vmatmul.mubr.bf16.gmra.mxu0 %v4305_v34  ;;  %3724 = vmatprep.subr.bf16.mxu1 %v3905_v57 }
  0x80   : > { %3689 = vmatpush3.bf16.msra.mxu0 %v3900_v13  ;;  %3644 = vmatprep.mubr.bf16.mxu0 %v4330_v62 }
  0x81   : > { %3690 = vmatprep.subr.bf16.mxu0 %v3902_v24  ;;  %3677 = vmatmul.mubr.bf16.gmra.mxu1 %v4495_v46 }
  0x82   : > { %3725 = vmatpush3.bf16.msra.mxu1 %v3905_v57  ;;  %3680 = vmatprep.mubr.bf16.mxu1 %v4525_v15 }
  0x83   : > { %3726 = vmatprep.subr.bf16.mxu1 %v3907_v1 }
  0x84   : > { %3691 = vmatpush3.bf16.msra.mxu0 %v3902_v24  ;;  %v2332_v24 = vrot.slane %v480_v10, 5 }
  0x85   : > { %3692 = vmatprep.subr.bf16.mxu0 %v3904_v19 }
  0x86   : > { %3727 = vmatpush3.bf16.msra.mxu1 %v3907_v1 }
  0x87   : > { %3645 = vmatmul.mubr.bf16.gmra.mxu0 %v4360_v41  ;;  %3728 = vmatprep.subr.bf16.mxu1 %v3909_v23 }
  0x88   : > { %3693 = vmatpush3.bf16.msra.mxu0 %v3904_v19  ;;  %3648 = vmatprep.mubr.bf16.mxu0 %v4387_v47 }
  0x89   : > { %3694 = vmatprep.subr.bf16.mxu0 %v3906_v36  ;;  %3681 = vmatmul.mubr.bf16.gmra.mxu1 %v4597_v37 }
  0x8a   : > { %3729 = vmatpush3.bf16.msra.mxu1 %v3909_v23  ;;  %3732 = vmatprep.mubr.bf16.mxu1 %v4237_v14  ;;  %v4622_v14 = vld [vmem:[#allocation2 + $0x6c] sm:$0xf] }
  0x8b   : > { %3730 = vmatprep.subr.bf16.mxu1 %v3911_v5  ;;  %v2121_v54 = vshrl.u32 %v4622_v14, 16  ;;  %v2124_v26 = vshll.u32 %v4622_v14, 16 }
  0x8c   : > { %3695 = vmatpush3.bf16.msra.mxu0 %v3906_v36 }
  0x8d   : > { %3696 = vmatprep.subr.bf16.mxu0 %v3908_v51 }
  0x8e   : > { %3731 = vmatpush3.bf16.msra.mxu1 %v3911_v5  ;;  %v2602_v5 = vsel %vm4696_vm10, 0, %v2601_v60 }
  0x8f   : > { %3649 = vmatmul.mubr.bf16.gmra.mxu0 %v3200_v25  ;;  %3780 = vmatprep.subr.bf16.mxu1 %v3912_v59  ;;  %2603 = vst [vmem:[%s4688_s7 + $0xc] sm:$0x1] %v2602_v5  ;;  %v2616_v5 = vld [vmem:[%s4688_s7 + $0x48] sm:$0x1] }
  0x90   : > { %3697 = vmatpush3.bf16.msra.mxu0 %v3908_v51  ;;  %3700 = vmatprep.mubr.bf16.mxu0 %v4160_v58  ;;  %v2123_v58 = vrot.slane %v2121_v54, 4  ;;  %v2598_v51 = vld [vmem:[%s4688_s7] sm:$0x1] }
  0x91   : > { %3698 = vmatprep.subr.bf16.mxu0 %v3910_v2  ;;  %3733 = vmatmul.mubr.bf16.vlgmr.msra.gmra.mxu1 %v4272_v52  ;;  %v2126_v52 = vrot.slane %v2124_v26, 5 }
  0x92   : > { %3788 = vmatpush3.bf16.msra.mxu1 %v3912_v59  ;;  %3736 = vmatprep.mubr.bf16.mxu1 %v4305_v34  ;;  %v2136_v34 = vrot.slane %v2134_v0, 4 }
  0x93   : > { %3781 = vmatprep.subr.bf16.mxu1 %v3913_v4  ;;  %v2127_v20 = vor.u32 %v2126_v52, %v2123_v58 }
  0x94   : > { %3699 = vmatpush3.bf16.msra.mxu0 %v3910_v2  ;;  %v2137_v13 = vor.u32 %v2136_v34, %v2132_v8  ;;  %v2639_v34 = vld [vmem:[%s4688_s7 + $0x44] sm:$0x1] }
  0x95   : > { %3748 = vmatprep.subr.bf16.mxu0 %v3912_v59  ;;  %v2128_v57 = vrot.slane %v2127_v20, 4  ;;  %v2640_v10 = vsel %vm4720_vm12, 0, %v2639_v34 }
  0x96   : > { %3789 = vmatpush3.bf16.msra.mxu1 %v3913_v4  ;;  %v2138_v32 = vrot.slane %v2137_v13, 4  ;;  %2641 = vst [vmem:[%s4688_s7 + $0x44] sm:$0x1] %v2640_v10 }
  0x97   : > { %3701 = vmatmul.mubr.bf16.vlgmr.msra.gmra.mxu0 %v4215_v61  ;;  %3782 = vmatprep.subr.bf16.mxu1 %v3914_v45  ;;  %v3916_v61 = vld [vmem:[%s5077_s3 + $0x218] sm:$0xff]  }
  0x98   : > { %3749 = vmatpush3.bf16.msra.mxu0 %v3912_v59  ;;  %3704 = vmatprep.mubr.bf16.mxu0 %v4256_v29  ;;  %v2142_v29 = vrot.slane %v2140_v31, 5 }
  0x99   : > { %3750 = vmatprep.subr.bf16.mxu0 %v3913_v4  ;;  %3737 = vmatmul.mubr.bf16.gmra.mxu1 %v4330_v62  ;;  %v3917_v62 = vld [vmem:[%s5077_s3 + $0x210] sm:$0xff]  }
  0x9a   : > { %3790 = vmatpush3.bf16.msra.mxu1 %v3914_v45  ;;  %3740 = vmatprep.mubr.bf16.mxu1 %v4360_v41  ;;  %v2133_v41 = vsel %vm4139_vm3, %v2128_v57, %v2132_v8  ;;  %v2143_v16 = vsel %vm4139_vm3, %v2138_v32, %v2142_v29  ;;  %v2624_v29 = vld [vmem:[%s4688_s7 + $0x8] sm:$0x1]  ;;  %vm4911_vm3 = vmand %vm2850_vm13, %vm2622_vm11 }
  0x9b   : > { %3783 = vmatprep.subr.bf16.mxu1 %v3915_v9  ;;  %v3276_v56 = vcombine.low %v2133_v41, %v2143_v16  ;;  %v2625_v16 = vsel %vm4720_vm12, 0, %v2624_v29  ;;  %v2642_v29 = vld [vmem:[%s4688_s7 + $0x50] sm:$0x1] }
  0x9c   : > { %3751 = vmatpush3.bf16.msra.mxu0 %v3913_v4  ;;  %v2599_v4 = vsel %vm4696_vm10, 0, %v2598_v51  ;;  %2626 = vst [vmem:[%s4688_s7 + $0x8] sm:$0x1] %v2625_v16  ;;  %v2617_v51 = vsel %vm4696_vm10, 0, %v2616_v5  ;;  %v2643_v16 = vsel %vm4720_vm12, 0, %v2642_v29 }
  0x9d   : > { %3752 = vmatprep.subr.bf16.mxu0 %v3914_v45  ;;  %2600 = vst [vmem:[%s4688_s7] sm:$0x1] %v2599_v4  ;;  %2618 = vst [vmem:[%s4688_s7 + $0x48] sm:$0x1] %v2617_v51  ;;  %v2633_v4 = vld [vmem:[%s4688_s7 + $0x2c] sm:$0x1] }
  0x9e   : > { %3791 = vmatpush3.bf16.msra.mxu1 %v3915_v9  ;;  %2644 = vst [vmem:[%s4688_s7 + $0x50] sm:$0x1] %v2643_v16 }
  0x9f   : > { %3705 = vmatmul.mubr.bf16.gmra.mxu0 %v4279_v3  ;;  %3784 = vmatprep.subr.bf16.mxu1 %v3916_v61  ;;  %v3919_v3 = vld [vmem:[%s5077_s3 + $0x208] sm:$0xff]  }
  0xa0   : > { %3753 = vmatpush3.bf16.msra.mxu0 %v3914_v45  ;;  %3708 = vmatprep.mubr.bf16.mxu0 %v4325_v43  ;;  %v3920_v43 = vld [vmem:[%s5077_s3 + $0x200] sm:$0xff]   ;;  %v2627_v45 = vld [vmem:[%s4688_s7 + $0x14] sm:$0x1] }
  0xa1   : > { %3754 = vmatprep.subr.bf16.mxu0 %v3915_v9  ;;  %3741 = vmatmul.mubr.bf16.gmra.mxu1 %v4387_v47  ;;  %v3251_v47 = vcombine.low %v4622_v14, %v4624_v33  ;;  %v2628_v8 = vsel %vm4720_vm12, 0, %v2627_v45 }
  0xa2   : > { %3792 = vmatpush3.bf16.msra.mxu1 %v3916_v61  ;;  %3744 = vmatprep.mubr.bf16.mxu1 %v3200_v25  ;;  %v2610_v25 = vld [vmem:[%s4688_s7 + $0x30] sm:$0x1]  ;;  %2629 = vst [vmem:[%s4688_s7 + $0x14] sm:$0x1] %v2628_v8 }
  0xa3   : > { %3785 = vmatprep.subr.bf16.mxu1 %v3917_v62 }
  0xa4   : > { %3755 = vmatpush3.bf16.msra.mxu0 %v3915_v9 }
  0xa5   : > { %3756 = vmatprep.subr.bf16.mxu0 %v3916_v61 }
  0xa6   : > { %3793 = vmatpush3.bf16.msra.mxu1 %v3917_v62 }
  0xa7   : > { %3709 = vmatmul.mubr.bf16.gmra.mxu0 %v4340_v7  ;;  %3786 = vmatprep.subr.bf16.mxu1 %v3919_v3  ;;  %v3285_v7 = vrot.slane %v4622_v14, 9  ;;  %v2611_v14 = vsel %vm4696_vm10, 0, %v2610_v25 }
  0xa8   : > { %3757 = vmatpush3.bf16.msra.mxu0 %v3916_v61  ;;  %3712 = vmatprep.mubr.bf16.mxu0 %v4503_v39  ;;  %v2333_v39 = vsel %vm4349_vm6, %v2331_v12, %v2332_v24  ;;  %2612 = vst [vmem:[%s4688_s7 + $0x30] sm:$0x1] %v2611_v14  ;;  %v2607_v12 = vld [vmem:[%s4688_s7 + $0x24] sm:$0x1] }
  0xa9   : > { %3758 = vmatprep.subr.bf16.mxu0 %v3917_v62  ;;  %3745 = vmatmul.mubr.bf16.gmra.mxu1 %v3276_v56 }
  0xaa   : > { %3794 = vmatpush3.bf16.msra.mxu1 %v3919_v3  ;;  %3772 = vmatprep.mubr.bf16.mxu1 %v4495_v46  ;;  %v2330_v46 = vsel %vm4349_vm6, %v3285_v7, %v2329_v48 }
  0xab   : > { %3787 = vmatprep.subr.bf16.mxu1 %v3920_v43  ;;  %v3302_v11 = vcombine.low %v2330_v46, %v2333_v39  ;;  %v2608_v39 = vsel %vm4696_vm10, 0, %v2607_v12 }
  0xac   : > { %3759 = vmatpush3.bf16.msra.mxu0 %v3917_v62  ;;  %v2636_v62 = vld [vmem:[%s4688_s7 + $0x38] sm:$0x1]  ;;  %2609 = vst [vmem:[%s4688_s7 + $0x24] sm:$0x1] %v2608_v39 }
  0xad   : > { %3760 = vmatprep.subr.bf16.mxu0 %v3919_v3 }
  0xae   : > { %3795 = vmatpush3.bf16.msra.mxu1 %v3920_v43 }
  0xaf   : > { %3713 = vmatmul.mubr.bf16.gmra.mxu0 %v3251_v47 }
  0xb0   : > { %3761 = vmatpush3.bf16.msra.mxu0 %v3919_v3  ;;  %3764 = vmatprep.mubr.bf16.mxu0 %v4419_v44  ;;  %v2637_v3 = vsel %vm4720_vm12, 0, %v2636_v62 }
  0xb1   : > { %3762 = vmatprep.subr.bf16.mxu0 %v3920_v43  ;;  %3773 = vmatmul.mubr.bf16.vlgmr.msra.gmra.mxu1 %v4525_v15  ;;  %2638 = vst [vmem:[%s4688_s7 + $0x38] sm:$0x1] %v2637_v3 }
  0xb2   : > { %3776 = vmatprep.mubr.bf16.mxu1 %v4597_v37 }
  0xb4   : > { %3763 = vmatpush3.bf16.msra.mxu0 %v3920_v43 }
  0xb7   : > { %3765 = vmatmul.mubr.bf16.vlgmr.msra.gmra.mxu0 %v4448_v40 }
  0xb8   : > { %3768 = vmatprep.mubr.bf16.mxu0 %v4455_v53 }
  0xb9   : > { %3777 = vmatmul.mubr.bf16.gmra.mxu1 %v3302_v11  ;;  %v2619_v11 = vld [vmem:[%s4688_s7 + $0x54] sm:$0x1] }
  0xbf   : > { %3769 = vmatmul.mubr.bf16.gmra.mxu0 %v4488_v22 }
  0xf0   : > { %v3542_v44 = vpop.f32.mrf.mxu1 }
  0xf2   : > { %v1016_v15 = vpop.f32.mrf.mxu1 }
  0xf3   : > { %v3510_v17 = vpop.f32.mrf.mxu0 }
  0xf4   : > { %v3543_v27 = vpop.f32.mrf.mxu1  ;;  %v4679_v21 = vadd.f32 %v3542_v44, %v3510_v17 }
  0xf5   : > { %v823_v38 = vpop.f32.mrf.mxu0 }
  0xf6   : > { %v1019_v55 = vpop.f32.mrf.mxu1  ;;  %v4681_v30 = vadd.f32 %v1016_v15, %v823_v38  ;;  %v2620_v15 = vsel %vm4696_vm10, 0, %v2619_v11 }
  0xf7   : > { %v3511_v19 = vpop.f32.mrf.mxu0  ;;  %2621 = vst [vmem:[%s4688_s7 + $0x54] sm:$0x1] %v2620_v15 }
  0xf8   : > { %v3546_v1 = vpop.f32.mrf.mxu1  ;;  %v4690_v53 = vadd.f32 %v3543_v27, %v3511_v19  ;;  %v2604_v19 = vld [vmem:[%s4688_s7 + $0x18] sm:$0x1] }
  0xf9   : > { %v826_v22 = vpop.f32.mrf.mxu0 }
  0xfa   : > { %v1032_v50 = vpop.f32.mrf.mxu1  ;;  %v4692_v63 = vadd.f32 %v1019_v55, %v826_v22 }
  0xfb   : > { %v3514_v23 = vpop.f32.mrf.mxu0 }
  0xfc   : > { %v3547_v40 = vpop.f32.mrf.mxu1  ;;  %v4702_v36 = vadd.f32 %v3546_v1, %v3514_v23 }
  0xfd   : > { %v839_v35 = vpop.f32.mrf.mxu0 }
  0xfe   : > { %v1035_v42 = vpop.f32.mrf.mxu1  ;;  %v4712_v59 = vadd.f32 %v1032_v50, %v839_v35 }
  0xff   : > { %v3515_v33 = vpop.f32.mrf.mxu0 }
 0x100   : > { %v3550_v37 = vpop.f32.mrf.mxu1  ;;  %v4726_v26 = vadd.f32 %v3547_v40, %v3515_v33  ;;  %v2634_v33 = vsel %vm4720_vm12, 0, %v2633_v4 }
 0x101   : > { %v842_v6 = vpop.f32.mrf.mxu0  ;;  %2635 = vst [vmem:[%s4688_s7 + $0x2c] sm:$0x1] %v2634_v33 }
 0x102   : > { %v1048_v2 = vpop.f32.mrf.mxu1  ;;  %v4729_v58 = vadd.f32 %v1035_v42, %v842_v6  ;;  %v2605_v42 = vsel %vm4696_vm10, 0, %v2604_v19 }
 0x103   : > { %2606 = vst [vmem:[%s4688_s7 + $0x18] sm:$0x1] %v2605_v42 }
 0x104   : > { %v3551_v0 = vpop.f32.mrf.mxu1  ;;  %v3518_v9 = vpop.f32.mrf.mxu0 }
 0x105   : > { %v4737_v20 = vadd.f32 %v3550_v37, %v3518_v9 }
 0x106   : > { %v1051_v52 = vpop.f32.mrf.mxu1  ;;  %v855_v13 = vpop.f32.mrf.mxu0 }
 0x107   : > { %v4740_v61 = vadd.f32 %v1048_v2, %v855_v13 }
 0x108   : > { %v3554_v31 = vpop.f32.mrf.mxu1  ;;  %v3519_v57 = vpop.f32.mrf.mxu0 }
 0x109   : > { %v4744_v41 = vadd.f32 %v3551_v0, %v3519_v57 }
 0x10a   : > { %v1064_v32 = vpop.f32.mrf.mxu1  ;;  %v858_v56 = vpop.f32.mrf.mxu0 }
 0x10b   : > { %v4752_v48 = vadd.f32 %v1051_v52, %v858_v56 }
 0x10c   : > { %v3555_v43 = vpop.f32.mrf.mxu1 }
 0x10e   : > { %v1067_v47 = vpop.f32.mrf.mxu1 }
 0x10f   : > { %v3522_v7 = vpop.f32.mrf.mxu0 }
 0x110   : > { %v4755_v24 = vadd.f32 %v3554_v31, %v3522_v7  ;;  %v3606_v46 = vpop.f32.mrf.mxu1 }
 0x111   : > { %v871_v44 = vpop.f32.mrf.mxu0 }
 0x112   : > { %v4763_v27 = vadd.f32 %v1064_v32, %v871_v44  ;;  %v1461_v55 = vpop.f32.mrf.mxu1 }
 0x113   : > { %v3523_v17 = vpop.f32.mrf.mxu0 }
 0x114   : > { %v4766_v1 = vadd.f32 %v3555_v43, %v3523_v17  ;;  %v3607_v38 = vpop.f32.mrf.mxu1 }
 0x115   : > { %v874_v50 = vpop.f32.mrf.mxu0 }
 0x116   : > { %v4769_v40 = vadd.f32 %v1067_v47, %v874_v50  ;;  %v1464_v22 = vpop.f32.mrf.mxu1 }
 0x117   : > { %v3574_v23 = vpop.f32.mrf.mxu0 }
 0x118   : > { %v1342_v60 = vadd.f32 %v3574_v23, %v4679_v21 }
 0x119   : > { %v1277_v28 = vpop.f32.mrf.mxu0  ;;  %v3610_v37 = vpop.f32.mrf.mxu1 }
 0x11a   : > { %v4776_v49 = vadd.f32 %v3606_v46, %v1342_v60  ;;  %v1340_v35 = vadd.f32 %v1277_v28, %v4681_v30  ;;  %v2645_v30 = vld [vmem:[%s4688_s7 + $0x5c] sm:$0x1] }
 0x11b   : > { %v3575_v25 = vpop.f32.mrf.mxu0  ;;  %v1477_v2 = vpop.f32.mrf.mxu1  ;;  %v2646_v8 = vsel %vm4720_vm12, 0, %v2645_v30 }
 0x11c   : > { %v4783_v14 = vadd.f32 %v1461_v55, %v1340_v35  ;;  %v1343_v21 = vadd.f32 %v3575_v25, %v4690_v53  ;;  %2647 = vst [vmem:[%s4688_s7 + $0x5c] sm:$0x1] %v2646_v8  ;;  %v2630_v53 = vld [vmem:[%s4688_s7 + $0x20] sm:$0x1] }
 0x11d   : > { %v1280_v0 = vpop.f32.mrf.mxu0  ;;  %v3611_v6 = vpop.f32.mrf.mxu1  ;;  %v2631_v31 = vsel %vm4720_vm12, 0, %v2630_v53 }
 0x11e   : > { %v4790_v45 = vadd.f32 %v3607_v38, %v1343_v21  ;;  %v1341_v52 = vadd.f32 %v1280_v0, %v4692_v63  ;;  %2632 = vst [vmem:[%s4688_s7 + $0x20] sm:$0x1] %v2631_v31 }
 0x11f   : > { %v3578_v34 = vpop.f32.mrf.mxu0  ;;  %v1480_v9 = vpop.f32.mrf.mxu1 }
 0x120   : > { %v4797_v10 = vadd.f32 %v1464_v22, %v1341_v52  ;;  %v1346_v13 = vadd.f32 %v3578_v34, %v4702_v36 }
 0x121   : > { %v1293_v57 = vpop.f32.mrf.mxu0  ;;  %v3614_v32 = vpop.f32.mrf.mxu1 }
 0x122   : > { %v4804_v63 = vadd.f32 %v3610_v37, %v1346_v13  ;;  %v1344_v62 = vadd.f32 %v1293_v57, %v4712_v59 }
 0x123   : > { %v3579_v3 = vpop.f32.mrf.mxu0  ;;  %v1493_v56 = vpop.f32.mrf.mxu1 }
 0x124   : > { %v1528_v43 = vadd.f32 %v1477_v2, %v1344_v62  ;;  %v1347_v36 = vadd.f32 %v3579_v3, %v4726_v26 }
 0x125   : > { %v1296_v47 = vpop.f32.mrf.mxu0  ;;  %v3615_v7 = vpop.f32.mrf.mxu1 }
 0x126   : > { %v1531_v12 = vadd.f32 %v3611_v6, %v1347_v36  ;;  %v1345_v46 = vadd.f32 %v1296_v47, %v4729_v58 }
 0x127   : > { %v3582_v39 = vpop.f32.mrf.mxu0  ;;  %v1496_v11 = vpop.f32.mrf.mxu1 }
 0x128   : > { %v1529_v44 = vadd.f32 %v1480_v9, %v1345_v46  ;;  %v1350_v15 = vadd.f32 %v3582_v39, %v4737_v20 }
 0x129   : > { %v1309_v59 = vpop.f32.mrf.mxu0  ;;  %v3618_v55 = vpop.f32.mrf.mxu1 }
 0x12a   : > { %v4813_v54 = vadd.f32 %v3614_v32, %v1350_v15  ;;  %v1348_v17 = vadd.f32 %v1309_v59, %v4740_v61 }
 0x12b   : > { %v3583_v38 = vpop.f32.mrf.mxu0  ;;  %v1509_v50 = vpop.f32.mrf.mxu1 }
 0x12c   : > { %v4816_v19 = vadd.f32 %v1493_v56, %v1348_v17  ;;  %v1351_v26 = vadd.f32 %v3583_v38, %v4744_v41 }
 0x12d   : > { %v1312_v22 = vpop.f32.mrf.mxu0  ;;  %v3619_v42 = vpop.f32.mrf.mxu1 }
 0x12e   : > { %v4819_v58 = vadd.f32 %v3615_v7, %v1351_v26  ;;  %v1349_v23 = vadd.f32 %v1312_v22, %v4752_v48 }
 0x12f   : > { %v3586_v60 = vpop.f32.mrf.mxu0  ;;  %v1512_v20 = vpop.f32.mrf.mxu1 }
 0x130   : > { %v4822_v28 = vadd.f32 %v1496_v11, %v1349_v23  ;;  %v1354_v37 = vadd.f32 %v3586_v60, %v4755_v24 }
 0x131   : > { %v1325_v5 = vpop.f32.mrf.mxu0  ;;  %v3670_v61 = vpop.f32.mrf.mxu1 }
 0x132   : > { %v4825_v35 = vadd.f32 %v3618_v55, %v1354_v37  ;;  %v1352_v51 = vadd.f32 %v1325_v5, %v4763_v27 }
 0x133   : > { %v3587_v25 = vpop.f32.mrf.mxu0  ;;  %v1857_v41 = vpop.f32.mrf.mxu1 }
 0x134   : > { %v1536_v2 = vadd.f32 %v1509_v50, %v1352_v51  ;;  %v1355_v4 = vadd.f32 %v3587_v25, %v4766_v1 }
 0x135   : > { %v1328_v21 = vpop.f32.mrf.mxu0  ;;  %v3671_v33 = vpop.f32.mrf.mxu1 }
 0x136   : > { %v1539_v48 = vadd.f32 %v3619_v42, %v1355_v4  ;;  %v1353_v0 = vadd.f32 %v1328_v21, %v4769_v40 }
 0x137   : > { %v3638_v6 = vpop.f32.mrf.mxu0  ;;  %v1860_v30 = vpop.f32.mrf.mxu1 }
 0x138   : > { %v1537_v52 = vadd.f32 %v1512_v20, %v1353_v0  ;;  %v1732_v24 = vadd.f32 %v3638_v6, %v4776_v49 }
 0x139   : > { %v1667_v8 = vpop.f32.mrf.mxu0  ;;  %v3674_v34 = vpop.f32.mrf.mxu1 }
 0x13a   : > { %v4831_v9 = vadd.f32 %v3670_v61, %v1732_v24  ;;  %v1730_v27 = vadd.f32 %v1667_v8, %v4783_v14 }
 0x13b   : > { %v3639_v53 = vpop.f32.mrf.mxu0  ;;  %v1873_v13 = vpop.f32.mrf.mxu1 }
 0x13c   : > { %v4834_v31 = vadd.f32 %v1857_v41, %v1730_v27  ;;  %v1733_v1 = vadd.f32 %v3639_v53, %v4790_v45 }
 0x13d   : > { %v1670_v57 = vpop.f32.mrf.mxu0  ;;  %v3675_v32 = vpop.f32.mrf.mxu1 }
 0x13e   : > { %v4837_v40 = vadd.f32 %v3671_v33, %v1733_v1  ;;  %v1731_v29 = vadd.f32 %v1670_v57, %v4797_v10 }
 0x13f   : > { %v3642_v62 = vpop.f32.mrf.mxu0  ;;  %v1876_v49 = vpop.f32.mrf.mxu1 }
 0x140   : > { %v4840_v16 = vadd.f32 %v1860_v30, %v1731_v29  ;;  %v1736_v3 = vadd.f32 %v3642_v62, %v4804_v63 }
 0x141   : > { %v1683_v56 = vpop.f32.mrf.mxu0  ;;  %v3678_v14 = vpop.f32.mrf.mxu1 }
 0x142   : > { %v4843_v36 = vadd.f32 %v3674_v34, %v1736_v3  ;;  %v1734_v47 = vadd.f32 %v1683_v56, %v1528_v43 }
 0x143   : > { %v3643_v7 = vpop.f32.mrf.mxu0  ;;  %v1889_v46 = vpop.f32.mrf.mxu1 }
 0x144   : > { %v4845_v45 = vadd.f32 %v1873_v13, %v1734_v47  ;;  %v1737_v39 = vadd.f32 %v3643_v7, %v1531_v12 }
 0x145   : > { %v1686_v11 = vpop.f32.mrf.mxu0  ;;  %v3679_v15 = vpop.f32.mrf.mxu1 }
 0x146   : > { %v4847_v59 = vadd.f32 %v3675_v32, %v1737_v39  ;;  %v1735_v10 = vadd.f32 %v1686_v11, %v1529_v44 }
 0x147   : > { %v3646_v55 = vpop.f32.mrf.mxu0  ;;  %v1892_v17 = vpop.f32.mrf.mxu1 }
 0x148   : > { %v4849_v38 = vadd.f32 %v1876_v49, %v1735_v10 }
 0x149   : > { %v1699_v63 = vpop.f32.mrf.mxu0  ;;  %v3682_v50 = vpop.f32.mrf.mxu1 }
 0x14a   : > { %v1738_v56 = vadd.f32 %v1699_v63, %v4816_v19 }
 0x14b   : > { %v3647_v26 = vpop.f32.mrf.mxu0  ;;  %v1905_v22 = vpop.f32.mrf.mxu1 }
 0x14c   : > { %v1741_v11 = vadd.f32 %v3647_v26, %v4819_v58 }
 0x14d   : > { %v1702_v42 = vpop.f32.mrf.mxu0  ;;  %v3683_v43 = vpop.f32.mrf.mxu1 }
 0x14e   : > { %v1739_v10 = vadd.f32 %v1702_v42, %v4822_v28 }
 0x14f   : > { %v3650_v23 = vpop.f32.mrf.mxu0  ;;  %v1908_v60 = vpop.f32.mrf.mxu1 }
 0x150   : > { %v1929_v19 = vadd.f32 %v1892_v17, %v1739_v10 }
 0x151   : > { %v1715_v20 = vpop.f32.mrf.mxu0  ;;  %v3734_v37 = vpop.f32.mrf.mxu1 }
 0x152   : > { %v1742_v12 = vadd.f32 %v1715_v20, %v1536_v2  ;;  %v1744_v20 = vadd.f32 %v3650_v23, %v4825_v35 }
 0x153   : > { %v3651_v5 = vpop.f32.mrf.mxu0  ;;  %v4851_v61 = vpop.f32.mrf.mxu1 }
 0x154   : > { %v4853_v51 = vadd.f32 %v1905_v22, %v1742_v12  ;;  %v1745_v44 = vadd.f32 %v3651_v5, %v1539_v48 }
 0x155   : > { %v1718_v25 = vpop.f32.mrf.mxu0  ;;  %v3735_v41 = vpop.f32.mrf.mxu1 }
 0x156   : > { %v4855_v4 = vadd.f32 %v3683_v43, %v1745_v44  ;;  %v1743_v21 = vadd.f32 %v1718_v25, %v1537_v52  ;;  %v1740_v52 = vadd.f32 %v3646_v55, %v4813_v54  ;;  %v1931_v44 = vadd.f32 %v3679_v15, %v1741_v11 }
 0x157   : > { %v3702_v33 = vpop.f32.mrf.mxu0  ;;  %v2250_v0 = vpop.f32.mrf.mxu1 }
 0x158   : > { %v4857_v6 = vadd.f32 %v1908_v60, %v1743_v21  ;;  %v1930_v39 = vadd.f32 %v3678_v14, %v1740_v52  ;;  %v1928_v60 = vadd.f32 %v1889_v46, %v1738_v56  ;;  %v2106_v12 = vadd.f32 %v3702_v33, %v4831_v9 }
 0x159   : > { %v2041_v30 = vpop.f32.mrf.mxu0  ;;  %v3738_v24 = vpop.f32.mrf.mxu1  ;;  %v1934_v46 = vadd.f32 %v3682_v50, %v1744_v20 }
 0x15a   : > { %v2104_v63 = vadd.f32 %v2041_v30, %v4834_v31  ;;  %v2312_v42 = vadd.f32 %v3734_v37, %v2106_v12 }
 0x15b   : > { %v3703_v8 = vpop.f32.mrf.mxu0  ;;  %v2263_v34 = vpop.f32.mrf.mxu1 }
 0x15c   : > { %v2107_v14 = vadd.f32 %v3703_v8, %v4837_v40  ;;  %v4877_v40 = vld [vmem:[%s5078_s4] ss:$0 sm:$0xff] }
 0x15d   : > { %v2044_v2 = vpop.f32.mrf.mxu0  ;;  %v3739_v27 = vpop.f32.mrf.mxu1 }
 0x15e   : > { %v2105_v58 = vadd.f32 %v2044_v2, %v4840_v16  ;;  %v2313_v8 = vadd.f32 %v3735_v41, %v2107_v14 }
 0x15f   : > { %v3706_v53 = vpop.f32.mrf.mxu0  ;;  %v2266_v13 = vpop.f32.mrf.mxu1 }
 0x160   : > { %v2110_v35 = vadd.f32 %v3706_v53, %v4843_v36  ;;  %v2310_v36 = vadd.f32 %v4851_v61, %v2104_v63 }
 0x161   : > { %v2057_v1 = vpop.f32.mrf.mxu0  ;;  %v3742_v57 = vpop.f32.mrf.mxu1 }
 0x162   : > { %v2108_v23 = vadd.f32 %v2057_v1, %v4845_v45  ;;  %v4880_v45 = vadd.f32 %v2250_v0, %v2105_v58  ;;  %v4883_v53 = vadd.f32 %v3738_v24, %v2110_v35 }
 0x163   : > { %v3707_v48 = vpop.f32.mrf.mxu0  ;;  %v2279_v32 = vpop.f32.mrf.mxu1 }
 0x164   : > { %v2111_v15 = vadd.f32 %v3707_v48, %v4847_v59 }
 0x165   : > { %v2060_v29 = vpop.f32.mrf.mxu0  ;;  %v3743_v62 = vpop.f32.mrf.mxu1 }
 0x166   : > { %v2109_v17 = vadd.f32 %v2060_v29, %v4849_v38  ;;  %v4889_v29 = vadd.f32 %v3739_v27, %v2111_v15 }
 0x167   : > { %v3710_v49 = vpop.f32.mrf.mxu0  ;;  %v2282_v3 = vpop.f32.mrf.mxu1 }
 0x168   : > { %v2114_v5 = vadd.f32 %v3710_v49, %v1930_v39  ;;  %v4891_v61 = vadd.f32 %v2266_v13, %v2109_v17 }
 0x169   : > { %v2073_v47 = vpop.f32.mrf.mxu0  ;;  %v3746_v7 = vpop.f32.mrf.mxu1 }
 0x16a   : > { %v2112_v25 = vadd.f32 %v2073_v47, %v1928_v60  ;;  %v2320_v9 = vadd.f32 %v3742_v57, %v2114_v5 }
 0x16b   : > { %v3711_v22 = vpop.f32.mrf.mxu0  ;;  %v2295_v43 = vpop.f32.mrf.mxu1 }
 0x16c   : > { %v2115_v21 = vadd.f32 %v3711_v22, %v1931_v44  ;;  %v2318_v33 = vadd.f32 %v2279_v32, %v2112_v25  ;;  %v4887_v32 = vadd.f32 %v2263_v34, %v2108_v23 }
 0x16d   : > { %v2076_v54 = vpop.f32.mrf.mxu0  ;;  %v3747_v55 = vpop.f32.mrf.mxu1 }
 0x16e   : > { %v2113_v50 = vadd.f32 %v2076_v54, %v1929_v19  ;;  %v2321_v41 = vadd.f32 %v3743_v62, %v2115_v21 }
 0x16f   : > { %v3714_v28 = vpop.f32.mrf.mxu0  ;;  %v4868_v26 = vpop.f32.mrf.mxu1 }
 0x170   : > { %v2118_v37 = vadd.f32 %v3714_v28, %v1934_v46 }
 0x171   : > { %v2089_v31 = vpop.f32.mrf.mxu0  ;;  %v3774_v16 = vpop.f32.mrf.mxu1 }
 0x172   : > { %v2510_v30 = vadd.f32 %v3774_v16, %v2320_v9  ;;  %v2116_v59 = vadd.f32 %v2089_v31, %v4853_v51  ;;  %v2319_v51 = vadd.f32 %v2282_v3, %v2113_v50  ;;  %v2324_v49 = vadd.f32 %v3746_v7, %v2118_v37  ;;  %v2887_v9 = vld [vmem:[%s4688_s7 + $0x3c] sm:$0xf] }
 0x173   : > { %v3715_v38 = vpop.f32.mrf.mxu0  ;;  %v2469_v2 = vpop.f32.mrf.mxu1 }
 0x174   : > { %v2119_v1 = vadd.f32 %v3715_v38, %v4855_v4  ;;  %v2533_v57 = vadd.f32 %v4877_v40, %v2510_v30  ;;  %v2508_v48 = vadd.f32 %v2469_v2, %v2318_v33  ;;  %v4893_v24 = vadd.f32 %v2295_v43, %v2116_v59  ;;  %v2880_v2 = vld [vmem:[%s4688_s7 + $0x30] sm:$0xf] }
 0x175   : > { %v2092_v0 = vpop.f32.mrf.mxu0  ;;  %v3775_v52 = vpop.f32.mrf.mxu1 }
 0x176   : > { %vm2549_vm14 = vcmp.gt.f32.partialorder %v2533_v57, 0.0  ;;  %v2565_v56 = vmul.f32 0.1, %v2533_v57  ;;  %v4895_v47 = vadd.f32 %v3747_v55, %v2119_v1  ;;  %v2531_v39 = vadd.f32 %v4877_v40, %v2508_v48 }
 0x177   : > { %v3766_v4 = vpop.f32.mrf.mxu0  ;;  %v2511_v34 = vadd.f32 %v3775_v52, %v2321_v41  ;;  %v2472_v11 = vpop.f32.mrf.mxu1  ;;  %v4899_v27 = vadd.f32 %v2092_v0, %v4857_v6 }
 0x178   : > { %v2502_v13 = vadd.f32 %v3766_v4, %v2312_v42  ;;  %v2581_v62 = vsel %vm2549_vm14, %v2533_v57, %v2565_v56  ;;  %v2509_v10 = vadd.f32 %v2472_v11, %v2319_v51  ;;  %vm2547_vm15 = vcmp.gt.f32.partialorder %v2531_v39, 0.0  ;;  %v2859_v56 = vld [vmem:[%s4688_s7 + $0xc] sm:$0xf] }
 0x179   : > { %v3342_v22 = vpack.c.bf16 %v2581_v62, %v2581_v62  ;;  %v2437_v3 = vpop.f32.mrf.mxu0  ;;  %v2563_v7 = vmul.f32 0.1, %v2531_v39  ;;  %v2534_v43 = vadd.f32 %v4877_v40, %v2511_v34  ;;  %v3778_v60 = vpop.f32.mrf.mxu1 }
 0x17a   : > { %v2525_v20 = vadd.f32 %v4877_v40, %v2502_v13  ;;  %v2500_v12 = vadd.f32 %v2437_v3, %v2310_v36  ;;  %v2532_v5 = vadd.f32 %v4877_v40, %v2509_v10  ;;  %v4904_v54 = vadd.f32 %v3778_v60, %v2324_v49 }
 0x17b   : > { %v2776_v6 = vshrl.u32 %v3342_v22, 16  ;;  %v2779_v55 = vshll.u32 %v3342_v22, 16  ;;  %v2579_v44 = vsel %vm2547_vm15, %v2531_v39, %v2563_v7  ;;  %v3767_v25 = vpop.f32.mrf.mxu0  ;;  %vm2550_vm0 = vcmp.gt.f32.partialorder %v2534_v43, 0.0  ;;  %v2852_v7 = vld [vmem:[%s4688_s7] sm:$0xf] }
 0x17c   : > { %vm2541_vm1 = vcmp.gt.f32.partialorder %v2525_v20, 0.0  ;;  %v2557_v19 = vmul.f32 0.1, %v2525_v20  ;;  %v2523_v63 = vadd.f32 %v4877_v40, %v2500_v12  ;;  %v3340_v14 = vpack.c.bf16 %v2579_v44, %v2579_v44 }
 0x17d   : > { %v4907_v58 = vrot.slane %v2776_v6, 7  ;;  %v2503_v28 = vadd.f32 %v3767_v25, %v2313_v8  ;;  %v2566_v46 = vmul.f32 0.1, %v2534_v43  ;;  %vm2548_vm2 = vcmp.gt.f32.partialorder %v2532_v5, 0.0  ;;  %v2440_v1 = vpop.f32.mrf.mxu0 }
 0x17e   : > { %v2573_v42 = vsel %vm2541_vm1, %v2525_v20, %v2557_v19  ;;  %vm2539_vm4 = vcmp.gt.f32.partialorder %v2523_v63, 0.0  ;;  %v2555_v23 = vmul.f32 0.1, %v2523_v63  ;;  %v2759_v15 = vshrl.u32 %v3340_v14, 16 }
 0x17f   : > { %v3334_v17 = vpack.c.bf16 %v2573_v42, %v2573_v42  ;;  %v2781_v21 = vor.u32 %v2779_v55, %v4907_v58  ;;  %v2782_v31 = vrot.slane %v4907_v58, 4  ;;  %v2762_v16 = vshll.u32 %v3340_v14, 16  ;;  %v3770_v3 = vpop.f32.mrf.mxu0 }
 0x180   : > { %v2571_v33 = vsel %vm2539_vm4, %v2523_v63, %v2555_v23  ;;  %v4918_v50 = vrot.slane %v2759_v15, 7  ;;  %v2526_v37 = vadd.f32 %v4877_v40, %v2503_v28  ;;  %v2582_v30 = vsel %vm2550_vm0, %v2534_v43, %v2566_v46  ;;  %v2891_v46 = vld [vmem:[%s4688_s7 + $0x44] sm:$0x1]  ;;  %v2863_v15 = vld [vmem:[%s4688_s7 + $0x14] sm:$0x1] }
 0x181   : > { %v2708_v36 = vshrl.u32 %v3334_v17, 16  ;;  %v2711_v8 = vshll.u32 %v3334_v17, 16  ;;  %v2888_v59 = vsel %vm4911_vm3, %v2781_v21, %v2887_v9  ;;  %v3332_v38 = vpack.c.bf16 %v2571_v33, %v2571_v33  ;;  %v2453_v23 = vpop.f32.mrf.mxu0 }
 0x182   : > { %2889 = vst [vmem:[%s4688_s7 + $0x3c] sm:$0xf] %v2888_v59  ;;  %v2764_v57 = vor.u32 %v2762_v16, %v4918_v50  ;;  %v2765_v48 = vrot.slane %v4918_v50, 4  ;;  %vm2542_vm6 = vcmp.gt.f32.partialorder %v2526_v37, 0.0  ;;  %v2558_v41 = vmul.f32 0.1, %v2526_v37 }
 0x183   : > { %v2710_v0 = vrot.slane %v2708_v36, 7  ;;  %v2691_v52 = vshrl.u32 %v3332_v38, 16  ;;  %v2694_v51 = vshll.u32 %v3332_v38, 16  ;;  %v3343_v49 = vpack.c.bf16 %v2582_v30, %v2582_v30 }
 0x184   : > { %v2881_v4 = vsel %vm4911_vm3, %v2764_v57, %v2880_v2  ;;  %v2574_v39 = vsel %vm2542_vm6, %v2526_v37, %v2558_v41  ;;  %v2501_v34 = vadd.f32 %v2440_v1, %v4880_v45  ;;  %v2564_v11 = vmul.f32 0.1, %v2532_v5  ;;  %v2485_v1 = vpop.f32.mrf.mxu1 }
 0x185   : > { %v2713_v13 = vor.u32 %v2711_v8, %v2710_v0  ;;  %v2714_v62 = vrot.slane %v2710_v0, 4  ;;  %v4932_v10 = vrot.slane %v2691_v52, 7  ;;  %2882 = vst [vmem:[%s4688_s7 + $0x30] sm:$0xf] %v2881_v4  ;;  %v3335_v22 = vpack.c.bf16 %v2574_v39, %v2574_v39 }
 0x186   : > { %v2784_v43 = vshrl.u32 %v3343_v49, 16  ;;  %v2787_v60 = vshll.u32 %v3343_v49, 16  ;;  %v2524_v20 = vadd.f32 %v4877_v40, %v2501_v34  ;;  %v2580_v12 = vsel %vm2548_vm2, %v2532_v5, %v2564_v11  ;;  %v2884_v49 = vld [vmem:[%s4688_s7 + $0x38] sm:$0x1]  ;;  %v2856_v34 = vld [vmem:[%s4688_s7 + $0x8] sm:$0x1] }
 0x187   : > { %v2860_v45 = vsel %vm4911_vm3, %v2713_v13, %v2859_v56  ;;  %v2696_v6 = vor.u32 %v2694_v51, %v4932_v10  ;;  %v2697_v55 = vrot.slane %v4932_v10, 4  ;;  %v2716_v44 = vshrl.u32 %v3335_v22, 16 }
 0x188   : > { %2861 = vst [vmem:[%s4688_s7 + $0xc] sm:$0xf] %v2860_v45  ;;  %v2719_v25 = vshll.u32 %v3335_v22, 16  ;;  %v2786_v19 = vrot.slane %v2784_v43, 7  ;;  %vm2540_vm7 = vcmp.gt.f32.partialorder %v2524_v20, 0.0  ;;  %v3341_v42 = vpack.c.bf16 %v2580_v12, %v2580_v12 }
 0x189   : > { %v2556_v63 = vmul.f32 0.1, %v2524_v20  ;;  %v2853_v14 = vsel %vm4911_vm3, %v2696_v6, %v2852_v7  ;;  %v2718_v28 = vrot.slane %v2716_v44, 7  ;;  %v2506_v9 = vadd.f32 %v3770_v3, %v4883_v53  ;;  %v3779_v3 = vpop.f32.mrf.mxu1 }
 0x18a   : > { %2854 = vst [vmem:[%s4688_s7] sm:$0xf] %v2853_v14  ;;  %v2789_v17 = vor.u32 %v2787_v60, %v2786_v19  ;;  %v2791_v21 = vrot.slane %v2786_v19, 4  ;;  %v2537_v33 = vadd.f32 %v4877_v40, %v4904_v54  ;;  %v2767_v8 = vshrl.u32 %v3341_v42, 16 }
 0x18b   : > { %v2572_v16 = vsel %vm2540_vm7, %v2524_v20, %v2556_v63  ;;  %v2721_v37 = vor.u32 %v2719_v25, %v2718_v28  ;;  %v2723_v30 = vrot.slane %v2718_v28, 4  ;;  %v2770_v38 = vshll.u32 %v3341_v42, 16  ;;  %v2873_v28 = vld [vmem:[%s4688_s7 + $0x24] sm:$0xf] }
 0x18c   : > { %v3333_v36 = vpack.c.bf16 %v2572_v16, %v2572_v16  ;;  %v2790_v53 = vsel %vm4947_vm8, %v2782_v31, %v2789_v17  ;;  %v2892_v59 = vsel %vm4696_vm10, %v2791_v21, %v2891_v46  ;;  %v2529_v2 = vadd.f32 %v4877_v40, %v2506_v9  ;;  %v3771_v31 = vpop.f32.mrf.mxu0  ;;  %v2901_v17 = vld [vmem:[%s4688_s7 + $0x54] sm:$0xf] }
 0x18d   : > { %v2722_v54 = vsel %vm4947_vm8, %v2714_v62, %v2721_v37  ;;  %v2864_v57 = vsel %vm4696_vm10, %v2723_v30, %v2863_v15  ;;  %2890 = vst [vmem:[%s4688_s7 + $0x40] sm:$0xf] %v2790_v53  ;;  %2893 = vst [vmem:[%s4688_s7 + $0x44] sm:$0x1] %v2892_v59  ;;  %v2769_v0 = vrot.slane %v2767_v8, 7  ;;  %vm2553_vm11 = vcmp.gt.f32.partialorder %v2537_v33, 0.0 }
 0x18e   : > { %v2699_v58 = vshrl.u32 %v3333_v36, 16  ;;  %v2702_v41 = vshll.u32 %v3333_v36, 16  ;;  %2862 = vst [vmem:[%s4688_s7 + $0x10] sm:$0xf] %v2722_v54  ;;  %2865 = vst [vmem:[%s4688_s7 + $0x14] sm:$0x1] %v2864_v57  ;;  %v2504_v4 = vadd.f32 %v2453_v23, %v4887_v32  ;;  %v2512_v39 = vadd.f32 %v2485_v1, %v4893_v24  ;;  %v2456_v44 = vpop.f32.mrf.mxu0 }
 0x18f   : > { %vm2545_vm9 = vcmp.gt.f32.partialorder %v2529_v2, 0.0  ;;  %v2561_v52 = vmul.f32 0.1, %v2529_v2  ;;  %v2569_v56 = vmul.f32 0.1, %v2537_v33  ;;  %v2772_v11 = vor.u32 %v2770_v38, %v2769_v0 }
 0x190   : > { %v2701_v51 = vrot.slane %v2699_v58, 7  ;;  %v2774_v13 = vrot.slane %v2769_v0, 4  ;;  %v2507_v22 = vadd.f32 %v3771_v31, %v4889_v29  ;;  %v2527_v45 = vadd.f32 %v4877_v40, %v2504_v4  ;;  %v2866_v58 = vld [vmem:[%s4688_s7 + $0x18] sm:$0xf] }
 0x191   : > { %v2577_v62 = vsel %vm2545_vm9, %v2529_v2, %v2561_v52  ;;  %v2585_v20 = vsel %vm2553_vm11, %v2537_v33, %v2569_v56  ;;  %v2773_v32 = vsel %vm4947_vm8, %v2765_v48, %v2772_v11  ;;  %v2323_v29 = vadd.f32 %v4868_v26, %v4899_v27  ;;  %v2488_v27 = vpop.f32.mrf.mxu1  ;;  %v2894_v11 = vld [vmem:[%s4688_s7 + $0x48] sm:$0xf] }
 0x192   : > { %v2704_v7 = vor.u32 %v2702_v41, %v2701_v51  ;;  %v2706_v43 = vrot.slane %v2701_v51, 4  ;;  %v3338_v60 = vpack.c.bf16 %v2577_v62, %v2577_v62  ;;  %v2885_v24 = vsel %vm4696_vm10, %v2774_v13, %v2884_v49  ;;  %2883 = vst [vmem:[%s4688_s7 + $0x34] sm:$0xf] %v2773_v32 }
 0x193   : > { %v3346_v12 = vpack.c.bf16 %v2585_v20, %v2585_v20  ;;  %2886 = vst [vmem:[%s4688_s7 + $0x38] sm:$0x1] %v2885_v24  ;;  %vm2543_vm12 = vcmp.gt.f32.partialorder %v2527_v45, 0.0  ;;  %v2559_v26 = vmul.f32 0.1, %v2527_v45  ;;  %v2530_v14 = vadd.f32 %v4877_v40, %v2507_v22 }
 0x194   : > { %v2705_v6 = vsel %vm4947_vm8, %v2697_v55, %v2704_v7  ;;  %v2857_v50 = vsel %vm4696_vm10, %v2706_v43, %v2856_v34  ;;  %v2742_v48 = vshrl.u32 %v3338_v60, 16  ;;  %v2745_v25 = vshll.u32 %v3338_v60, 16  ;;  %v2877_v60 = vld [vmem:[%s4688_s7 + $0x2c] sm:$0x1] }
 0x195   : > { %2855 = vst [vmem:[%s4688_s7 + $0x4] sm:$0xf] %v2705_v6  ;;  %2858 = vst [vmem:[%s4688_s7 + $0x8] sm:$0x1] %v2857_v50  ;;  %v2810_v19 = vshrl.u32 %v3346_v12, 16  ;;  %v2813_v63 = vshll.u32 %v3346_v12, 16  ;;  %v2535_v55 = vadd.f32 %v4877_v40, %v2512_v39  ;;  %v2575_v42 = vsel %vm2543_vm12, %v2527_v45, %v2559_v26 }
 0x196   : > { %v4996_v10 = vrot.slane %v2742_v48, 7  ;;  %v2515_v9 = vadd.f32 %v3779_v3, %v4895_v47  ;;  %v2505_v23 = vadd.f32 %v2456_v44, %v4891_v61  ;;  %v3336_v21 = vpack.c.bf16 %v2575_v42, %v2575_v42 }
 0x197   : > { %v5001_v46 = vrot.slane %v2810_v19, 7  ;;  %vm2551_vm13 = vcmp.gt.f32.partialorder %v2535_v55, 0.0  ;;  %v2513_v16 = vadd.f32 %v2488_v27, %v2323_v29  ;;  %v2567_v37 = vmul.f32 0.1, %v2535_v55  ;;  %v2905_v19 = vld [vmem:[%s4688_s7 + $0x5c] sm:$0x1] }
 0x198   : > { %v2747_v15 = vor.u32 %v2745_v25, %v4996_v10  ;;  %vm2546_vm14 = vcmp.gt.f32.partialorder %v2530_v14, 0.0  ;;  %v2725_v36 = vshrl.u32 %v3336_v21, 16  ;;  %v2728_v8 = vshll.u32 %v3336_v21, 16 }
 0x199   : > { %v2815_v33 = vor.u32 %v2813_v63, %v5001_v46  ;;  %v2562_v47 = vmul.f32 0.1, %v2530_v14  ;;  %v2583_v53 = vsel %vm2551_vm13, %v2535_v55, %v2567_v37  ;;  %v2538_v59 = vadd.f32 %v4877_v40, %v2515_v9  ;;  %v2870_v9 = vld [vmem:[%s4688_s7 + $0x20] sm:$0x1] }
 0x19a   : > { %v2874_v30 = vsel %vm4911_vm3, %v2747_v15, %v2873_v28  ;;  %v2528_v38 = vadd.f32 %v4877_v40, %v2505_v23  ;;  %v5016_v2 = vrot.slane %v2725_v36, 7  ;;  %v3344_v1 = vpack.c.bf16 %v2583_v53, %v2583_v53 }
 0x19b   : > { %2875 = vst [vmem:[%s4688_s7 + $0x24] sm:$0xf] %v2874_v30  ;;  %v2902_v61 = vsel %vm4911_vm3, %v2815_v33, %v2901_v17  ;;  %v2578_v54 = vsel %vm2546_vm14, %v2530_v14, %v2562_v47  ;;  %v2536_v57 = vadd.f32 %v4877_v40, %v2513_v16  ;;  %vm2554_vm15 = vcmp.gt.f32.partialorder %v2538_v59, 0.0  ;;  %v2898_v16 = vld [vmem:[%s4688_s7 + $0x50] sm:$0x1] }
 0x19c   : > { %2903 = vst [vmem:[%s4688_s7 + $0x54] sm:$0xf] %v2902_v61  ;;  %v3339_v41 = vpack.c.bf16 %v2578_v54, %v2578_v54  ;;  %v2570_v31 = vmul.f32 0.1, %v2538_v59  ;;  %v2730_v0 = vor.u32 %v2728_v8, %v5016_v2  ;;  %v2793_v52 = vshrl.u32 %v3344_v1, 16 }
 0x19d   : > { %vm2544_vm0 = vcmp.gt.f32.partialorder %v2528_v38, 0.0  ;;  %v2796_v51 = vshll.u32 %v3344_v1, 16  ;;  %v2560_v4 = vmul.f32 0.1, %v2528_v38  ;;  %vm2552_vm1 = vcmp.gt.f32.partialorder %v2536_v57, 0.0 }
 0x19e   : > { %v2750_v49 = vshrl.u32 %v3339_v41, 16  ;;  %v2586_v56 = vsel %vm2554_vm15, %v2538_v59, %v2570_v31  ;;  %v2867_v39 = vsel %vm4911_vm3, %v2730_v0, %v2866_v58  ;;  %v2795_v34 = vrot.slane %v2793_v52, 7 }
 0x19f   : > { %v3347_v40 = vpack.c.bf16 %v2586_v56, %v2586_v56  ;;  %2868 = vst [vmem:[%s4688_s7 + $0x18] sm:$0xf] %v2867_v39  ;;  %v2753_v62 = vshll.u32 %v3339_v41, 16  ;;  %v2576_v22 = vsel %vm2544_vm0, %v2528_v38, %v2560_v4  ;;  %v2568_v3 = vmul.f32 0.1, %v2536_v57 }
 0x1a0   : > { %v2752_v13 = vrot.slane %v2750_v49, 7  ;;  %v2748_v7 = vrot.slane %v4996_v10, 4  ;;  %v2798_v43 = vor.u32 %v2796_v51, %v2795_v34  ;;  %v3337_v12 = vpack.c.bf16 %v2576_v22, %v2576_v22 }
 0x1a1   : > { %v2818_v20 = vshrl.u32 %v3347_v40, 16  ;;  %v2584_v45 = vsel %vm2552_vm1, %v2536_v57, %v2568_v3  ;;  %v2821_v50 = vshll.u32 %v3347_v40, 16  ;;  %v2816_v27 = vrot.slane %v5001_v46, 4 }
 0x1a2   : > { %v2755_v32 = vor.u32 %v2753_v62, %v2752_v13  ;;  %v2757_v24 = vrot.slane %v2752_v13, 4  ;;  %v2895_v29 = vsel %vm4911_vm3, %v2798_v43, %v2894_v11  ;;  %v3345_v48 = vpack.c.bf16 %v2584_v45, %v2584_v45 }
 0x1a3   : > { %v2820_v6 = vrot.slane %v2818_v20, 7  ;;  %2896 = vst [vmem:[%s4688_s7 + $0x48] sm:$0xf] %v2895_v29  ;;  %v2733_v26 = vshrl.u32 %v3337_v12, 16  ;;  %v2736_v14 = vshll.u32 %v3337_v12, 16  ;;  %v2731_v46 = vrot.slane %v5016_v2, 4 }
 0x1a4   : > { %v2756_v44 = vsel %vm4947_vm8, %v2748_v7, %v2755_v32  ;;  %v2878_v25 = vsel %vm4696_vm10, %v2757_v24, %v2877_v60  ;;  %v2801_v63 = vshrl.u32 %v3345_v48, 16  ;;  %v2804_v15 = vshll.u32 %v3345_v48, 16 }
 0x1a5   : > { %2876 = vst [vmem:[%s4688_s7 + $0x28] sm:$0xf] %v2756_v44  ;;  %2879 = vst [vmem:[%s4688_s7 + $0x2c] sm:$0x1] %v2878_v25  ;;  %v2823_v35 = vor.u32 %v2821_v50, %v2820_v6  ;;  %v2825_v10 = vrot.slane %v2820_v6, 4  ;;  %v2735_v55 = vrot.slane %v2733_v26, 7 }
 0x1a6   : > { %v2803_v23 = vrot.slane %v2801_v63, 7  ;;  %v2799_v33 = vrot.slane %v2795_v34, 4 }
 0x1a7   : > { %v2824_v28 = vsel %vm4947_vm8, %v2816_v27, %v2823_v35  ;;  %v2906_v42 = vsel %vm4696_vm10, %v2825_v10, %v2905_v19  ;;  %v2738_v17 = vor.u32 %v2736_v14, %v2735_v55  ;;  %v2740_v21 = vrot.slane %v2735_v55, 4 }
 0x1a8   : > { %2904 = vst [vmem:[%s4688_s7 + $0x58] sm:$0xf] %v2824_v28  ;;  %2907 = vst [vmem:[%s4688_s7 + $0x5c] sm:$0x1] %v2906_v42  ;;  %v2806_v37 = vor.u32 %v2804_v15, %v2803_v23  ;;  %v2808_v30 = vrot.slane %v2803_v23, 4 }
 0x1a9   : > { %v2739_v36 = vsel %vm4947_vm8, %v2731_v46, %v2738_v17  ;;  %v2871_v8 = vsel %vm4696_vm10, %v2740_v21, %v2870_v9 }
 0x1aa   : > { %2869 = vst [vmem:[%s4688_s7 + $0x1c] sm:$0xf] %v2739_v36  ;;  %2872 = vst [vmem:[%s4688_s7 + $0x20] sm:$0x1] %v2871_v8  ;;  %v2807_v47 = vsel %vm4947_vm8, %v2799_v33, %v2806_v37  ;;  %v2899_v61 = vsel %vm4696_vm10, %v2808_v30, %v2898_v16 }
 0x1ab   : > { %2897 = vst [vmem:[%s4688_s7 + $0x4c] sm:$0xf] %v2807_v47  ;;  %2900 = vst [vmem:[%s4688_s7 + $0x50] sm:$0x1] %v2899_v61 }
 0x1ac PF: > { %s15_s22 = sadd.s32 1, %s3959_s22   ;;  %s5095_s18 = smov %s3951_s20 }
 0x1ad   : > { %p12_p11 = scmp.ge.s32.totalorder %s15_s22, 6   ;;  %s5096_s19 = smov %s3955_s21 }
 0x1ae   : > { %s5097_s20 = smov %s5100_s23  ;;  %s5098_s21 = smov %s5104_s24 }
 0x1af   :  { %14 = sbr.rel (!%p12_p11) target bundleno = 3 (0x3), region = 86 }

// kernel: _lambda_.4
= control target key start
LH: loop header
LB: loop body
LE: loop exit
PB: predicated region body
PF: predicated region fallthrough
CT: control target
= control target key end

     0   :  { %s6608_s24 = smov 0   ;;  %s6610_s25 = smov 0   ;;  %s8572_s0 = inlined_call_operand.vmem [shape: bf16[2,2,8,18,128], index: 0, kind: input, shape index: {}, may-alias: {0,1,2}]   ;;  %s8573_s1 = inlined_call_operand.vmem [shape: bf16[2,2,8,18,128], index: 1, kind: input, shape index: {}, may-alias: {0,1,2}]   ;;  %s8574_s2 = inlined_call_operand.vmem [shape: bf16[2,2,8,18,128], index: 2, kind: input, shape index: {}, may-alias: {0,1,2}]   ;;  %s8575_s3 = inlined_call_operand.vmem [shape: bf16[128,128], index: 3, kind: input, shape index: {}]   ;;  %s8576_s4 = inlined_call_operand.vmem [shape: f32[1,128], index: 4, kind: input, shape index: {}]   ;;  %s8577_s5 = inlined_call_operand.vmem [shape: bf16[9,128,128], index: 5, kind: input, shape index: {}]   ;;  %s8578_s6 = inlined_call_operand.vmem [shape: f32[1,128], index: 6, kind: input, shape index: {}]   ;;  %s8579_s7 = inlined_call_operand.vmem [shape: bf16[2,2,8,18,128], index: 7, kind: output, shape index: {}]  }
   0x1   :  { %s6612_s26 = smov 0   ;;  %s6614_s27 = smov 0  }
   0x2   :  { %s6616_s28 = smov 0  }
   0x3 LB: > { %s26_s29 = sadd.s32 1, %s6555_s26  ;;  %s29_s30 = sadd.s32 1, %s6559_s27  ;;  %s6563_s28 = sphi %s6616_s28, %s17_s28   ;;  %s6559_s27 = sphi %s6614_s27, %s8677_s27   ;;  %s6555_s26 = sphi %s6612_s26, %s8676_s26   ;;  %s6551_s25 = sphi %s6610_s25, %s8675_s25   ;;  %s6547_s24 = sphi %s6608_s24, %s8674_s24  }
   0x4   : > { %p27_p0 = scmp.ge.s32.totalorder %s26_s29, 2  ;;  %p5491_p1 = scmp.ge.s32.totalorder %s6563_s28, 1 }
   0x5   : > { %p314_p2 = scmp.lt.s32.totalorder %s6563_s28, 5 }
   0x6   : > { %s8679_s29 = smov (%p27_p0, %s26_s29), 0  ;;  %s8681_s30 = smov (!%p27_p0, %s29_s30), %s6559_s27 }
   0x7   : > { %p315_p3 = pnand %p5491_p1, %p314_p2  ;;  %p31_p4 = scmp.ge.s32.totalorder %s8681_s30, 2 }
   0x9   : > { %s8683_s30 = smov (%p31_p4, %s8681_s30), 0  ;;  %318 = sbr.rel (%p315_p3) target bundleno = 732 (0x2dc), region = 48 }
   0xe   : > { %v6396_v0 = vld [vmem:[%s8575_s3 + $0x38] sm:$0xff]   ;;  %p379_p5 = scmp.lt.s32.totalorder %s6551_s25, 1  ;;  %v6397_v1 = vld [vmem:[%s8575_s3 + $0x30] sm:$0xff]   ;;  %p381_p6 = scmp.lt.s32.totalorder %s6547_s24, 1  ;;  %v6398_v2 = vld [vmem:[%s8575_s3 + $0x28] sm:$0xff]   ;;  %v576_v3 = vlaneseq }
   0xf   : > { %6006 = vmatprep.subr.bf16.mxu0 %v6396_v0  ;;  %s5493_s17 = sadd.s32 4294967295, %s6547_s24  ;;  %v6399_v4 = vld [vmem:[%s8575_s3 + $0x20] sm:$0xff]   ;;  %v6565_v5 = vmov 1966171168   ;;  %v6400_v7 = vld [vmem:[%s8575_s3 + $0x18] sm:$0xff]   ;;  %p478_p9 = scmp.gt.s32.totalorder %s6547_s24, 0 }
  0x10   : > { %s8685_s25 = smov (!%p379_p5, %s6551_s25), 1  ;;  %6007 = vmatpush3.bf16.msra.mxu0 %v6396_v0  ;;  %p389_p7 = scmp.gt.s32.totalorder %s5493_s17, 0  ;;  %v574_v6 = vunpack.c.l.s4 %v6565_v5  ;;  %v6673_v8 = vshrl.u32 %v576_v3, 7  ;;  %v6401_v28 = vld [vmem:[%s8575_s3 + $0x10] sm:$0xff]   ;;  %v6402_v36 = vld [vmem:[%s8575_s3 + $0x8] sm:$0xff]   ;;  %v6403_v53 = vld [vmem:[%s8575_s3] sm:$0xff]  }
  0x11   : > { %s382_s12 = scalar_select %p381_p6, %s6547_s24, 1  ;;  %6008 = vmatprep.subr.bf16.mxu0 %v6397_v1 }
  0x12   : > { %s6653_s15 = smul.u32 48, %s8685_s25  ;;  %p5494_p8 = scmp.lt.s32.totalorder %s5493_s17, 1  ;;  %v575_v12 = vunpack.c.0.s8 %v574_v6  ;;  %vm2428_vm8 = vcmp.ge.s32.totalorder %v6673_v8, 1 }
  0x13   : > { %s6350_s16 = smul.u32 24, %s382_s12  ;;  %s404_s13 = sadd.s32 1, %s6547_s24 }
  0x14   : > { %6009 = vmatpush3.bf16.msra.mxu0 %v6397_v1  ;;  %s390_s10 = scalar_select %p389_p7, %s5493_s17, 0  ;;  %v6698_v26 = vsub.s32 %v575_v12, %v6673_v8 }
  0x15   : > { %s6657_s18 = sadd.s32 %s6653_s15, %s6350_s16  ;;  %6010 = vmatprep.subr.bf16.mxu0 %v6398_v2  ;;  %p6712_p10 = scmp.lt.s32.totalorder %s404_s13, 1 }
  0x16   : > { %s5492_s21 = sshll.u32 %s6657_s18, 2  ;;  %s8687_s10 = smov (!%p5494_p8, %s390_s10), 1 }
  0x17   : > { %s6668_s25 = scalar_lea.vmem %s8572_s0, %s5492_s21  ;;  %s5416_s12 = smul.u32 24, %s8687_s10 }
  0x18   : > { %v429_v9 = vld [vmem:[%s6668_s25] sm:$0xff]   ;;  %v431_v10 = vld [vmem:[%s6668_s25 + $0x8] sm:$0x1]  ;;  %v432_v11 = vld [vmem:[%s6668_s25 + $0xc] sm:$0xff]   ;;  %6011 = vmatpush3.bf16.msra.mxu0 %v6398_v2  ;;  %s482_s11 = scalar_select %p478_p9, 1, 0 }
  0x19   : > { %454 = vst [vmem:[#allocation2 + $0xc] sm:$0xff] %v429_v9   ;;  %456 = vst [vmem:[#allocation2 + $0x14] sm:$0x1] %v431_v10  ;;  %v434_v13 = vld [vmem:[%s6668_s25 + $0x14] sm:$0x1]  ;;  %v435_v14 = vld [vmem:[%s6668_s25 + $0x18] sm:$0xff]   ;;  %6012 = vmatprep.subr.bf16.mxu0 %v6399_v4  ;;  %s5418_s17 = sadd.s32 %s6653_s15, %s5416_s12 }
  0x1a   : > { %457 = vst [vmem:[#allocation2 + $0x18] sm:$0xff] %v432_v11   ;;  %v437_v15 = vld [vmem:[%s6668_s25 + $0x20] sm:$0x1]  ;;  %459 = vst [vmem:[#allocation2 + $0x20] sm:$0x1] %v434_v13  ;;  %v438_v16 = vld [vmem:[%s6668_s25 + $0x24] sm:$0xff]   ;;  %v483_v25 = vstv %s482_s11 }
  0x1b   : > { %460 = vst [vmem:[#allocation2 + $0x24] sm:$0xff] %v435_v14   ;;  %462 = vst [vmem:[#allocation2 + $0x2c] sm:$0x1] %v437_v15  ;;  %v440_v17 = vld [vmem:[%s6668_s25 + $0x2c] sm:$0x1]  ;;  %v441_v18 = vld [vmem:[%s6668_s25 + $0x30] sm:$0xff]  }
  0x1c   : > { %463 = vst [vmem:[#allocation2 + $0x30] sm:$0xff] %v438_v16   ;;  %465 = vst [vmem:[#allocation2 + $0x38] sm:$0x1] %v440_v17  ;;  %v443_v19 = vld [vmem:[%s6668_s25 + $0x38] sm:$0x1]  ;;  %v444_v20 = vld [vmem:[%s6668_s25 + $0x3c] sm:$0xff]   ;;  %6013 = vmatpush3.bf16.msra.mxu0 %v6399_v4 }
  0x1d   : > { %466 = vst [vmem:[#allocation2 + $0x3c] sm:$0xff] %v441_v18   ;;  %v447_v21 = vld [vmem:[%s6668_s25 + $0x48] sm:$0xff]   ;;  %468 = vst [vmem:[#allocation2 + $0x44] sm:$0x1] %v443_v19  ;;  %v446_v22 = vld [vmem:[%s6668_s25 + $0x44] sm:$0x1]  ;;  %6014 = vmatprep.subr.bf16.mxu0 %v6400_v7 }
  0x1e   : > { %469 = vst [vmem:[#allocation2 + $0x48] sm:$0xff] %v444_v20   ;;  %472 = vst [vmem:[#allocation2 + $0x54] sm:$0xff] %v447_v21   ;;  %v449_v23 = vld [vmem:[%s6668_s25 + $0x50] sm:$0x1]  ;;  %v450_v24 = vld [vmem:[%s6668_s25 + $0x54] sm:$0xff]   ;;  %vm6706_vm0 = vcmp.eq.s32.totalorder %v483_v25, 1 }
  0x1f   : > { %471 = vst [vmem:[#allocation2 + $0x50] sm:$0x1] %v446_v22  ;;  %474 = vst [vmem:[#allocation2 + $0x5c] sm:$0x1] %v449_v23  ;;  %v452_v27 = vld [vmem:[%s6668_s25 + $0x5c] sm:$0x1] }
  0x20   : > { %475 = vst [vmem:[#allocation2 + $0x60] sm:$0xff] %v450_v24   ;;  %477 = vst [vmem:[#allocation2 + $0x68] sm:$0x1] %v452_v27  ;;  %s5499_s19 = sshll.u32 %s5418_s17, 2  ;;  %6015 = vmatpush3.bf16.msra.mxu0 %v6400_v7  ;;  %s8689_s13 = smov (!%p6712_p10, %s404_s13), 1  ;;  %v6771_v11 = vld [vmem:[%s8577_s5 + $0xb8] sm:$0xff]  }
  0x21   : > { %s5420_s25 = scalar_lea.vmem %s8573_s1, %s5499_s19  ;;  %v6501_v30 = vld.sshfl [vmem:[#allocation2 + $0xc] sm:$0x33 pattern:$0x75316420]  ;;  %6016 = vmatprep.subr.bf16.mxu0 %v6401_v28  ;;  %s8691_s13 = smov (!%p6712_p10, %s8689_s13), 1 }
  0x22   : > { %v6502_v31 = vld.sshfl [vmem:[#allocation2 + $0x10] sm:$0x33 pattern:$0x75316420]  ;;  %v5505_v33 = vld [vmem:[%s5420_s25 + $0x54] sm:$0xf]  ;;  %v634_v41 = vcombine.high %v6501_v30, %v6501_v30  ;;  %v6729_v42 = vrot.slane %v6501_v30, %v6698_v26 }
  0x23   : > { %v6503_v32 = vld.sshfl [vmem:[#allocation2 + $0x14] sm:$0x1 pattern:$0x75316420]  ;;  %v5506_v34 = vld [vmem:[%s5420_s25 + $0x58] sm:$0xf]  ;;  %v658_v43 = vcombine.high %v6502_v31, %v6502_v31  ;;  %v665_v44 = vrot.slane %v6502_v31, %v6698_v26 }
  0x24   : > { %v5507_v35 = vld [vmem:[%s5420_s25 + $0x5c] sm:$0x1]  ;;  %v485_v37 = vsel %vm6706_vm0, %v5505_v33, 0  ;;  %v486_v38 = vsel %vm6706_vm0, %v5506_v34, 0  ;;  %v688_v47 = vrot.slane %v6503_v32, %v6698_v26  ;;  %6017 = vmatpush3.bf16.msra.mxu0 %v6401_v28  ;;  %v648_v48 = vrot.slane %v634_v41, %v6698_v26  ;;  %s6352_s16 = smul.u32 24, %s8691_s13  ;;  %p2437_p11 = scmp.eq.s32.totalorder %s6547_s24, 0 }
  0x25   : > { %v487_v39 = vsel %vm6706_vm0, %v5507_v35, 0  ;;  %v6504_v40 = vld.sshfl [vmem:[#allocation2 + $0x18] sm:$0x33 pattern:$0x75316420]  ;;  %v649_v49 = vcombine.high %v6729_v42, %v6729_v42  ;;  %v672_v50 = vrot.slane %v658_v43, %v6698_v26  ;;  %v673_v51 = vcombine.high %v665_v44, %v665_v44  ;;  %6018 = vmatprep.subr.bf16.mxu0 %v6402_v36  ;;  %p2448_p12 = scmp.eq.s32.totalorder %s6547_s24, 1  ;;  %s7890_s24 = scalar_lea.vmem %s8579_s7, %s5492_s21 }
  0x26   : > { %488 = vst [vmem:[#allocation2] sm:$0xf] %v485_v37  ;;  %489 = vst [vmem:[#allocation2 + $0x4] sm:$0xf] %v486_v38  ;;  %v696_v54 = vcombine.high %v6504_v40, %v6504_v40  ;;  %v703_v55 = vrot.slane %v6504_v40, %v6698_v26  ;;  %v650_v58 = vcombine.high %v648_v48, %v648_v48  ;;  %s413_s17 = sadd.s32 %s6352_s16, %s6653_s15 }
  0x27   : > { %490 = vst [vmem:[#allocation2 + $0x8] sm:$0x1] %v487_v39  ;;  %v6505_v45 = vld.sshfl [vmem:[#allocation2 + $0x1c] sm:$0x33 pattern:$0x75316420]  ;;  %v6752_v59 = vcombine.low %v648_v48, %v649_v49  ;;  %v1260_v60 = vcombine.low %v672_v50, %v673_v51  ;;  %v674_v61 = vcombine.high %v672_v50, %v672_v50 }
  0x28   : > { %v6732_v46 = vld.sshfl [vmem:[#allocation2 + $0x20] sm:$0x1 pattern:$0x75316420]  ;;  %v720_v56 = vcombine.high %v6505_v45, %v6505_v45  ;;  %v6750_v57 = vrot.slane %v6505_v45, %v6698_v26  ;;  %v710_v62 = vrot.slane %v696_v54, %v6698_v26  ;;  %6019 = vmatpush3.bf16.msra.mxu0 %v6402_v36  ;;  %v1259_v1 = vcombine.low %v650_v58, %v665_v44  ;;  %s6788_s13 = scalar_select %p381_p6, 1, 0 }
  0x29   : > { %v6507_v52 = vld.sshfl [vmem:[#allocation2 + $0x24] sm:$0x33 pattern:$0x75316420]  ;;  %v750_v0 = vrot.slane %v6732_v46, %v6698_v26  ;;  %v1274_v2 = vrot.slane %v6752_v59, %v6698_v26  ;;  %v1288_v3 = vrot.slane %v1260_v60, %v6698_v26  ;;  %v1306_v4 = vcombine.low %v674_v61, %v688_v47  ;;  %6020 = vmatprep.subr.bf16.mxu0 %v6403_v53  ;;  %s6794_s15 = sshll.u32 %s413_s17, 2 }
  0x2a   : > { %v6756_v63 = vrot.slane %v720_v56, %v6698_v26  ;;  %v1307_v6 = vcombine.low %v703_v55, %v710_v62  ;;  %v5517_v7 = vcombine.high %v703_v55, %v710_v62  ;;  %v758_v10 = vcombine.high %v6507_v52, %v6507_v52  ;;  %v6508_v39 = vld.sshfl [vmem:[#allocation2 + $0x28] sm:$0x33 pattern:$0x75316420]  ;;  %s415_s22 = scalar_lea.vmem %s8574_s2, %s6794_s15 }
  0x2b   : > { %v1281_v15 = vrot.slane %v1259_v1, %v6698_v26  ;;  %v1316_v16 = vrot.slane %v1306_v4, %v6698_v26  ;;  %v765_v29 = vrot.slane %v6507_v52, %v6698_v26  ;;  %v6509_v48 = vld.sshfl [vmem:[#allocation2 + $0x2c] sm:$0x1 pattern:$0x75316420]  ;;  %v789_v62 = vrot.slane %v6508_v39, %v6698_v26  ;;  %s6990_s12 = scalar_select %p2437_p11, 1, 0 }
  0x2c   : > { %v1309_v9 = vcombine.low %v6750_v57, %v6756_v63  ;;  %v1323_v20 = vrot.slane %v1307_v6, %v6698_v26  ;;  %v1330_v21 = vrot.slane %v5517_v7, %v6698_v26  ;;  %6021 = vmatpush3.bf16.msra.mxu0 %v6403_v53  ;;  %v772_v30 = vrot.slane %v758_v10, %v6698_v26  ;;  %v6510_v52 = vld.sshfl [vmem:[#allocation2 + $0x30] sm:$0x33 pattern:$0x75316420]  ;;  %s7486_s17 = scalar_select %p2448_p12, 1, 0 }
  0x2d   : > { %v5508_v5 = vld.sshfl [vmem:[#allocation2] sm:$0x33 pattern:$0x75316420]  ;;  %v1290_v24 = vcombine.low %v1281_v15, %v1288_v3  ;;  %6110 = vmatprep.subr.bf16.mxu0 %v6771_v11  ;;  %v773_v44 = vcombine.high %v765_v29, %v765_v29  ;;  %v5518_v51 = vcombine.high %v6750_v57, %v6756_v63  ;;  %v1356_v55 = vcombine.low %v750_v0, %v765_v29 }
  0x2e   : > { %v5509_v12 = vld.sshfl [vmem:[#allocation2 + $0x4] sm:$0x33 pattern:$0x75316420]  ;;  %v572_v13 = vcombine.high %v5508_v5, %v5508_v5  ;;  %v579_v14 = vrot.slane %v5508_v5, %v6698_v26  ;;  %v1337_v25 = vrot.slane %v1309_v9, %v6698_v26  ;;  %v1338_v28 = vcombine.low %v1316_v16, %v1323_v20 }
  0x2f   : > { %v596_v17 = vcombine.high %v5509_v12, %v5509_v12  ;;  %v603_v18 = vrot.slane %v5509_v12, %v6698_v26  ;;  %v5510_v19 = vld.sshfl [vmem:[#allocation2 + $0x8] sm:$0x1 pattern:$0x75316420]  ;;  %v1304_v34 = vrot.slane %v1290_v24, %v6698_v26  ;;  %v774_v47 = vcombine.high %v772_v30, %v772_v30 }
  0x30   : > { %v586_v22 = vrot.slane %v572_v13, %v6698_v26  ;;  %v626_v23 = vrot.slane %v5510_v19, %v6698_v26  ;;  %v1339_v37 = vcombine.low %v1330_v21, %v1337_v25  ;;  %v1346_v38 = vrot.slane %v1338_v28, %v6698_v26  ;;  %v6511_v58 = vld.sshfl [vmem:[#allocation2 + $0x34] sm:$0x33 pattern:$0x75316420] }
  0x31   : > { %v610_v27 = vrot.slane %v596_v17, %v6698_v26  ;;  %v1357_v56 = vcombine.low %v772_v30, %v773_v44  ;;  %v6512_v59 = vld.sshfl [vmem:[#allocation2 + $0x38] sm:$0x1 pattern:$0x75316420]  ;;  %v1365_v1 = vrot.slane %v5518_v51, %v6698_v26  ;;  %v1372_v3 = vrot.slane %v1356_v55, %v6698_v26 }
  0x32   : > { %v1208_v31 = vcombine.low %v579_v14, %v586_v22  ;;  %v5515_v32 = vcombine.high %v579_v14, %v586_v22  ;;  %v1257_v33 = vcombine.low %v626_v23, %v6729_v42  ;;  %v1353_v46 = vrot.slane %v1339_v37, %v6698_v26  ;;  %v6513_v6 = vld.sshfl [vmem:[#allocation2 + $0x3c] sm:$0x33 pattern:$0x75316420] }
  0x33   : > { %v1210_v35 = vcombine.low %v603_v18, %v610_v27  ;;  %v5516_v36 = vcombine.high %v603_v18, %v610_v27  ;;  %v1379_v57 = vrot.slane %v1357_v56, %v6698_v26  ;;  %v782_v63 = vcombine.high %v6508_v39, %v6508_v39  ;;  %v6514_v12 = vld.sshfl [vmem:[#allocation2 + $0x40] sm:$0x33 pattern:$0x75316420] }
  0x34   : > { %v1218_v40 = vrot.slane %v1208_v31, %v6698_v26  ;;  %v1225_v41 = vrot.slane %v5515_v32, %v6698_v26  ;;  %v1267_v43 = vrot.slane %v1257_v33, %v6698_v26  ;;  %v1354_v54 = vcombine.low %v1346_v38, %v1353_v46  ;;  %v6515_v38 = vld.sshfl [vmem:[#allocation2 + $0x44] sm:$0x1 pattern:$0x75316420] }
  0x35   : > { %v1232_v45 = vrot.slane %v1210_v35, %v6698_v26  ;;  %v1239_v42 = vrot.slane %v5516_v36, %v6698_v26  ;;  %v1358_v0 = vcombine.low %v774_v47, %v789_v62  ;;  %v797_v5 = vcombine.high %v789_v62, %v789_v62  ;;  %v6516_v39 = vld.sshfl [vmem:[#allocation2 + $0x48] sm:$0x33 pattern:$0x75316420] }
  0x36   : > { %v1240_v49 = vcombine.low %v1218_v40, %v1225_v41  ;;  %v1289_v50 = vcombine.low %v1267_v43, %v1274_v2  ;;  %v1387_v9 = vcombine.low %v1365_v1, %v1372_v3  ;;  %v796_v10 = vrot.slane %v782_v63, %v6698_v26  ;;  %v6517_v55 = vld.sshfl [vmem:[#allocation2 + $0x4c] sm:$0x33 pattern:$0x75316420] }
  0x37   : > { %v1241_v53 = vcombine.low %v1232_v45, %v1239_v42  ;;  %v1386_v13 = vrot.slane %v1358_v0, %v6698_v26  ;;  %v812_v14 = vrot.slane %v6509_v48, %v6698_v26  ;;  %v820_v17 = vcombine.high %v6510_v52, %v6510_v52  ;;  %v6518_v56 = vld.sshfl [vmem:[#allocation2 + $0x50] sm:$0x1 pattern:$0x75316420] }
  0x38   : > { %v1248_v60 = vrot.slane %v1240_v49, %v6698_v26  ;;  %v1297_v61 = vrot.slane %v1289_v50, %v6698_v26  ;;  %v1395_v15 = vrot.slane %v1387_v9, %v6698_v26  ;;  %v798_v16 = vcombine.high %v796_v10, %v796_v10 }
  0x39   : > { %v1255_v2 = vrot.slane %v1241_v53, %v6698_v26  ;;  %v827_v18 = vrot.slane %v6510_v52, %v6698_v26  ;;  %v1388_v19 = vcombine.low %v1379_v57, %v1386_v13  ;;  %v1404_v20 = vcombine.low %v796_v10, %v797_v5 }
  0x3a   : > { %v1305_v4 = vcombine.low %v1297_v61, %v1304_v34  ;;  %v844_v21 = vcombine.high %v6511_v58, %v6511_v58  ;;  %v851_v22 = vrot.slane %v6511_v58, %v6698_v26  ;;  %v834_v23 = vrot.slane %v820_v17, %v6698_v26  ;;  %v6520_v61 = vld.sshfl [vmem:[#allocation2 + $0x58] sm:$0x33 pattern:$0x75316420] }
  0x3b   : > { %v1256_v7 = vcombine.low %v1248_v60, %v1255_v2  ;;  %v1405_v24 = vcombine.low %v798_v16, %v812_v14  ;;  %v874_v25 = vrot.slane %v6512_v59, %v6698_v26  ;;  %v1402_v27 = vrot.slane %v1388_v19, %v6698_v26  ;;  %v6519_v60 = vld.sshfl [vmem:[#allocation2 + $0x54] sm:$0x33 pattern:$0x75316420] }
  0x3c   : > { %v1414_v28 = vrot.slane %v1404_v20, %v6698_v26  ;;  %v858_v29 = vrot.slane %v844_v21, %v6698_v26  ;;  %v1406_v30 = vcombine.low %v827_v18, %v834_v23  ;;  %v5519_v31 = vcombine.high %v827_v18, %v834_v23  ;;  %v6521_v23 = vld.sshfl [vmem:[#allocation2 + $0x5c] sm:$0x1 pattern:$0x75316420] }
  0x3d   : > { %6022 = vmatprep.mubr.bf16.mxu0 %v1256_v7  ;;  %v1421_v32 = vrot.slane %v1405_v24, %v6698_v26  ;;  %v882_v33 = vcombine.high %v6513_v6, %v6513_v6  ;;  %v1403_v34 = vcombine.low %v1395_v15, %v1402_v27  ;;  %v889_v35 = vrot.slane %v6513_v6, %v6698_v26 }
  0x3e   : > { %6023 = vmatmul.mubr.bf16.vlgmr.msra.gmra.mxu0 %v1305_v4  ;;  %v1453_v36 = vcombine.low %v851_v22, %v858_v29  ;;  %v5520_v37 = vcombine.high %v851_v22, %v858_v29  ;;  %v1428_v40 = vrot.slane %v1406_v30, %v6698_v26  ;;  %v1435_v41 = vrot.slane %v5519_v31, %v6698_v26 }
  0x3f   : > { %6026 = vmatprep.mubr.bf16.mxu0 %v1354_v54  ;;  %6111 = vmatpush3.bf16.msra.mxu0 %v6771_v11  ;;  %v1436_v43 = vcombine.low %v1414_v28, %v1421_v32  ;;  %v896_v44 = vrot.slane %v882_v33, %v6698_v26  ;;  %v897_v11 = vcombine.high %v889_v35, %v889_v35 }
  0x40   : > { %v1455_v45 = vcombine.low %v874_v25, %v889_v35  ;;  %v1463_v42 = vrot.slane %v1453_v36, %v6698_v26  ;;  %v1470_v46 = vrot.slane %v5520_v37, %v6698_v26  ;;  %v1437_v47 = vcombine.low %v1428_v40, %v1435_v41  ;;  %v6522_v37 = vld.sshfl [vmem:[#allocation2 + $0x60] sm:$0x33 pattern:$0x75316420] }
  0x41   : > { %v1444_v48 = vrot.slane %v1436_v43, %v6698_v26  ;;  %v898_v49 = vcombine.high %v896_v44, %v896_v44  ;;  %v906_v50 = vcombine.high %v6514_v12, %v6514_v12  ;;  %v1456_v51 = vcombine.low %v896_v44, %v897_v11  ;;  %v6523_v43 = vld.sshfl [vmem:[#allocation2 + $0x64] sm:$0x33 pattern:$0x75316420] }
  0x42   : > { %v1477_v52 = vrot.slane %v1455_v45, %v6698_v26  ;;  %v1485_v53 = vcombine.low %v1463_v42, %v1470_v46  ;;  %v913_v54 = vrot.slane %v6514_v12, %v6698_v26  ;;  %v1451_v58 = vrot.slane %v1437_v47, %v6698_v26 }
  0x43   : > { %v920_v59 = vrot.slane %v906_v50, %v6698_v26  ;;  %v1484_v62 = vrot.slane %v1456_v51, %v6698_v26  ;;  %v936_v4 = vrot.slane %v6515_v38, %v6698_v26  ;;  %v944_v0 = vcombine.high %v6516_v39, %v6516_v39 }
  0x44   : > { %v1493_v1 = vrot.slane %v1485_v53, %v6698_v26  ;;  %v921_v2 = vcombine.high %v913_v54, %v913_v54  ;;  %v1502_v3 = vcombine.low %v898_v49, %v913_v54  ;;  %v1452_v57 = vcombine.low %v1444_v48, %v1451_v58 }
  0x45   : > { %v922_v63 = vcombine.high %v920_v59, %v920_v59  ;;  %v1486_v5 = vcombine.low %v1477_v52, %v1484_v62  ;;  %v951_v6 = vrot.slane %v6516_v39, %v6698_v26  ;;  %v958_v10 = vrot.slane %v944_v0, %v6698_v26 }
  0x46   : > { %6027 = vmatmul.mubr.bf16.gmra.mxu0 %v1403_v34  ;;  %v1503_v7 = vcombine.low %v920_v59, %v921_v2  ;;  %v1512_v9 = vrot.slane %v1502_v3, %v6698_v26  ;;  %v968_v17 = vcombine.high %v6517_v55, %v6517_v55  ;;  %v975_v18 = vrot.slane %v6517_v55, %v6698_v26  ;;  %v493_v3 = vld [vmem:[%s415_s22 + $0x4] sm:$0xf] }
  0x47   : > { %6030 = vmatprep.mubr.bf16.mxu0 %v1452_v57  ;;  %v1504_v12 = vcombine.low %v922_v63, %v936_v4  ;;  %v1500_v13 = vrot.slane %v1486_v5, %v6698_v26  ;;  %v1505_v15 = vcombine.low %v951_v6, %v958_v10  ;;  %v998_v21 = vrot.slane %v6518_v56, %v6698_v26  ;;  %v494_v5 = vld [vmem:[%s415_s22 + $0x8] sm:$0x1] }
  0x48   : > { %v1519_v14 = vrot.slane %v1503_v7, %v6698_v26  ;;  %v1013_v22 = vrot.slane %v6519_v60, %v6698_v26  ;;  %v982_v25 = vrot.slane %v968_v17, %v6698_v26  ;;  %v5521_v27 = vcombine.high %v951_v6, %v958_v10  ;;  %v6524_v10 = vld.sshfl [vmem:[#allocation2 + $0x68] sm:$0x1 pattern:$0x75316420] }
  0x49   : > { %v1526_v16 = vrot.slane %v1504_v12, %v6698_v26  ;;  %v1501_v19 = vcombine.low %v1493_v1, %v1500_v13  ;;  %v1533_v24 = vrot.slane %v1505_v15, %v6698_v26  ;;  %v1006_v28 = vcombine.high %v6519_v60, %v6519_v60  ;;  %v492_v60 = vld [vmem:[%s415_s22] sm:$0xf] }
  0x4a   : > { %v1534_v20 = vcombine.low %v1512_v9, %v1519_v14  ;;  %v1554_v30 = vcombine.low %v998_v21, %v1013_v22  ;;  %v1021_v31 = vcombine.high %v1013_v22, %v1013_v22  ;;  %v1030_v32 = vcombine.high %v6520_v61, %v6520_v61  ;;  %v6417_v14 = vld [vmem:[%s8577_s5 + $0x48] sm:$0xff]  }
  0x4b   : > { %v1535_v33 = vcombine.low %v1526_v16, %v1533_v24  ;;  %v1552_v34 = vcombine.low %v975_v18, %v982_v25  ;;  %v5522_v35 = vcombine.high %v975_v18, %v982_v25  ;;  %v1561_v36 = vrot.slane %v5521_v27, %v6698_v26 }
  0x4c   : > { %v1542_v29 = vrot.slane %v1534_v20, %v6698_v26  ;;  %v1582_v38 = vrot.slane %v1554_v30, %v6698_v26  ;;  %v1020_v39 = vrot.slane %v1006_v28, %v6698_v26  ;;  %v1037_v40 = vrot.slane %v6520_v61, %v6698_v26 }
  0x4d   : > { %v1044_v41 = vrot.slane %v1030_v32, %v6698_v26  ;;  %v1549_v44 = vrot.slane %v1535_v33, %v6698_v26  ;;  %v1568_v11 = vrot.slane %v1552_v34, %v6698_v26  ;;  %v1575_v45 = vrot.slane %v5522_v35, %v6698_v26 }
  0x4e   : > { %6031 = vmatmul.mubr.bf16.gmra.mxu0 %v1501_v19  ;;  %v1022_v42 = vcombine.high %v1020_v39, %v1020_v39  ;;  %v1045_v46 = vcombine.high %v1037_v40, %v1037_v40  ;;  %v1600_v48 = vcombine.low %v1020_v39, %v1021_v31  ;;  %v1060_v52 = vrot.slane %v6521_v23, %v6698_v26 }
  0x4f   : > { %v1046_v47 = vcombine.high %v1044_v41, %v1044_v41  ;;  %v1550_v49 = vcombine.low %v1542_v29, %v1549_v44  ;;  %v1583_v50 = vcombine.low %v1561_v36, %v1568_v11  ;;  %v1584_v51 = vcombine.low %v1575_v45, %v1582_v38 }
  0x50   : > { %v1601_v53 = vcombine.low %v1022_v42, %v1037_v40  ;;  %v1602_v54 = vcombine.low %v1044_v41, %v1045_v46  ;;  %v1610_v55 = vrot.slane %v1600_v48, %v6698_v26  ;;  %v1068_v1 = vcombine.high %v6522_v37, %v6522_v37 }
  0x51   : > { %6034 = vmatprep.mubr.bf16.mxu0 %v1550_v49  ;;  %v1591_v56 = vrot.slane %v1583_v50, %v6698_v26  ;;  %v1598_v58 = vrot.slane %v1584_v51, %v6698_v26  ;;  %v1603_v59 = vcombine.low %v1046_v47, %v1060_v52  ;;  %v1075_v2 = vrot.slane %v6522_v37, %v6698_v26 }
  0x52   : > { %v1617_v61 = vrot.slane %v1601_v53, %v6698_v26  ;;  %v1624_v62 = vrot.slane %v1602_v54, %v6698_v26  ;;  %v1092_v4 = vcombine.high %v6523_v43, %v6523_v43  ;;  %v1099_v0 = vrot.slane %v6523_v43, %v6698_v26 }
  0x53   : > { %v1599_v57 = vcombine.low %v1591_v56, %v1598_v58  ;;  %v1631_v63 = vrot.slane %v1603_v59, %v6698_v26  ;;  %v1082_v7 = vrot.slane %v1068_v1, %v6698_v26  ;;  %v496_v9 = vstv %s6788_s13 }
  0x54   : > { %v1632_v6 = vcombine.low %v1610_v55, %v1617_v61  ;;  %v1106_v13 = vrot.slane %v1092_v4, %v6698_v26  ;;  %vm6874_vm1 = vcmp.eq.s32.totalorder %v496_v9, 1  ;;  %v1122_v34 = vrot.slane %v6524_v10, %v6698_v26  ;;  %v6407_v4 = vld [vmem:[%s8577_s5 + $0x70] sm:$0xff]   ;;  %v6413_v9 = vld [vmem:[%s8577_s5 + $0x58] sm:$0xff]  }
  0x55   : > { %v1633_v12 = vcombine.low %v1624_v62, %v1631_v63  ;;  %v1649_v16 = vcombine.low %v1075_v2, %v1082_v7  ;;  %v5523_v17 = vcombine.high %v1075_v2, %v1082_v7  ;;  %v498_v18 = vsel %vm6874_vm1, %v492_v60, 0  ;;  %v6406_v63 = vld [vmem:[%s8577_s5 + $0xb0] sm:$0xff]   ;;  %v6412_v7 = vld [vmem:[%s8577_s5 + $0x98] sm:$0xff]  }
  0x56   : > { %6035 = vmatmul.mubr.bf16.gmra.mxu0 %v1599_v57  ;;  %v1640_v15 = vrot.slane %v1632_v6, %v6698_v26  ;;  %v1651_v20 = vcombine.low %v1099_v0, %v1106_v13  ;;  %v5524_v21 = vcombine.high %v1099_v0, %v1106_v13  ;;  %v499_v22 = vsel %vm6874_vm1, %v493_v3, 0  ;;  %502 = vst [vmem:[#allocation2 + $0x6c] sm:$0xf] %v498_v18  ;;  %v6405_v57 = vld [vmem:[%s8577_s5 + $0x78] sm:$0xff]   ;;  %v6409_v0 = vld [vmem:[%s8577_s5 + $0x68] sm:$0xff]   ;;  %v6411_v6 = vld [vmem:[%s8577_s5 + $0x60] sm:$0xff]  }
  0x57   : > { %v1647_v19 = vrot.slane %v1633_v12, %v6698_v26  ;;  %v1659_v23 = vrot.slane %v1649_v16, %v6698_v26  ;;  %v1666_v24 = vrot.slane %v5523_v17, %v6698_v26  ;;  %503 = vst [vmem:[#allocation2 + $0x70] sm:$0xf] %v499_v22  ;;  %v500_v25 = vsel %vm6874_vm1, %v494_v5, 0  ;;  %6046 = vmatprep.subr.bf16.mxu1 %v6405_v57  ;;  %v6410_v5 = vld [vmem:[%s8577_s5 + $0xa0] sm:$0xff]   ;;  %v6414_v10 = vld [vmem:[%s8577_s5 + $0x90] sm:$0xff]   ;;  %v6416_v13 = vld [vmem:[%s8577_s5 + $0x88] sm:$0xff]  }
  0x58   : > { %v1673_v28 = vrot.slane %v1651_v20, %v6698_v26  ;;  %v1680_v29 = vrot.slane %v5524_v21, %v6698_v26  ;;  %504 = vst [vmem:[#allocation2 + $0x74] sm:$0x1] %v500_v25  ;;  %6112 = vmatprep.subr.bf16.mxu0 %v6406_v63  ;;  %6047 = vmatpush3.bf16.msra.mxu1 %v6405_v57  ;;  %v6415_v12 = vld [vmem:[%s8577_s5 + $0x50] sm:$0xff]   ;;  %v6419_v16 = vld [vmem:[%s8577_s5 + $0x40] sm:$0xff]   ;;  %v6954_v17 = vld [vmem:[%s8577_s5 + $0x138] sm:$0xff]  }
  0x59   : > { %v1648_v27 = vcombine.low %v1640_v15, %v1647_v19  ;;  %v1681_v30 = vcombine.low %v1659_v23, %v1666_v24  ;;  %6113 = vmatpush3.bf16.msra.mxu0 %v6406_v63  ;;  %6048 = vmatprep.subr.bf16.mxu1 %v6407_v4  ;;  %v6418_v15 = vld [vmem:[%s8577_s5 + $0x80] sm:$0xff]   ;;  %v6960_v18 = vld [vmem:[%s8577_s5 + $0x38] sm:$0xff]   ;;  %v6566_v19 = vmov 1983009808  }
  0x5a   : > { %v1682_v31 = vcombine.low %v1673_v28, %v1680_v29  ;;  %v2044_v20 = vunpack.c.l.s4 %v6566_v19  ;;  %v6966_v21 = vld [vmem:[%s8576_s4] ss:$0 sm:$0xff] }
  0x5b   : > { %6038 = vmatprep.mubr.bf16.mxu0 %v1648_v27  ;;  %v1689_v32 = vrot.slane %v1681_v30, %v6698_v26 }
  0x5c   : > { %v1696_v33 = vrot.slane %v1682_v31, %v6698_v26  ;;  %6049 = vmatpush3.bf16.msra.mxu1 %v6407_v4  ;;  %v2045_v22 = vunpack.c.0.s8 %v2044_v20 }
  0x5d   : > { %v5511_v35 = vld.sshfl [vmem:[#allocation2 + $0x6c] sm:$0x33 pattern:$0x75316420]  ;;  %6050 = vmatprep.subr.bf16.mxu1 %v6409_v0 }
  0x5e   : > { %v1697_v36 = vcombine.low %v1689_v32, %v1696_v33  ;;  %v5512_v37 = vld.sshfl [vmem:[#allocation2 + $0x70] sm:$0x33 pattern:$0x75316420]  ;;  %v1130_v38 = vcombine.high %v5511_v35, %v5511_v35  ;;  %v1137_v39 = vrot.slane %v5511_v35, %v6698_v26  ;;  %v6970_v25 = vsub.s32 %v2045_v22, %v6673_v8 }
  0x5f   : > { %v1154_v40 = vcombine.high %v5512_v37, %v5512_v37  ;;  %v1161_v41 = vrot.slane %v5512_v37, %v6698_v26  ;;  %v5513_v43 = vld.sshfl [vmem:[#allocation2 + $0x74] sm:$0x1 pattern:$0x75316420] }
  0x60   : > { %6039 = vmatmul.mubr.bf16.gmra.mxu0 %v1697_v36  ;;  %v1144_v44 = vrot.slane %v1130_v38, %v6698_v26  ;;  %v1145_v11 = vcombine.high %v1137_v39, %v1137_v39  ;;  %v1698_v45 = vcombine.low %v1122_v34, %v1137_v39  ;;  %v1184_v47 = vrot.slane %v5513_v43, %v6698_v26 }
  0x61   : > { %v1168_v42 = vrot.slane %v1154_v40, %v6698_v26  ;;  %v1169_v46 = vcombine.high %v1161_v41, %v1161_v41  ;;  %6051 = vmatpush3.bf16.msra.mxu1 %v6409_v0 }
  0x62   : > { %v1146_v48 = vcombine.high %v1144_v44, %v1144_v44  ;;  %v1699_v49 = vcombine.low %v1144_v44, %v1145_v11  ;;  %v1708_v50 = vrot.slane %v1698_v45, %v6698_v26  ;;  %6052 = vmatprep.subr.bf16.mxu1 %v6411_v6 }
  0x63   : > { %v1701_v51 = vcombine.low %v1168_v42, %v1169_v46  ;;  %v1170_v52 = vcombine.high %v1168_v42, %v1168_v42 }
  0x64   : > { %v1700_v53 = vcombine.low %v1146_v48, %v1161_v41  ;;  %v1715_v54 = vrot.slane %v1699_v49, %v6698_v26 }
  0x65   : > { %v1729_v55 = vrot.slane %v1701_v51, %v6698_v26  ;;  %v1747_v56 = vcombine.low %v1170_v52, %v1184_v47  ;;  %6053 = vmatpush3.bf16.msra.mxu1 %v6411_v6 }
  0x66   : > { %v1722_v58 = vrot.slane %v1700_v53, %v6698_v26  ;;  %v1730_v59 = vcombine.low %v1708_v50, %v1715_v54  ;;  %6054 = vmatprep.subr.bf16.mxu1 %v6413_v9 }
  0x67   : > { %v1754_v60 = vrot.slane %v1747_v56, %v6698_v26 }
  0x68   : > { %v1731_v61 = vcombine.low %v1722_v58, %v1729_v55  ;;  %v1738_v62 = vrot.slane %v1730_v59, %v6698_v26 }
  0x69   : > { %v1761_v2 = vrot.slane %v1754_v60, %v6698_v26  ;;  %6055 = vmatpush3.bf16.msra.mxu1 %v6413_v9  ;;  %v6996_v9 = vadd.s32 16, %v6673_v8 }
  0x6a   : > { %v1745_v1 = vrot.slane %v1731_v61, %v6698_v26  ;;  %v6408_v26 = vld [vmem:[%s8577_s5 + $0xa8] sm:$0xff]   ;;  %6056 = vmatprep.subr.bf16.mxu1 %v6415_v12 }
  0x6b   : > { %6114 = vmatprep.subr.bf16.mxu0 %v6408_v26  ;;  %vm2433_vm11 = vcmp.le.s32.totalorder %v6996_v9, 16 }
  0x6c   : > { %v1746_v3 = vcombine.low %v1738_v62, %v1745_v1  ;;  %6115 = vmatpush3.bf16.msra.mxu0 %v6408_v26 }
  0x6d   : > { %6116 = vmatprep.subr.bf16.mxu0 %v6410_v5  ;;  %6057 = vmatpush3.bf16.msra.mxu1 %v6415_v12 }
  0x6e   : > { %6042 = vmatprep.mubr.bf16.mxu0 %v1746_v3  ;;  %6058 = vmatprep.subr.bf16.mxu1 %v6417_v14 }
  0x6f   : > { %6043 = vmatmul.mubr.bf16.gmra.mxu0 %v1761_v2 }
  0x70   : > { %6117 = vmatpush3.bf16.msra.mxu0 %v6410_v5 }
  0x71   : > { %6118 = vmatprep.subr.bf16.mxu0 %v6412_v7  ;;  %6059 = vmatpush3.bf16.msra.mxu1 %v6417_v14  ;;  %v2439_v14 = vstv %s6990_s12 }
  0x72   : > { %6060 = vmatprep.subr.bf16.mxu1 %v6419_v16  ;;  %vm7060_vm0 = vcmp.eq.s32.totalorder %v2439_v14, 1 }
  0x74   : > { %6119 = vmatpush3.bf16.msra.mxu0 %v6412_v7 }
  0x75   : > { %6120 = vmatprep.subr.bf16.mxu0 %v6414_v10  ;;  %6061 = vmatpush3.bf16.msra.mxu1 %v6419_v16 }
  0x76   : > { %6078 = vmatprep.subr.bf16.mxu1 %v6960_v18 }
  0x78   : > { %6121 = vmatpush3.bf16.msra.mxu0 %v6414_v10 }
  0x79   : > { %6122 = vmatprep.subr.bf16.mxu0 %v6416_v13 }
  0x7c   : > { %6123 = vmatpush3.bf16.msra.mxu0 %v6416_v13 }
  0x7d   : > { %6124 = vmatprep.subr.bf16.mxu0 %v6418_v15 }
  0x80   : > { %6125 = vmatpush3.bf16.msra.mxu0 %v6418_v15 }
  0x81   : > { %6174 = vmatprep.subr.bf16.mxu0 %v6954_v17 }
  0xfe   : > { %v6024_v23 = vpop.f32.mrf.mxu0 }
  0xff   : > { %v1865_v24 = vadd.f32 %v6024_v23, %v6966_v21 }
 0x100   : > { %v1856_v27 = vpop.f32.mrf.mxu0 }
 0x101   : > { %vm1952_vm2 = vcmp.gt.f32.partialorder %v1865_v24, 0.0  ;;  %v1975_v28 = vmul.f32 0.1, %v1865_v24  ;;  %v1857_v29 = vadd.f32 %v6966_v21, %v1856_v27 }
 0x102   : > { %v6025_v30 = vpop.f32.mrf.mxu0 }
 0x103   : > { %v1998_v31 = vsel %vm1952_vm2, %v1865_v24, %v1975_v28  ;;  %vm1950_vm3 = vcmp.gt.f32.partialorder %v1857_v29, 0.0  ;;  %v1973_v32 = vmul.f32 0.1, %v1857_v29  ;;  %v1868_v33 = vadd.f32 %v6025_v30, %v6966_v21 }
 0x104   : > { %v2076_v34 = vcombine.high %v1998_v31, %v1998_v31  ;;  %v6975_v35 = vrot.slane %v1998_v31, %v6970_v25  ;;  %v1859_v36 = vpop.f32.mrf.mxu0 }
 0x105   : > { %v1996_v37 = vsel %vm1950_vm3, %v1857_v29, %v1973_v32  ;;  %vm1953_vm4 = vcmp.gt.f32.partialorder %v1868_v33, 0.0  ;;  %v1976_v38 = vmul.f32 0.1, %v1868_v33  ;;  %v1860_v39 = vadd.f32 %v6966_v21, %v1859_v36 }
 0x106   : > { %v2090_v40 = vrot.slane %v2076_v34, %v6970_v25  ;;  %v2042_v41 = vcombine.high %v1996_v37, %v1996_v37  ;;  %v6028_v43 = vpop.f32.mrf.mxu0  ;;  %v2049_v44 = vrot.slane %v1996_v37, %v6970_v25  ;;  %v2091_v42 = vcombine.high %v6975_v35, %v6975_v35 }
 0x107   : > { %v1999_v11 = vsel %vm1953_vm4, %v1868_v33, %v1976_v38  ;;  %vm1951_vm5 = vcmp.gt.f32.partialorder %v1860_v39, 0.0  ;;  %v1974_v45 = vmul.f32 0.1, %v1860_v39  ;;  %v1881_v53 = vadd.f32 %v6028_v43, %v6966_v21 }
 0x108   : > { %v2056_v46 = vrot.slane %v2042_v41, %v6970_v25  ;;  %v2092_v47 = vcombine.high %v2090_v40, %v2090_v40  ;;  %v2093_v48 = vcombine.high %v1999_v11, %v1999_v11  ;;  %v1872_v49 = vpop.f32.mrf.mxu0  ;;  %v2057_v50 = vcombine.high %v2049_v44, %v2049_v44 }
 0x109   : > { %v2100_v51 = vrot.slane %v1999_v11, %v6970_v25  ;;  %v1997_v52 = vsel %vm1951_vm5, %v1860_v39, %v1974_v45  ;;  %v2500_v60 = vcombine.low %v2091_v42, %v2090_v40  ;;  %vm1956_vm6 = vcmp.gt.f32.partialorder %v1881_v53, 0.0 }
 0x10a   : > { %v2058_v54 = vcombine.high %v2056_v46, %v2056_v46  ;;  %v2059_v55 = vcombine.high %v1997_v52, %v1997_v52  ;;  %v6029_v56 = vpop.f32.mrf.mxu0  ;;  %v2066_v59 = vrot.slane %v1997_v52, %v6970_v25  ;;  %v1979_v62 = vmul.f32 0.1, %v1881_v53 }
 0x10b   : > { %v2501_v58 = vcombine.low %v2092_v47, %v2100_v51  ;;  %v2459_v2 = vcombine.low %v2049_v44, %v2057_v50  ;;  %v2107_v57 = vrot.slane %v2093_v48, %v6970_v25  ;;  %v2108_v63 = vcombine.high %v2100_v51, %v2100_v51 }
 0x10c   : > { %v2073_v61 = vrot.slane %v2059_v55, %v6970_v25  ;;  %v1875_v1 = vpop.f32.mrf.mxu0  ;;  %v2460_v3 = vcombine.low %v2056_v46, %v2058_v54  ;;  %v2074_v26 = vcombine.high %v2066_v59, %v2066_v59  ;;  %v2002_v0 = vsel %vm1956_vm6, %v1881_v53, %v1979_v62 }
 0x10d   : > { %v2515_v4 = vrot.slane %v2501_v58, %v6970_v25  ;;  %v1873_v5 = vadd.f32 %v6966_v21, %v1872_v49  ;;  %v2144_v7 = vcombine.high %v2002_v0, %v2002_v0  ;;  %v2508_v10 = vrot.slane %v2500_v60, %v6970_v25 }
 0x10e   : > { %v2075_v6 = vcombine.high %v2073_v61, %v2073_v61  ;;  %v2151_v12 = vrot.slane %v2002_v0, %v6970_v25  ;;  %v6032_v13 = vpop.f32.mrf.mxu0  ;;  %v2499_v15 = vrot.slane %v6975_v35, %v6970_v25  ;;  %v2467_v16 = vrot.slane %v2459_v2, %v6970_v25 }
 0x10f   : > { %vm1954_vm7 = vcmp.gt.f32.partialorder %v1873_v5, 0.0  ;;  %v2517_v19 = vcombine.low %v2108_v63, %v2107_v57  ;;  %v1977_v20 = vmul.f32 0.1, %v1873_v5  ;;  %v2474_v22 = vrot.slane %v2460_v3, %v6970_v25 }
 0x110   : > { %v7006_v23 = vcombine.low %v2508_v10, %v2515_v4  ;;  %v2476_v24 = vcombine.low %v2066_v59, %v2074_v26  ;;  %v1884_v27 = vadd.f32 %v6029_v56, %v6966_v21  ;;  %v1888_v28 = vpop.f32.mrf.mxu0  ;;  %v2477_v29 = vcombine.low %v2073_v61, %v2075_v6 }
 0x111   : > { %v7010_v30 = vrot.slane %v2144_v7, %v6970_v25  ;;  %v2000_v31 = vsel %vm1954_vm7, %v1873_v5, %v1977_v20  ;;  %v1876_v32 = vadd.f32 %v6966_v21, %v1875_v1  ;;  %v2159_v33 = vcombine.high %v2151_v12, %v2151_v12 }
 0x112   : > { %v2109_v34 = vcombine.high %v2107_v57, %v2107_v57  ;;  %v2110_v36 = vcombine.high %v2000_v31, %v2000_v31  ;;  %v2117_v37 = vrot.slane %v2000_v31, %v6970_v25  ;;  %v6033_v38 = vpop.f32.mrf.mxu0  ;;  %vm1957_vm9 = vcmp.gt.f32.partialorder %v1884_v27, 0.0 }
 0x113   : > { %v1980_v39 = vmul.f32 0.1, %v1884_v27  ;;  %vm1955_vm10 = vcmp.gt.f32.partialorder %v1876_v32, 0.0  ;;  %v1978_v40 = vmul.f32 0.1, %v1876_v32  ;;  %v7014_v41 = vcombine.low %v2467_v16, %v2474_v22 }
 0x114   : > { %v2525_v43 = vrot.slane %v2517_v19, %v6970_v25  ;;  %v2124_v44 = vrot.slane %v2110_v36, %v6970_v25  ;;  %v2518_v11 = vcombine.low %v2109_v34, %v2117_v37  ;;  %v2484_v45 = vrot.slane %v2476_v24, %v6970_v25  ;;  %v1891_v48 = vpop.f32.mrf.mxu0 }
 0x115   : > { %v2003_v42 = vsel %vm1957_vm9, %v1884_v27, %v1980_v39  ;;  %v2001_v46 = vsel %vm1955_vm10, %v1876_v32, %v1978_v40  ;;  %v1897_v47 = vadd.f32 %v6032_v13, %v6966_v21  ;;  %v2491_v49 = vrot.slane %v2477_v29, %v6970_v25 }
 0x116   : > { %v7021_v50 = vcombine.low %v2151_v12, %v2159_v33  ;;  %v2160_v51 = vcombine.high %v7010_v30, %v7010_v30  ;;  %v2161_v52 = vcombine.high %v2003_v42, %v2003_v42  ;;  %v2125_v53 = vcombine.high %v2117_v37, %v2117_v37  ;;  %v6036_v3 = vpop.f32.mrf.mxu0 }
 0x117   : > { %v2168_v54 = vrot.slane %v2003_v42, %v6970_v25  ;;  %v2127_v55 = vcombine.high %v2001_v46, %v2001_v46  ;;  %v2134_v56 = vrot.slane %v2001_v46, %v6970_v25  ;;  %v2126_v58 = vcombine.high %v2124_v44, %v2124_v44 }
 0x118   : > { %v2532_v59 = vrot.slane %v2518_v11, %v6970_v25  ;;  %v7030_v60 = vrot.slane %v2161_v52, %v6970_v25  ;;  %v1889_v61 = vadd.f32 %v6966_v21, %v1888_v28  ;;  %vm1960_vm12 = vcmp.gt.f32.partialorder %v1897_v47, 0.0  ;;  %v1904_v10 = vpop.f32.mrf.mxu0 }
 0x119   : > { %v2176_v62 = vcombine.high %v2168_v54, %v2168_v54  ;;  %v2141_v1 = vrot.slane %v2127_v55, %v6970_v25  ;;  %v2142_v2 = vcombine.high %v2134_v56, %v2134_v56  ;;  %v2902_v57 = vsel %vm2428_vm8, %v7006_v23, 0.0 }
 0x11a   : > { %v7037_v63 = vcombine.low %v2484_v45, %v2491_v49  ;;  %v2581_v4 = vrot.slane %v7010_v30, %v6970_v25  ;;  %v1983_v26 = vmul.f32 0.1, %v1897_v47  ;;  %v2573_v0 = vrot.slane %v7021_v50, %v6970_v25  ;;  %v6037_v27 = vpop.f32.mrf.mxu0  ;;  %v6428_v30 = vld [vmem:[%s8577_s5 + $0x118] sm:$0xff]  }
 0x11b   : > { %v2540_v5 = vrot.slane %v2125_v53, %v6970_v25  ;;  %v2583_v6 = vcombine.low %v2176_v62, %v7030_v60  ;;  %v2542_v7 = vcombine.low %v2134_v56, %v2142_v2  ;;  %v7045_v12 = vcombine.low %v2525_v43, %v2532_v59 }
 0x11c   : > { %v2006_v13 = vsel %vm1960_vm12, %v1897_v47, %v1983_v26  ;;  %vm1958_vm13 = vcmp.gt.f32.partialorder %v1889_v61, 0.0  ;;  %v1981_v16 = vmul.f32 0.1, %v1889_v61  ;;  %v2541_v19 = vcombine.low %v2124_v44, %v2126_v58  ;;  %v1907_v45 = vpop.f32.mrf.mxu0 }
 0x11d   : > { %v2582_v20 = vcombine.low %v2160_v51, %v2168_v54  ;;  %v2143_v22 = vcombine.high %v2141_v1, %v2141_v1  ;;  %v2212_v24 = vcombine.high %v2006_v13, %v2006_v13  ;;  %v2219_v28 = vrot.slane %v2006_v13, %v6970_v25 }
 0x11e   : > { %v2004_v29 = vsel %vm1958_vm13, %v1889_v61, %v1981_v16  ;;  %v1900_v31 = vadd.f32 %v6033_v38, %v6966_v21  ;;  %v1892_v32 = vadd.f32 %v6966_v21, %v1891_v48  ;;  %v7052_v33 = vsel %vm2433_vm11, %v2540_v5, 0.0 }
 0x11f   : > { %v2597_v34 = vrot.slane %v2583_v6, %v6970_v25  ;;  %v2556_v36 = vrot.slane %v2542_v7, %v6970_v25  ;;  %v2226_v37 = vrot.slane %v2212_v24, %v6970_v25  ;;  %v2227_v39 = vcombine.high %v2219_v28, %v2219_v28 }
 0x120   : > { %v2178_v40 = vcombine.high %v2004_v29, %v2004_v29  ;;  %v2185_v43 = vrot.slane %v2004_v29, %v6970_v25  ;;  %vm1961_vm14 = vcmp.gt.f32.partialorder %v1900_v31, 0.0  ;;  %v1984_v11 = vmul.f32 0.1, %v1900_v31  ;;  %v7081_v2 = vpop.f32.mrf.mxu0 }
 0x121   : > { %v2228_v44 = vcombine.high %v2226_v37, %v2226_v37  ;;  %vm1959_vm15 = vcmp.gt.f32.partialorder %v1892_v32, 0.0  ;;  %v1982_v38 = vmul.f32 0.1, %v1892_v32  ;;  %v2549_v46 = vrot.slane %v2541_v19, %v6970_v25 }
 0x122   : > { %v2590_v47 = vrot.slane %v2582_v20, %v6970_v25  ;;  %v7066_v48 = vcombine.low %v2141_v1, %v2143_v22  ;;  %v2640_v49 = vcombine.low %v2219_v28, %v2227_v39  ;;  %v7069_v51 = vrot.slane %v2178_v40, %v6970_v25  ;;  %v7095_v22 = vpop.f32.mrf.mxu0 }
 0x123   : > { %v2007_v52 = vsel %vm1961_vm14, %v1900_v31, %v1984_v11  ;;  %v2005_v53 = vsel %vm1959_vm15, %v1892_v32, %v1982_v38  ;;  %v1913_v54 = vadd.f32 %v6036_v3, %v6966_v21  ;;  %v7073_v55 = vpack.c.bf16 %v7045_v12, %v2902_v57 }
 0x124   : > { %v2641_v14 = vcombine.low %v2226_v37, %v2228_v44  ;;  %v2177_v56 = vcombine.high %v7030_v60, %v7030_v60  ;;  %v2193_v58 = vcombine.high %v2185_v43, %v2185_v43  ;;  %v7077_v59 = vcombine.low %v2590_v47, %v2597_v34 }
 0x125   : > { %v7079_v61 = vcombine.low %v2549_v46, %v2556_v36  ;;  %v2229_v62 = vcombine.high %v2007_v52, %v2007_v52  ;;  %v2195_v1 = vcombine.high %v2005_v53, %v2005_v53  ;;  %v7084_v26 = vrot.slane %v2007_v52, %v6970_v25 }
 0x126   : > { %v2202_v3 = vrot.slane %v2005_v53, %v6970_v25  ;;  %vm1964_vm1 = vcmp.gt.f32.partialorder %v1913_v54, 0.0  ;;  %v1987_v57 = vmul.f32 0.1, %v1913_v54  ;;  %v2566_v5 = vrot.slane %v7066_v48, %v6970_v25 }
 0x127   : > { %v2648_v60 = vrot.slane %v2640_v49, %v6970_v25  ;;  %v2194_v6 = vcombine.high %v7069_v51, %v7069_v51  ;;  %v2599_v7 = vcombine.low %v2177_v56, %v2185_v43  ;;  %v2655_v13 = vrot.slane %v2641_v14, %v6970_v25 }
 0x128   : > { %v2600_v16 = vcombine.low %v2193_v58, %v7069_v51  ;;  %v2209_v19 = vrot.slane %v2195_v1, %v6970_v25  ;;  %v2010_v20 = vsel %vm1964_vm1, %v1913_v54, %v1987_v57  ;;  %v2243_v24 = vrot.slane %v2229_v62, %v6970_v25 }
 0x129   : > { %v2280_v28 = vcombine.high %v2010_v20, %v2010_v20  ;;  %v2287_v29 = vrot.slane %v2010_v20, %v6970_v25  ;;  %v1905_v31 = vadd.f32 %v6966_v21, %v1904_v10  ;;  %v2244_v32 = vcombine.high %v7084_v26, %v7084_v26 }
 0x12a   : > { %v2210_v34 = vcombine.high %v2202_v3, %v2202_v3  ;;  %v2211_v36 = vcombine.high %v2209_v19, %v2209_v19  ;;  %v1916_v37 = vadd.f32 %v6037_v27, %v6966_v21  ;;  %v2607_v39 = vrot.slane %v2599_v7, %v6970_v25  ;;  %v7115_v27 = vpop.f32.mrf.mxu0 }
 0x12b   : > { %v2294_v40 = vrot.slane %v2280_v28, %v6970_v25  ;;  %v2295_v43 = vcombine.high %v2287_v29, %v2287_v29  ;;  %vm1962_vm2 = vcmp.gt.f32.partialorder %v1905_v31, 0.0  ;;  %v7105_v44 = vcombine.low %v2648_v60, %v2655_v13 }
 0x12c   : > { %v2614_v11 = vrot.slane %v2600_v16, %v6970_v25  ;;  %v2624_v38 = vcombine.low %v2209_v19, %v2211_v36  ;;  %v1985_v46 = vmul.f32 0.1, %v1905_v31  ;;  %vm6567_vm3 = vmmov 1   ;;  %v7136_v7 = vpop.f32.mrf.mxu0 }
 0x12d   : > { %vm7111_vm4 = vmxor %vm7060_vm0, %vm6567_vm3  ;;  %vm1965_vm5 = vcmp.gt.f32.partialorder %v1916_v37, 0.0  ;;  %v1988_v49 = vmul.f32 0.1, %v1916_v37  ;;  %v1908_v52 = vadd.f32 %v6966_v21, %v1907_v45  ;;  %v2664_v53 = vcombine.low %v2244_v32, %v2243_v24 }
 0x12e   : > { %v2623_v54 = vcombine.low %v2202_v3, %v2210_v34  ;;  %v2008_v14 = vsel %vm1962_vm2, %v1905_v31, %v1985_v46  ;;  %v2245_v56 = vcombine.high %v2243_v24, %v2243_v24  ;;  %vm3393_vm6 = vcmask 1046528   ;;  %vm2444_vm7 = vmand %vm2433_vm11, %vm7111_vm4 }
 0x12f   : > { %v2296_v58 = vcombine.high %v2294_v40, %v2294_v40  ;;  %v7120_v42 = vcombine.low %v2287_v29, %v2295_v43  ;;  %v2246_v62 = vcombine.high %v2008_v14, %v2008_v14  ;;  %v2253_v1 = vrot.slane %v2008_v14, %v6970_v25  ;;  %vm7132_vm10 = vmand %vm2428_vm8, %vm7111_vm4 }
 0x130   : > { %v2638_v57 = vrot.slane %v2624_v38, %v6970_v25  ;;  %v2011_v60 = vsel %vm1965_vm5, %v1916_v37, %v1988_v49  ;;  %vm1963_vm9 = vcmp.gt.f32.partialorder %v1908_v52, 0.0  ;;  %v1986_v45 = vmul.f32 0.1, %v1908_v52  ;;  %vm5565_vm5 = vmpackc.low %vm7111_vm4, %vm7132_vm10 }
 0x131   : > { %v2260_v13 = vrot.slane %v2246_v62, %v6970_v25  ;;  %v2261_v16 = vcombine.high %v2253_v1, %v2253_v1  ;;  %v2665_v19 = vcombine.low %v2245_v56, %v2253_v1  ;;  %v2900_v20 = vsel %vm7111_vm4, %v7037_v63, 0.0 }
 0x132   : > { %v2297_v24 = vcombine.high %v2011_v60, %v2011_v60  ;;  %v2304_v28 = vrot.slane %v2011_v60, %v6970_v25  ;;  %v2009_v29 = vsel %vm1963_vm9, %v1908_v52, %v1986_v45  ;;  %v2901_v31 = vsel %vm2444_vm7, %v2499_v15, 0.0  ;;  %v7155_v52 = vpop.f32.mrf.mxu0  ;;  %vm7532_vm9 = vmpackc.low %vm6567_vm3, %vm2428_vm8 }
 0x133   : > { %v7146_v32 = vcombine.low %v2607_v39, %v2614_v11  ;;  %v2631_v34 = vrot.slane %v2623_v54, %v6970_v25  ;;  %v2263_v36 = vcombine.high %v2009_v29, %v2009_v29  ;;  %v2899_v37 = vsel %vm7132_vm10, %v7014_v41, 0.0 }
 0x134   : > { %v7152_v43 = vcombine.low %v2294_v40, %v2296_v58  ;;  %v2679_v38 = vrot.slane %v2665_v19, %v6970_v25  ;;  %v2312_v46 = vcombine.high %v2304_v28, %v2304_v28  ;;  %v2929_v49 = vpack.c.bf16 %v2900_v20, %v2899_v37  ;;  %v7168_v58 = vpop.f32.mrf.mxu0  ;;  %v6422_v37 = vld [vmem:[%s8577_s5 + $0x130] sm:$0xff]  }
 0x135   : > { %v2672_v35 = vrot.slane %v2664_v53, %v6970_v25  ;;  %v7160_v39 = vcombine.low %v2261_v16, %v2260_v13  ;;  %v2930_v11 = vpack.c.bf16 %v2901_v31, %v2901_v31  ;;  %v7162_v54 = vcombine.low %v2631_v34, %v2638_v57 }
 0x136   : > { %v7165_v14 = vrot.slane %v2297_v24, %v6970_v25  ;;  %v2262_v40 = vcombine.high %v2260_v13, %v2260_v13  ;;  %v2270_v56 = vrot.slane %v2009_v29, %v6970_v25  ;;  %v7171_v62 = vrot.slane %v2263_v36, %v6970_v25  ;;  %v6045_v19 = vpop.f32.mrf.mxu0 }
 0x137   : > { %v3394_v53 = vrot.slane %v2929_v49, 1  ;;  %v3395_v1 = vrot.slane %v2930_v11, 1  ;;  %v2932_v60 = vpack.c.bf16 %v7052_v33, %v7052_v33  ;;  %vm2965_vm12 = vsmask.f32 7424 }
 0x138   : > { %v2730_v57 = vrot.slane %v7152_v43, %v6970_v25  ;;  %v7177_v45 = vcombine.low %v2672_v35, %v2679_v38  ;;  %v2723_v16 = vcombine.low %v2304_v28, %v2312_v46  ;;  %v3397_v13 = vrot.slane %v7073_v55, 1 }
 0x139   : > { %v2689_v20 = vrot.slane %v7160_v39, %v6970_v25  ;;  %v3396_v24 = vsel %vm3393_vm6, %v3394_v53, %v3395_v1  ;;  %v3398_v29 = vrot.slane %v2932_v60, 1  ;;  %v1929_v31 = vadd.f32 %v7081_v2, %v6966_v21 }
 0x13a   : > { %v2278_v34 = vcombine.high %v2270_v56, %v2270_v56  ;;  %v7187_v36 = vcombine.low %v2262_v40, %v2270_v56  ;;  %6126 = vmatprep.mubr.bf16.mxu0 %v3396_v24  ;;  %v1921_v28 = vadd.f32 %v6966_v21, %v7095_v22  ;;  %v2279_v43 = vcombine.high %v7171_v62, %v7171_v62 }
 0x13b   : > { %v7197_v38 = vsel %vm3393_vm6, %v3397_v13, %v3398_v29  ;;  %vm1968_vm13 = vcmp.gt.f32.partialorder %v1929_v31, 0.0  ;;  %v1991_v2 = vmul.f32 0.1, %v1929_v31  ;;  %v2737_v46 = vrot.slane %v2723_v16, %v6970_v25  ;;  %v6424_v16 = vld [vmem:[%s8577_s5 + $0x128] sm:$0xff]  }
 0x13c   : > { %6127 = vmatmul.mubr.bf16.vlgmr.msra.gmra.mxu0 %v7197_v38  ;;  %vm1966_vm14 = vcmp.gt.f32.partialorder %v1921_v28, 0.0  ;;  %v1989_v35 = vmul.f32 0.1, %v1921_v28  ;;  %v2969_v40 = vshll.u32 %v2929_v49, 16  ;;  %v2967_v56 = vshrl.u32 %v2929_v49, 16 }
 0x13d   : > { %v2014_v22 = vsel %vm1968_vm13, %v1929_v31, %v1991_v2  ;;  %v2974_v53 = vshll.u32 %v2930_v11, 16  ;;  %v2981_v1 = vshll.u32 %v7073_v55, 16  ;;  %6175 = vmatpush3.bf16.msra.mxu0 %v6954_v17  ;;  %v2979_v49 = vshrl.u32 %v7073_v55, 16 }
 0x13e   : > { %v2348_v19 = vcombine.high %v2014_v22, %v2014_v22  ;;  %v2355_v13 = vrot.slane %v2014_v22, %v6970_v25  ;;  %v2012_v24 = vsel %vm1966_vm14, %v1921_v28, %v1989_v35  ;;  %v2971_v29 = vrot.slane %v2969_v40, 1  ;;  %6176 = vmatprep.subr.bf16.mxu0 %v6422_v37 }
 0x13f   : > { %v2314_v33 = vcombine.high %v2012_v24, %v2012_v24  ;;  %v2321_v15 = vrot.slane %v2012_v24, %v6970_v25  ;;  %v2983_v11 = vrot.slane %v2981_v1, 1  ;;  %v2976_v17 = vrot.slane %v2974_v53, 1 }
 0x140   : > { %v2362_v31 = vrot.slane %v2348_v19, %v6970_v25  ;;  %v2972_v2 = vor.u32 %v2971_v29, %v2967_v56  ;;  %v2986_v47 = vshll.u32 %v2932_v60, 16  ;;  %v2696_v28 = vrot.slane %v7187_v36, %v6970_v25 }
 0x141   : > { %v7213_v35 = vrot.slane %v2278_v34, %v6970_v25  ;;  %v2313_v40 = vcombine.high %v7165_v14, %v7165_v14  ;;  %v2984_v22 = vor.u32 %v2983_v11, %v2979_v49  ;;  %6177 = vmatpush3.bf16.msra.mxu0 %v6422_v37  ;;  %v2363_v24 = vcombine.high %v2355_v13, %v2355_v13 }
 0x142   : > { %v7218_v55 = vrot.slane %v2314_v33, %v6970_v25  ;;  %v2977_v1 = vsel %vm2965_vm12, %v2972_v2, %v2976_v17  ;;  %v2988_v56 = vrot.slane %v2986_v47, 1  ;;  %6178 = vmatprep.subr.bf16.mxu0 %v6424_v16  ;;  %v2364_v60 = vcombine.high %v2362_v31, %v2362_v31  ;;  %v6423_v33 = vld [vmem:[%s8577_s5 + $0x30] sm:$0xff]  }
 0x143   : > { %v2329_v53 = vcombine.high %v2321_v15, %v2321_v15  ;;  %6062 = vmatprep.mubr.bf16.mxu1 %v2977_v1  ;;  %v1932_v34 = vadd.f32 %v7115_v27, %v6966_v21  ;;  %v7229_v37 = vcombine.low %v2566_v5, %v2573_v0  ;;  %v7234_v47 = vcombine.low %v2730_v57, %v2737_v46  ;;  %v6426_v0 = vld [vmem:[%s8577_s5 + $0x120] sm:$0xff]  }
 0x144   : > { %v7237_v19 = vcombine.low %v7171_v62, %v2279_v43  ;;  %v7240_v29 = vsel %vm2965_vm12, %v2984_v22, %v2988_v56  ;;  %v2905_v50 = vsel %vm2428_vm8, %v7079_v61, 0.0  ;;  %v7248_v48 = vcombine.low %v2313_v40, %v2321_v15 }
 0x145   : > { %6063 = vmatmul.mubr.bf16.vlgmr.msra.gmra.mxu1 %v7240_v29  ;;  %vm1969_vm15 = vcmp.gt.f32.partialorder %v1932_v34, 0.0  ;;  %v1992_v5 = vmul.f32 0.1, %v1932_v34  ;;  %v2907_v27 = vsel %vm2433_vm11, %v2581_v4, 0.0  ;;  %6179 = vmatpush3.bf16.msra.mxu0 %v6424_v16  ;;  %v7256_v62 = vcombine.low %v2355_v13, %v2363_v24 }
 0x146   : > { %v7259_v57 = vpack.c.bf16 %v7229_v37, %v2905_v50  ;;  %v7261_v43 = vpack.c.bf16 %v2907_v27, %v2907_v27  ;;  %v1924_v15 = vadd.f32 %v6966_v21, %v7136_v7  ;;  %6079 = vmatpush3.bf16.msra.mxu1 %v6960_v18  ;;  %v2788_v46 = vcombine.low %v2362_v31, %v2364_v60  ;;  %v6425_v7 = vld [vmem:[%s8577_s5 + $0x28] sm:$0xff]  }
 0x147   : > { %v2747_v4 = vcombine.low %v2329_v53, %v7218_v55  ;;  %v2015_v16 = vsel %vm1969_vm15, %v1932_v34, %v1992_v5  ;;  %v2622_v13 = vrot.slane %v2194_v6, %v6970_v25  ;;  %6080 = vmatprep.subr.bf16.mxu1 %v6423_v33  ;;  %v2330_v31 = vcombine.high %v7218_v55, %v7218_v55  ;;  %v6427_v53 = vld [vmem:[%s8577_s5 + $0x20] sm:$0xff]   ;;  %v6430_v34 = vld [vmem:[%s8577_s5 + $0x110] sm:$0xff]  }
 0x148   : > { %v2365_v49 = vcombine.high %v2015_v16, %v2015_v16  ;;  %v2372_v18 = vrot.slane %v2015_v16, %v6970_v25  ;;  %v3400_v11 = vrot.slane %v7259_v57, 1  ;;  %6180 = vmatprep.subr.bf16.mxu0 %v6426_v0  ;;  %v3401_v2 = vrot.slane %v7261_v43, 1 }
 0x149   : > { %vm1967_vm0 = vcmp.gt.f32.partialorder %v1924_v15, 0.0  ;;  %v1990_v17 = vmul.f32 0.1, %v1924_v15  ;;  %v2908_v51 = vsel %vm2428_vm8, %v7077_v59, 0.0  ;;  %6181 = vmatpush3.bf16.msra.mxu0 %v6426_v0  ;;  %v2910_v22 = vsel %vm2433_vm11, %v2622_v13, 0.0 }
 0x14a   : > { %v2379_v6 = vrot.slane %v2365_v49, %v6970_v25  ;;  %v2380_v40 = vcombine.high %v2372_v18, %v2372_v18  ;;  %v7289_v24 = vpack.c.bf16 %v7146_v32, %v2908_v51  ;;  %6081 = vmatpush3.bf16.msra.mxu1 %v6423_v33  ;;  %6182 = vmatprep.subr.bf16.mxu0 %v6428_v30  ;;  %v2998_v36 = vshll.u32 %v7261_v43, 16 }
 0x14b   : > { %v7292_v55 = vsel %vm3393_vm6, %v3400_v11, %v3401_v2  ;;  %v2013_v1 = vsel %vm1967_vm0, %v1924_v15, %v1990_v17  ;;  %v7294_v56 = vpack.c.bf16 %v2910_v22, %v2910_v22  ;;  %v1945_v60 = vadd.f32 %v7155_v52, %v6966_v21  ;;  %6082 = vmatprep.subr.bf16.mxu1 %v6425_v7  ;;  %v6432_v11 = vld [vmem:[%s8577_s5 + $0x108] sm:$0xff]  }
 0x14c   : > { %v2754_v33 = vrot.slane %v7248_v48, %v6970_v25  ;;  %v2761_v50 = vrot.slane %v2747_v4, %v6970_v25  ;;  %6130 = vmatprep.mubr.bf16.mxu0 %v7292_v55  ;;  %v2331_v0 = vcombine.high %v2013_v1, %v2013_v1  ;;  %v2338_v5 = vrot.slane %v2013_v1, %v6970_v25  ;;  %v6434_v1 = vld [vmem:[%s8577_s5 + $0x100] sm:$0xff]  }
 0x14d   : > { %v2802_v52 = vrot.slane %v2788_v46, %v6970_v25  ;;  %v2381_v27 = vcombine.high %v2379_v6, %v2379_v6  ;;  %v3403_v15 = vrot.slane %v7289_v24, 1  ;;  %v3404_v16 = vrot.slane %v7294_v56, 1  ;;  %6183 = vmatpush3.bf16.msra.mxu0 %v6428_v30  ;;  %v6429_v30 = vld [vmem:[%s8577_s5 + $0x18] sm:$0xff]  }
 0x14e   : > { %v7312_v13 = vcombine.low %v2372_v18, %v2380_v40  ;;  %v7315_v49 = vrot.slane %v2331_v0, %v6970_v25  ;;  %v2346_v48 = vcombine.high %v2338_v5, %v2338_v5  ;;  %v1995_v4 = vmul.f32 0.1, %v1945_v60  ;;  %6083 = vmatpush3.bf16.msra.mxu1 %v6425_v7  ;;  %6184 = vmatprep.subr.bf16.mxu0 %v6430_v34 }
 0x14f   : > { %v2795_v46 = vrot.slane %v7256_v62, %v6970_v25  ;;  %v2763_v2 = vcombine.low %v2330_v31, %v2338_v5  ;;  %v7323_v17 = vsel %vm3393_vm6, %v3403_v15, %v3404_v16  ;;  %vm1972_vm1 = vcmp.gt.f32.partialorder %v1945_v60, 0.0  ;;  %6084 = vmatprep.subr.bf16.mxu1 %v6427_v53 }
 0x150   : > { %v7334_v7 = vcombine.low %v2689_v20, %v2696_v28  ;;  %v2713_v62 = vrot.slane %v7237_v19, %v6970_v25  ;;  %v7338_v18 = vcombine.low %v2754_v33, %v2761_v50  ;;  %v2764_v31 = vcombine.low %v2346_v48, %v7315_v49  ;;  %6131 = vmatmul.mubr.bf16.gmra.mxu0 %v7323_v17  ;;  %v7382_v48 = vld [vmem:[%s8577_s5 + $0x1b8] sm:$0xff]  }
 0x151   : > { %v7342_v51 = vcombine.low %v2795_v46, %v2802_v52  ;;  %v2993_v40 = vshll.u32 %v7259_v57, 16  ;;  %v1937_v39 = vadd.f32 %v6966_v21, %v7168_v58  ;;  %6185 = vmatpush3.bf16.msra.mxu0 %v6430_v34  ;;  %v7348_v20 = vcombine.low %v2379_v6, %v2381_v27  ;;  %v6431_v6 = vld [vmem:[%s8577_s5 + $0x10] sm:$0xff]  }
 0x152   : > { %v2812_v28 = vrot.slane %v7312_v13, %v6970_v25  ;;  %v7353_v22 = vsel %vm1972_vm1, %v1945_v60, %v1995_v4  ;;  %6085 = vmatpush3.bf16.msra.mxu1 %v6427_v53  ;;  %6186 = vmatprep.subr.bf16.mxu0 %v6432_v11  ;;  %v2771_v43 = vrot.slane %v2763_v2, %v6970_v25  ;;  %v2991_v21 = vshrl.u32 %v7259_v57, 16 }
 0x153   : > { %v2778_v33 = vrot.slane %v2764_v31, %v6970_v25  ;;  %v2995_v58 = vrot.slane %v2993_v40, 1  ;;  %6086 = vmatprep.subr.bf16.mxu1 %v6429_v30  ;;  %v3000_v60 = vrot.slane %v2998_v36, 1  ;;  %v1993_v34 = vmul.f32 0.1, %v1937_v39 }
 0x154   : > { %v3005_v53 = vshll.u32 %v7289_v24, 16  ;;  %v3010_v50 = vshll.u32 %v7294_v56, 16  ;;  %vm1970_vm2 = vcmp.gt.f32.partialorder %v1937_v39, 0.0  ;;  %v2911_v5 = vsel %vm2428_vm8, %v7162_v54, 0.0 }
 0x155   : > { %v2996_v0 = vor.u32 %v2995_v58, %v2991_v21  ;;  %v8593_v57 = vrot.slane %v7084_v26, %v6970_v25  ;;  %6187 = vmatpush3.bf16.msra.mxu0 %v6432_v11  ;;  %v2819_v27 = vrot.slane %v7348_v20, %v6970_v25  ;;  %v2347_v15 = vcombine.high %v7315_v49, %v7315_v49 }
 0x156   : > { %v3003_v56 = vshrl.u32 %v7289_v24, 16  ;;  %v3007_v16 = vrot.slane %v3005_v53, 1  ;;  %6087 = vmatpush3.bf16.msra.mxu1 %v6429_v30  ;;  %6188 = vmatprep.subr.bf16.mxu0 %v6434_v1  ;;  %v7384_v26 = vcombine.low %v2771_v43, %v2778_v33  ;;  %v2937_v11 = vpack.c.bf16 %v7105_v44, %v2911_v5  ;;  %v6433_v24 = vld [vmem:[%s8577_s5 + $0x8] sm:$0xff]  }
 0x157   : > { %v2913_v52 = vsel %vm2433_vm11, %v8593_v57, 0.0  ;;  %v7387_v4 = vsel %vm2965_vm12, %v2996_v0, %v3000_v60  ;;  %6088 = vmatprep.subr.bf16.mxu1 %v6431_v6  ;;  %v7395_v49 = vsel %vm1970_vm2, %v1937_v39, %v1993_v34  ;;  %v3012_v30 = vrot.slane %v3010_v50, 1 }
 0x158   : > { %v2938_v46 = vpack.c.bf16 %v2913_v52, %v2913_v52  ;;  %6066 = vmatprep.mubr.bf16.mxu1 %v7387_v4  ;;  %v3008_v2 = vor.u32 %v3007_v16, %v3003_v56  ;;  %v2914_v31 = vsel %vm2428_vm8, %v7177_v45, 0.0  ;;  %v3406_v40 = vrot.slane %v2937_v11, 1 }
 0x159   : > { %v2916_v43 = vsel %vm2433_vm11, %v7213_v35, 0.0  ;;  %v2939_v33 = vpack.c.bf16 %v7334_v7, %v2914_v31  ;;  %6189 = vmatpush3.bf16.msra.mxu0 %v6434_v1  ;;  %v2382_v21 = vcombine.high %v7395_v49, %v7395_v49  ;;  %v3017_v35 = vshll.u32 %v2937_v11, 16  ;;  %v6435_v1 = vld [vmem:[%s8577_s5] sm:$0xff]  }
 0x15a   : > { %v3407_v36 = vrot.slane %v2938_v46, 1  ;;  %v7407_v39 = vsel %vm2965_vm12, %v3008_v2, %v3012_v30  ;;  %v2940_v58 = vpack.c.bf16 %v2916_v43, %v2916_v43  ;;  %6089 = vmatpush3.bf16.msra.mxu1 %v6431_v6  ;;  %6238 = vmatprep.subr.bf16.mxu0 %v7382_v48  ;;  %v3022_v53 = vshll.u32 %v2938_v46, 16 }
 0x15b   : > { %6067 = vmatmul.mubr.bf16.gmra.mxu1 %v7407_v39  ;;  %v3409_v34 = vrot.slane %v2939_v33, 1  ;;  %6090 = vmatprep.subr.bf16.mxu1 %v6433_v24  ;;  %v7419_v50 = vrot.slane %v7395_v49, %v6970_v25  ;;  %v3029_v0 = vshll.u32 %v2939_v33, 16  ;;  %v3015_v57 = vshrl.u32 %v2937_v11, 16 }
 0x15c   : > { %v7412_v60 = vsel %vm3393_vm6, %v3406_v40, %v3407_v36  ;;  %v3410_v6 = vrot.slane %v2940_v58, 1  ;;  %v3034_v5 = vshll.u32 %v2940_v58, 16  ;;  %v3019_v52 = vrot.slane %v3017_v35, 1 }
 0x15d   : > { %6134 = vmatprep.mubr.bf16.mxu0 %v7412_v60  ;;  %v8594_v56 = vrot.slane %v7120_v42, %v6970_v25  ;;  %v8595_v46 = vrot.slane %v7165_v14, %v6970_v25  ;;  %v3027_v30 = vshrl.u32 %v2939_v33, 16  ;;  %v3031_v11 = vrot.slane %v3029_v0, 1 }
 0x15e   : > { %v7436_v2 = vsel %vm3393_vm6, %v3409_v34, %v3410_v6  ;;  %6091 = vmatpush3.bf16.msra.mxu1 %v6433_v24  ;;  %v3020_v42 = vor.u32 %v3019_v52, %v3015_v57  ;;  %v3024_v40 = vrot.slane %v3022_v53, 1  ;;  %v2786_v14 = vrot.slane %v2347_v15, %v6970_v25 }
 0x15f   : > { %v7428_v16 = vcombine.low %v2713_v62, %v8594_v56  ;;  %v2919_v49 = vsel %vm2433_vm11, %v8595_v46, 0.0  ;;  %6135 = vmatmul.mubr.bf16.gmra.mxu0 %v7436_v2  ;;  %6092 = vmatprep.subr.bf16.mxu1 %v6435_v1  ;;  %v7446_v62 = vld [vmem:[%s8577_s5 + $0xf8] sm:$0xff]   ;;  %v3032_v36 = vor.u32 %v3031_v11, %v3027_v30  ;;  %v3036_v43 = vrot.slane %v3034_v5, 1 }
 0x160   : > { %v2942_v31 = vpack.c.bf16 %v2919_v49, %v2919_v49  ;;  %v2920_v33 = vsel %vm2428_vm8, %v7338_v18, 0.0  ;;  %v7453_v58 = vsel %vm2965_vm12, %v3020_v42, %v3024_v40  ;;  %v2922_v15 = vsel %vm2433_vm11, %v2786_v14, 0.0  ;;  %v1939_v14 = vpop.f32.mrf.mxu0 }
 0x161   : > { %v2917_v19 = vsel %vm2428_vm8, %v7428_v16, 0.0  ;;  %v2943_v35 = vpack.c.bf16 %v7384_v26, %v2920_v33  ;;  %6070 = vmatprep.mubr.bf16.mxu1 %v7453_v58  ;;  %v7460_v53 = vsel %vm2965_vm12, %v3032_v36, %v3036_v43  ;;  %v7469_v57 = vcombine.low %v2812_v28, %v2819_v27 }
 0x162   : > { %v2941_v24 = vpack.c.bf16 %v7234_v47, %v2917_v19  ;;  %v3413_v34 = vrot.slane %v2942_v31, 1  ;;  %v3046_v5 = vshll.u32 %v2942_v31, 16  ;;  %6093 = vmatpush3.bf16.msra.mxu1 %v6435_v1  ;;  %v2827_v52 = vrot.slane %v7419_v50, %v6970_v25 }
 0x163   : > { %6071 = vmatmul.mubr.bf16.gmra.mxu1 %v7460_v53  ;;  %v2944_v56 = vpack.c.bf16 %v2922_v15, %v2922_v15  ;;  %v3415_v46 = vrot.slane %v2943_v35, 1  ;;  %6142 = vmatprep.subr.bf16.mxu1 %v7446_v62  ;;  %v3053_v30 = vshll.u32 %v2943_v35, 16  ;;  %v7480_v13 = vrot.slane %v7353_v22, %v6970_v25 }
 0x164   : > { %v3412_v6 = vrot.slane %v2941_v24, 1  ;;  %v3041_v0 = vshll.u32 %v2941_v24, 16  ;;  %v3039_v49 = vshrl.u32 %v2941_v24, 16  ;;  %v2396_v28 = vrot.slane %v2382_v21, %v6970_v25 }
 0x165   : > { %v3416_v27 = vrot.slane %v2944_v56, 1  ;;  %v3058_v11 = vshll.u32 %v2944_v56, 16  ;;  %v3048_v42 = vrot.slane %v3046_v5, 1  ;;  %v3051_v40 = vshrl.u32 %v2943_v35, 16 }
 0x166   : > { %v7476_v1 = vsel %vm3393_vm6, %v3412_v6, %v3413_v34  ;;  %v3043_v20 = vrot.slane %v3041_v0, 1  ;;  %v3055_v19 = vrot.slane %v3053_v30, 1  ;;  %v2923_v22 = vsel %vm2428_vm8, %v7342_v51, 0.0  ;;  %v6476_v0 = vld [vmem:[%s8576_s4] ss:$0 sm:$0xff] }
 0x167   : > { %6138 = vmatprep.mubr.bf16.mxu0 %v7476_v1  ;;  %v7489_v36 = vsel %vm3393_vm6, %v3415_v46, %v3416_v27  ;;  %v3060_v43 = vrot.slane %v3058_v11, 1  ;;  %v2925_v21 = vsel %vm2433_vm11, %v2827_v52, 0.0  ;;  %v2945_v34 = vpack.c.bf16 %v7469_v57, %v2923_v22 }
 0x168   : > { %v3044_v31 = vor.u32 %v3043_v20, %v3039_v49  ;;  %6139 = vmatmul.mubr.bf16.gmra.mxu0 %v7489_v36  ;;  %v3056_v33 = vor.u32 %v3055_v19, %v3051_v40  ;;  %v2946_v15 = vpack.c.bf16 %v2925_v21, %v2925_v21  ;;  %v2397_v35 = vcombine.high %v7419_v50, %v7419_v50 }
 0x169   : > { %6190 = vmatprep.mubr.bf16.mxu0 %v7240_v29  ;;  %v5566_v6 = vpack.c.bf16 %v7037_v63, %v7014_v41  ;;  %v1940_v5 = vadd.f32 %v6476_v0, %v1939_v14  ;;  %v3785_v50 = vshll.u32 %v2945_v34, 16  ;;  %v2450_v46 = vstv %s7486_s17 }
 0x16a   : > { %v7497_v24 = vsel %vm2965_vm12, %v3044_v31, %v3048_v42  ;;  %v7515_v52 = vsel %vm2965_vm12, %v3056_v33, %v3060_v43  ;;  %v3790_v56 = vshll.u32 %v2946_v15, 16  ;;  %v2423_v3 = vcombine.high %v7480_v13, %v7480_v13  ;;  %v6438_v42 = vld [vmem:[%s8577_s5 + $0x1b0] sm:$0xff]  }
 0x16b   : > { %6074 = vmatprep.mubr.bf16.mxu1 %v7497_v24  ;;  %vm1971_vm4 = vcmp.gt.f32.partialorder %v1940_v5, 0.0  ;;  %v1994_v10 = vmul.f32 0.1, %v1940_v5  ;;  %v2398_v29 = vcombine.high %v2396_v28, %v2396_v28  ;;  %v3783_v41 = vshrl.u32 %v2945_v34, 16  ;;  %v6469_v43 = vld [vmem:[%s8577_s5 + $0x1f0] sm:$0xff]  }
 0x16c   : > { %6075 = vmatmul.mubr.bf16.gmra.mxu1 %v7515_v52  ;;  %v3787_v63 = vrot.slane %v3785_v50, 1  ;;  %v3792_v49 = vrot.slane %v3790_v56, 1  ;;  %v3975_v20 = vrot.slane %v2945_v34, 1  ;;  %vm7521_vm7 = vcmp.eq.s32.totalorder %v2450_v46, 1  ;;  %v6441_v46 = vld [vmem:[%s8577_s5 + $0xe8] sm:$0xff]  }
 0x16d   : > { %6094 = vmatprep.mubr.msk.bf16.mxu1 %vm5565_vm5, %v5566_v6  ;;  %v2017_v30 = vsel %vm1971_vm4, %v1940_v5, %v1994_v10  ;;  %v3976_v11 = vrot.slane %v2946_v15, 1  ;;  %v2828_v31 = vcombine.low %v2397_v35, %v2396_v28  ;;  %v2868_v22 = vrot.slane %v2423_v3, %v6970_v25  ;;  %vm7548_vm10 = vmxor %vm7521_vm7, %vm6567_vm3  ;;  %v6439_v5 = vld [vmem:[%s8577_s5 + $0xf0] sm:$0xff]   ;;  %v6467_v35 = vld [vmem:[%s8577_s5 + $0x140] sm:$0xff]  }
 0x16e   : > { %v3788_v40 = vor.u32 %v3787_v63, %v3783_v41  ;;  %v2399_v19 = vcombine.high %v2017_v30, %v2017_v30  ;;  %v2406_v14 = vrot.slane %v2017_v30, %v6970_v25  ;;  %v7554_v6 = vpack.c.bf16 %v7045_v12, %v7006_v23  ;;  %vm2458_vm3 = vmand %vm2433_vm11, %vm7548_vm10  ;;  %v6440_v23 = vld [vmem:[%s8577_s5 + $0x1a8] sm:$0xff]  }
 0x16f   : > { %v7538_v21 = vsel %vm3393_vm6, %v3975_v20, %v3976_v11  ;;  %v7560_v0 = vpack.c.bf16 %v7229_v37, %v7079_v61  ;;  %v2836_v50 = vrot.slane %v2828_v31, %v6970_v25  ;;  %v2928_v56 = vsel %vm2458_vm3, %v2868_v22, 0.0  ;;  %vm7596_vm11 = vmand %vm2428_vm8, %vm7548_vm10  ;;  %v6444_v20 = vld [vmem:[%s8577_s5 + $0x198] sm:$0xff]  }
 0x170   : > { %6191 = vmatmul.mubr.bf16.vlgmr.msra.gmra.mxu0 %v7387_v4  ;;  %v7542_v28 = vsel %vm2965_vm12, %v3788_v40, %v3792_v49  ;;  %v2413_v33 = vrot.slane %v2399_v19, %v6970_v25  ;;  %v2414_v34 = vcombine.high %v2406_v14, %v2406_v14  ;;  %v2829_v15 = vcombine.low %v2398_v29, %v2406_v14  ;;  %v6446_v40 = vld [vmem:[%s8577_s5 + $0x190] sm:$0xff]   ;;  %vm5754_vm8 = vmpackc.low %vm7548_vm10, %vm7596_vm11 }
 0x171   : > { %6194 = vmatprep.mubr.bf16.mxu0 %v7407_v39  ;;  %6239 = vmatpush3.bf16.msra.mxu0 %v7382_v48  ;;  %v2948_v29 = vpack.c.bf16 %v2928_v56, %v2928_v56  ;;  %v7609_v8 = vpack.c.bf16 %v7146_v32, %v7077_v59  ;;  %v7616_v49 = vpack.c.bf16 %v7105_v44, %v7162_v54  ;;  %v6461_v56 = vld [vmem:[%s8577_s5 + $0x158] sm:$0xff]   ;;  %vm5059_vm14 = vsmask.f32 7938 }
 0x172   : > { %6240 = vmatprep.subr.bf16.mxu0 %v6438_v42  ;;  %v2415_v12 = vcombine.high %v2413_v33, %v2413_v33  ;;  %v2845_v48 = vcombine.low %v2414_v34, %v2413_v33  ;;  %v2843_v61 = vrot.slane %v2829_v15, %v6970_v25  ;;  %v5581_v33 = vpack.c.bf16 %v7334_v7, %v7177_v45  ;;  %v6447_v34 = vld [vmem:[%s8577_s5 + $0xd0] sm:$0xff]   ;;  %v6450_v7 = vld [vmem:[%s8577_s5 + $0x180] sm:$0xff]  }
 0x173   : > { %v4343_v27 = vshll.u32 %v2948_v29, 16  ;;  %v4529_v11 = vrot.slane %v2948_v29, 1  ;;  %v7792_v29 = vld [vmem:[%s8577_s5 + $0x200] sm:$0xff]   ;;  %vm4781_vm0 = vsmask.f32 3328  ;;  %vm5287_vm5 = vcmask 1043456  }
 0x174   : > { %6095 = vmatmul.mubr.msk.bf16.vlgmr.msra.gmra.mxu1 %vm7532_vm9, %v7554_v6  ;;  %v2846_v9 = vcombine.low %v2415_v12, %v7480_v13  ;;  %v2853_v37 = vrot.slane %v2845_v48, %v6970_v25  ;;  %v7589_v3 = vcombine.low %v2836_v50, %v2843_v61  ;;  %v6451_v12 = vld [vmem:[%s8577_s5 + $0xc0] sm:$0xff]   ;;  %v7681_v48 = vld [vmem:[%s8577_s5 + $0x238] sm:$0xff]   ;;  %v7711_v50 = vld [vmem:[%s8577_s5 + $0x228] sm:$0xff]   ;;  %vm4782_vm1 = vsmask.f32 7440 }
 0x175   : > { %6143 = vmatpush3.bf16.msra.mxu1 %v7446_v62  ;;  %6098 = vmatprep.mubr.msk.bf16.mxu1 %vm7532_vm9, %v7560_v0  ;;  %v6442_v62 = vld [vmem:[%s8577_s5 + $0x1a0] sm:$0xff]   ;;  %v4345_v14 = vrot.slane %v4343_v27, 1  ;;  %v6457_v61 = vld [vmem:[%s8577_s5 + $0x168] sm:$0xff]   ;;  %vm8184_vm2 = vmor %vm4781_vm0, %vm4782_vm1 }
 0x176   : > { %6241 = vmatpush3.bf16.msra.mxu0 %v6438_v42  ;;  %6144 = vmatprep.subr.bf16.mxu1 %v6439_v5  ;;  %v2860_v10 = vrot.slane %v2846_v9, %v6970_v25  ;;  %v2926_v63 = vsel %vm7596_vm11, %v7589_v3, 0.0  ;;  %v6443_v25 = vld [vmem:[%s8577_s5 + $0xe0] sm:$0xff]   ;;  %v6445_v42 = vld [vmem:[%s8577_s5 + $0xd8] sm:$0xff]   ;;  %vm8397_vm11 = vmand %vm5287_vm5, %vm5059_vm14 }
 0x177   : > { %6242 = vmatprep.subr.bf16.mxu0 %v6440_v23  ;;  %v7727_v9 = vld [vmem:[%s8577_s5 + $0x220] sm:$0xff]  }
 0x178   : > { %6195 = vmatmul.mubr.bf16.gmra.mxu0 %v7453_v58  ;;  %v7601_v41 = vcombine.low %v2853_v37, %v2860_v10  ;;  %v7742_v37 = vld [vmem:[%s8577_s5 + $0x218] sm:$0xff]   ;;  %v6463_v10 = vld [vmem:[%s8577_s5 + $0x150] sm:$0xff]   ;;  %v6471_v13 = vld [vmem:[%s8577_s5 + $0x1e0] sm:$0xff]  }
 0x179   : > { %6145 = vmatpush3.bf16.msra.mxu1 %v6439_v5  ;;  %6198 = vmatprep.mubr.bf16.mxu0 %v7460_v53  ;;  %v7650_v5 = vpack.c.bf16 %v7234_v47, %v7428_v16  ;;  %v6449_v47 = vld [vmem:[%s8577_s5 + $0xc8] sm:$0xff]   ;;  %v5587_v16 = vpack.c.bf16 %v7384_v26, %v7338_v18  ;;  %v6453_v18 = vld [vmem:[%s8577_s5 + $0x178] sm:$0xff]   ;;  %v7695_v26 = vld [vmem:[%s8577_s5 + $0x230] sm:$0xff]  }
 0x17a   : > { %6243 = vmatpush3.bf16.msra.mxu0 %v6440_v23  ;;  %6146 = vmatprep.subr.bf16.mxu1 %v6441_v46  ;;  %v2927_v30 = vsel %vm7548_vm10, %v7601_v41, 0.0  ;;  %v5755_v59 = vpack.c.bf16 %v7601_v41, %v7589_v3  ;;  %v6448_v23 = vld [vmem:[%s8577_s5 + $0x188] sm:$0xff]   ;;  %v6468_v3 = vld [vmem:[%s8577_s5 + $0x1f8] sm:$0xff]  }
 0x17b   : > { %6244 = vmatprep.subr.bf16.mxu0 %v6442_v62  ;;  %v2947_v32 = vpack.c.bf16 %v2927_v30, %v2926_v63 }
 0x17c   : > { %6099 = vmatmul.mubr.msk.bf16.gmra.mxu1 %vm7532_vm9, %v7609_v8 }
 0x17d   : > { %6147 = vmatpush3.bf16.msra.mxu1 %v6441_v46  ;;  %6102 = vmatprep.mubr.msk.bf16.mxu1 %vm7532_vm9, %v7616_v49  ;;  %v4336_v44 = vshrl.u32 %v2947_v32, 16  ;;  %v4338_v54 = vshll.u32 %v2947_v32, 16  ;;  %v4528_v31 = vrot.slane %v2947_v32, 1  ;;  %v7757_v46 = vld [vmem:[%s8577_s5 + $0x210] sm:$0xff]  }
 0x17e   : > { %6245 = vmatpush3.bf16.msra.mxu0 %v6442_v62  ;;  %6148 = vmatprep.subr.bf16.mxu1 %v6443_v25  ;;  %v5659_v62 = vpack.c.bf16 %v7469_v57, %v7342_v51  ;;  %v7773_v51 = vld [vmem:[%s8577_s5 + $0x208] sm:$0xff]  }
 0x17f   : > { %6246 = vmatprep.subr.bf16.mxu0 %v6444_v20  ;;  %v4340_v19 = vrot.slane %v4338_v54, 1  ;;  %v7639_v22 = vsel %vm3393_vm6, %v4528_v31, %v4529_v11  ;;  %v6465_v57 = vld [vmem:[%s8577_s5 + $0x148] sm:$0xff]   ;;  %vm5032_vm6 = vcmask 1040384  }
 0x180   : > { %6199 = vmatmul.mubr.bf16.gmra.mxu0 %v7497_v24  ;;  %vm7930_vm15 = vmand %vm5032_vm6, %vm5059_vm14 }
 0x181   : > { %6149 = vmatpush3.bf16.msra.mxu1 %v6443_v25  ;;  %6202 = vmatprep.mubr.bf16.mxu0 %v7515_v52  ;;  %v4341_v15 = vor.u32 %v4340_v19, %v4336_v44 }
 0x182   : > { %6247 = vmatpush3.bf16.msra.mxu0 %v6444_v20  ;;  %6150 = vmatprep.subr.bf16.mxu1 %v6445_v42  ;;  %v8604_v20 = vmov 0 }
 0x183   : > { %6248 = vmatprep.subr.bf16.mxu0 %v6446_v40  ;;  %v7658_v45 = vsel %vm2965_vm12, %v4341_v15, %v4345_v14  ;;  %vm5033_vm12 = vsmask.f32 256 }
 0x184   : > { %6103 = vmatmul.mubr.msk.bf16.gmra.mxu1 %vm7532_vm9, %v5581_v33  ;;  %vm7901_vm13 = vmand %vm5032_vm6, %vm5033_vm12 }
 0x185   : > { %6151 = vmatpush3.bf16.msra.mxu1 %v6445_v42  ;;  %6106 = vmatprep.mubr.msk.bf16.mxu1 %vm7532_vm9, %v7650_v5  ;;  %v8605_v20 = vsel %vm7901_vm13, 4294967295, %v8604_v20 }
 0x186   : > { %6249 = vmatpush3.bf16.msra.mxu0 %v6446_v40  ;;  %6152 = vmatprep.subr.bf16.mxu1 %v6447_v34  ;;  %8606 = vst [vmem:[#allocation3_spill] sm:$0xff] %v8605_v20 }
 0x187   : > { %6250 = vmatprep.subr.bf16.mxu0 %v6448_v23 }
 0x188   : > { %6203 = vmatmul.mubr.bf16.gmra.mxu0 %v7542_v28 }
 0x189   : > { %6153 = vmatpush3.bf16.msra.mxu1 %v6447_v34  ;;  %6254 = vmatprep.mubr.msk.bf16.mxu0 %vm7532_vm9, %v7560_v0 }
 0x18a   : > { %6251 = vmatpush3.bf16.msra.mxu0 %v6448_v23  ;;  %6154 = vmatprep.subr.bf16.mxu1 %v6449_v47 }
 0x18b   : > { %6252 = vmatprep.subr.bf16.mxu0 %v6450_v7 }
 0x18c   : > { %6107 = vmatmul.mubr.msk.bf16.gmra.mxu1 %vm7532_vm9, %v5587_v16 }
 0x18d   : > { %6155 = vmatpush3.bf16.msra.mxu1 %v6449_v47  ;;  %6158 = vmatprep.mubr.msk.bf16.mxu1 %vm7532_vm9, %v7554_v6  ;;  %v6455_v6 = vld [vmem:[%s8577_s5 + $0x170] sm:$0xff]  }
 0x18e   : > { %6253 = vmatpush3.bf16.msra.mxu0 %v6450_v7  ;;  %6156 = vmatprep.subr.bf16.mxu1 %v6451_v12  ;;  %v5061_v7 = vld [vmem:[%s7890_s24 + $0x8] sm:$0x1] }
 0x18f   : > { %6302 = vmatprep.subr.bf16.mxu0 %v7681_v48 }
 0x191   : > { %6157 = vmatpush3.bf16.msra.mxu1 %v6451_v12  ;;  %6255 = vmatmul.mubr.msk.bf16.vlgmr.msra.gmra.mxu0 %vm7532_vm9, %v7609_v8  ;;  %v5062_v12 = vsel %vm7930_vm15, 0, %v5061_v7  ;;  %v5050_v7 = vld [vmem:[%s7890_s24 + $0x3c] sm:$0x1] }
 0x192   : > { %6258 = vmatprep.mubr.msk.bf16.mxu0 %vm7532_vm9, %v7616_v49  ;;  %6303 = vmatpush3.bf16.msra.mxu0 %v7681_v48  ;;  %5063 = vst [vmem:[%s7890_s24 + $0x8] sm:$0x1] %v5062_v12 }
 0x193   : > { %6206 = vmatprep.subr.bf16.mxu1 %v6453_v18  ;;  %6304 = vmatprep.subr.bf16.mxu0 %v7695_v26 }
 0x194   : > { %6159 = vmatmul.mubr.msk.bf16.vlgmr.msra.gmra.mxu1 %vm7532_vm9, %v7560_v0  ;;  %v6459_v0 = vld [vmem:[%s8577_s5 + $0x160] sm:$0xff]  }
 0x195   : > { %6207 = vmatpush3.bf16.msra.mxu1 %v6453_v18  ;;  %6162 = vmatprep.mubr.msk.bf16.mxu1 %vm7532_vm9, %v7609_v8 }
 0x196   : > { %6305 = vmatpush3.bf16.msra.mxu0 %v7695_v26  ;;  %6208 = vmatprep.subr.bf16.mxu1 %v6455_v6 }
 0x197   : > { %6306 = vmatprep.subr.bf16.mxu0 %v7711_v50 }
 0x199   : > { %6209 = vmatpush3.bf16.msra.mxu1 %v6455_v6  ;;  %6259 = vmatmul.mubr.msk.bf16.gmra.mxu0 %vm7532_vm9, %v5581_v33 }
 0x19a   : > { %6262 = vmatprep.mubr.msk.bf16.mxu0 %vm7532_vm9, %v7650_v5  ;;  %6307 = vmatpush3.bf16.msra.mxu0 %v7711_v50 }
 0x19b   : > { %6210 = vmatprep.subr.bf16.mxu1 %v6457_v61  ;;  %6308 = vmatprep.subr.bf16.mxu0 %v7727_v9 }
 0x19c   : > { %6163 = vmatmul.mubr.msk.bf16.gmra.mxu1 %vm7532_vm9, %v7616_v49  ;;  %v5038_v49 = vld [vmem:[%s7890_s24 + $0xc] sm:$0x1] }
 0x19d   : > { %6211 = vmatpush3.bf16.msra.mxu1 %v6457_v61  ;;  %6166 = vmatprep.mubr.msk.bf16.mxu1 %vm7532_vm9, %v5581_v33  ;;  %v5039_v32 = vsel %vm7901_vm13, 0, %v5038_v49  ;;  %v5044_v61 = vld [vmem:[%s7890_s24 + $0x24] sm:$0x1]  ;;  %v5067_v49 = vld [vmem:[%s7890_s24 + $0x20] sm:$0x1] }
 0x19e   : > { %6309 = vmatpush3.bf16.msra.mxu0 %v7727_v9  ;;  %6212 = vmatprep.subr.bf16.mxu1 %v6459_v0  ;;  %5040 = vst [vmem:[%s7890_s24 + $0xc] sm:$0x1] %v5039_v32 }
 0x19f   : > { %6310 = vmatprep.subr.bf16.mxu0 %v7742_v37 }
 0x1a1   : > { %6213 = vmatpush3.bf16.msra.mxu1 %v6459_v0  ;;  %6263 = vmatmul.mubr.msk.bf16.gmra.mxu0 %vm7532_vm9, %v5587_v16 }
 0x1a2   : > { %6266 = vmatprep.mubr.msk.bf16.mxu0 %vm7532_vm9, %v5659_v62  ;;  %6311 = vmatpush3.bf16.msra.mxu0 %v7742_v37 }
 0x1a3   : > { %6214 = vmatprep.subr.bf16.mxu1 %v6461_v56  ;;  %6312 = vmatprep.subr.bf16.mxu0 %v7757_v46 }
 0x1a4   : > { %6167 = vmatmul.mubr.msk.bf16.gmra.mxu1 %vm7532_vm9, %v7650_v5  ;;  %v5064_v5 = vld [vmem:[%s7890_s24 + $0x14] sm:$0x1] }
 0x1a5   : > { %6215 = vmatpush3.bf16.msra.mxu1 %v6461_v56  ;;  %6170 = vmatprep.mubr.msk.bf16.mxu1 %vm7532_vm9, %v5587_v16  ;;  %v5045_v56 = vsel %vm7901_vm13, 0, %v5044_v61 }
 0x1a6   : > { %6313 = vmatpush3.bf16.msra.mxu0 %v7757_v46  ;;  %6216 = vmatprep.subr.bf16.mxu1 %v6463_v10  ;;  %5046 = vst [vmem:[%s7890_s24 + $0x24] sm:$0x1] %v5045_v56 }
 0x1a7   : > { %6314 = vmatprep.subr.bf16.mxu0 %v7773_v51 }
 0x1a9   : > { %6217 = vmatpush3.bf16.msra.mxu1 %v6463_v10  ;;  %6267 = vmatmul.mubr.msk.bf16.gmra.mxu0 %vm5754_vm8, %v5755_v59  ;;  %v5070_v10 = vld [vmem:[%s7890_s24 + $0x2c] sm:$0x1] }
 0x1aa   : > { %6315 = vmatpush3.bf16.msra.mxu0 %v7773_v51  ;;  %6318 = vmatprep.mubr.bf16.mxu0 %v7292_v55 }
 0x1ab   : > { %6218 = vmatprep.subr.bf16.mxu1 %v6465_v57  ;;  %6316 = vmatprep.subr.bf16.mxu0 %v7792_v29 }
 0x1ac   : > { %6171 = vmatmul.mubr.msk.bf16.gmra.mxu1 %vm7532_vm9, %v5659_v62  ;;  %vm5125_vm9 = vsmask.f32 4368 }
 0x1ad   : > { %6219 = vmatpush3.bf16.msra.mxu1 %v6465_v57  ;;  %6222 = vmatprep.mubr.bf16.mxu1 %v7197_v38  ;;  %v6470_v38 = vld [vmem:[%s8577_s5 + $0x1e8] sm:$0xff]   ;;  %vm8411_vm14 = vmor %vm5033_vm12, %vm5125_vm9 }
 0x1ae   : > { %6317 = vmatpush3.bf16.msra.mxu0 %v7792_v29  ;;  %6220 = vmatprep.subr.bf16.mxu1 %v6467_v35 }
 0x1b1   : > { %6221 = vmatpush3.bf16.msra.mxu1 %v6467_v35  ;;  %6319 = vmatmul.mubr.bf16.vlgmr.msra.gmra.mxu0 %v7323_v17 }
 0x1b2   : > { %6322 = vmatprep.mubr.bf16.mxu0 %v7412_v60  ;;  %6270 = vmatprep.subr.bf16.mxu1 %v6468_v3 }
 0x1b4   : > { %6223 = vmatmul.mubr.bf16.vlgmr.msra.gmra.mxu1 %v7292_v55  ;;  %v6472_v55 = vld [vmem:[%s8577_s5 + $0x1d8] sm:$0xff]  }
 0x1b5   : > { %6271 = vmatpush3.bf16.msra.mxu1 %v6468_v3  ;;  %6226 = vmatprep.mubr.bf16.mxu1 %v7323_v17  ;;  %v6473_v17 = vld [vmem:[%s8577_s5 + $0x1d0] sm:$0xff]  }
 0x1b6   : > { %6272 = vmatprep.subr.bf16.mxu1 %v6469_v43 }
 0x1b9   : > { %6273 = vmatpush3.bf16.msra.mxu1 %v6469_v43  ;;  %6323 = vmatmul.mubr.bf16.gmra.mxu0 %v7436_v2 }
 0x1ba   : > { %6326 = vmatprep.mubr.bf16.mxu0 %v7476_v1  ;;  %6274 = vmatprep.subr.bf16.mxu1 %v6470_v38 }
 0x1bc   : > { %6227 = vmatmul.mubr.bf16.gmra.mxu1 %v7412_v60  ;;  %v6474_v60 = vld [vmem:[%s8577_s5 + $0x1c8] sm:$0xff]  }
 0x1bd   : > { %6275 = vmatpush3.bf16.msra.mxu1 %v6470_v38  ;;  %6230 = vmatprep.mubr.bf16.mxu1 %v7436_v2  ;;  %v6475_v2 = vld [vmem:[%s8577_s5 + $0x1c0] sm:$0xff]  }
 0x1be   : > { %6276 = vmatprep.subr.bf16.mxu1 %v6471_v13 }
 0x1c1   : > { %6277 = vmatpush3.bf16.msra.mxu1 %v6471_v13  ;;  %6327 = vmatmul.mubr.bf16.gmra.mxu0 %v7489_v36 }
 0x1c2   : > { %6278 = vmatprep.subr.bf16.mxu1 %v6472_v55 }
 0x1c4   : > { %6231 = vmatmul.mubr.bf16.gmra.mxu1 %v7476_v1 }
 0x1c5   : > { %6279 = vmatpush3.bf16.msra.mxu1 %v6472_v55  ;;  %6234 = vmatprep.mubr.bf16.mxu1 %v7489_v36  ;;  %v5071_v55 = vsel %vm7930_vm15, 0, %v5070_v10  ;;  %v5047_v10 = vld [vmem:[%s7890_s24 + $0x30] sm:$0x1] }
 0x1c6   : > { %6280 = vmatprep.subr.bf16.mxu1 %v6473_v17  ;;  %5072 = vst [vmem:[%s7890_s24 + $0x2c] sm:$0x1] %v5071_v55 }
 0x1c9   : > { %6281 = vmatpush3.bf16.msra.mxu1 %v6473_v17 }
 0x1ca   : > { %6282 = vmatprep.subr.bf16.mxu1 %v6474_v60 }
 0x1cc   : > { %6235 = vmatmul.mubr.bf16.gmra.mxu1 %v7538_v21 }
 0x1cd   : > { %6283 = vmatpush3.bf16.msra.mxu1 %v6474_v60  ;;  %6286 = vmatprep.mubr.bf16.mxu1 %v7387_v4 }
 0x1ce   : > { %6284 = vmatprep.subr.bf16.mxu1 %v6475_v2 }
 0x1d1   : > { %6285 = vmatpush3.bf16.msra.mxu1 %v6475_v2 }
 0x1d2   : > { %6334 = vmatprep.subr.bf16.mxu1 %v7681_v48 }
 0x1d4   : > { %6287 = vmatmul.mubr.bf16.vlgmr.msra.gmra.mxu1 %v7407_v39 }
 0x1d5   : > { %6342 = vmatpush3.bf16.msra.mxu1 %v7681_v48  ;;  %6290 = vmatprep.mubr.bf16.mxu1 %v7453_v58 }
 0x1d6   : > { %6335 = vmatprep.subr.bf16.mxu1 %v7695_v26 }
 0x1d9   : > { %6343 = vmatpush3.bf16.msra.mxu1 %v7695_v26 }
 0x1da   : > { %6336 = vmatprep.subr.bf16.mxu1 %v7711_v50 }
 0x1dc   : > { %6291 = vmatmul.mubr.bf16.gmra.mxu1 %v7460_v53 }
 0x1dd   : > { %6344 = vmatpush3.bf16.msra.mxu1 %v7711_v50  ;;  %6294 = vmatprep.mubr.bf16.mxu1 %v7497_v24 }
 0x1de   : > { %6337 = vmatprep.subr.bf16.mxu1 %v7727_v9 }
 0x1e1   : > { %6345 = vmatpush3.bf16.msra.mxu1 %v7727_v9 }
 0x1e2   : > { %6338 = vmatprep.subr.bf16.mxu1 %v7742_v37 }
 0x1e4   : > { %6295 = vmatmul.mubr.bf16.gmra.mxu1 %v7515_v52 }
 0x1e5   : > { %6346 = vmatpush3.bf16.msra.mxu1 %v7742_v37  ;;  %6298 = vmatprep.mubr.bf16.mxu1 %v7542_v28 }
 0x1e6   : > { %6339 = vmatprep.subr.bf16.mxu1 %v7757_v46 }
 0x1e9   : > { %6347 = vmatpush3.bf16.msra.mxu1 %v7757_v46  ;;  %v5041_v46 = vld [vmem:[%s7890_s24 + $0x18] sm:$0x1] }
 0x1ea   : > { %6340 = vmatprep.subr.bf16.mxu1 %v7773_v51  ;;  %v5042_v35 = vsel %vm7901_vm13, 0, %v5041_v46 }
 0x1eb   : > { %5043 = vst [vmem:[%s7890_s24 + $0x18] sm:$0x1] %v5042_v35 }
 0x1ec   : > { %6299 = vmatmul.mubr.bf16.gmra.mxu1 %v7658_v45  ;;  %v5065_v45 = vsel %vm7930_vm15, 0, %v5064_v5 }
 0x1ed   : > { %6348 = vmatpush3.bf16.msra.mxu1 %v7773_v51  ;;  %6330 = vmatprep.mubr.bf16.mxu1 %v7538_v21  ;;  %5066 = vst [vmem:[%s7890_s24 + $0x14] sm:$0x1] %v5065_v45 }
 0x1ee   : > { %6341 = vmatprep.subr.bf16.mxu1 %v7792_v29 }
 0x1f1   : > { %6349 = vmatpush3.bf16.msra.mxu1 %v7792_v29 }
 0x1f4   : > { %6331 = vmatmul.mubr.bf16.vlgmr.msra.gmra.mxu1 %v7639_v22  ;;  %v5035_v22 = vld [vmem:[%s7890_s24] sm:$0x1] }
 0x1f5   : > { %v5036_v34 = vsel %vm7901_vm13, 0, %v5035_v22 }
 0x1f6   : > { %5037 = vst [vmem:[%s7890_s24] sm:$0x1] %v5036_v34 }
 0x1fc   : > { %v7869_v4 = vpop.f32.mrf.mxu0 }
 0x1fe   : > { %v7871_v39 = vpop.f32.mrf.mxu0 }
 0x200   : > { %v7873_v58 = vpop.f32.mrf.mxu0 }
 0x202   : > { %v7875_v1 = vpop.f32.mrf.mxu0 }
 0x205   : > { %v6064_v53 = vpop.f32.mrf.mxu1 }
 0x207   : > { %v3169_v36 = vpop.f32.mrf.mxu1 }
 0x209   : > { %v6065_v52 = vpop.f32.mrf.mxu1 }
 0x20b   : > { %v7881_v28 = vpop.f32.mrf.mxu1 }
 0x210   : > { %v7877_v24 = vpop.f32.mrf.mxu0 }
 0x212   : > { %v7879_v21 = vpop.f32.mrf.mxu0 }
 0x214   : > { %v7883_v41 = vpop.f32.mrf.mxu0 }
 0x216   : > { %v7896_v25 = vpop.f32.mrf.mxu0 }
 0x21b   : > { %v7892_v63 = vpop.f32.mrf.mxu1 }
 0x21d   : > { %v7894_v8 = vpop.f32.mrf.mxu1 }
 0x21f   : > { %v7905_v30 = vpop.f32.mrf.mxu1  ;;  %v7907_v59 = vpop.f32.mrf.mxu0 }
 0x221   : > { %v7912_v27 = vpop.f32.mrf.mxu1  ;;  %v7914_v11 = vpop.f32.mrf.mxu0 }
 0x223   : > { %v7916_v44 = vpop.f32.mrf.mxu1  ;;  %v7918_v54 = vpop.f32.mrf.mxu0 }
 0x225   : > { %v7920_v31 = vpop.f32.mrf.mxu1  ;;  %v7922_v42 = vpop.f32.mrf.mxu0 }
 0x227   : > { %v7924_v40 = vpop.f32.mrf.mxu1 }
 0x228   : > { %v7926_v19 = vpop.f32.mrf.mxu0 }
 0x229   : > { %v7935_v33 = vpop.f32.mrf.mxu1 }
 0x22a   : > { %v7939_v15 = vpop.f32.mrf.mxu0 }
 0x22c   : > { %v7943_v23 = vpop.f32.mrf.mxu1  ;;  %v7947_v47 = vpop.f32.mrf.mxu0 }
 0x22e   : > { %v7951_v16 = vpop.f32.mrf.mxu1  ;;  %v7955_v48 = vpop.f32.mrf.mxu0 }
 0x230   : > { %v7958_v18 = vpop.f32.mrf.mxu1  ;;  %v7960_v26 = vpop.f32.mrf.mxu0 }
 0x232   : > { %v7962_v6 = vpop.f32.mrf.mxu1  ;;  %v7964_v50 = vpop.f32.mrf.mxu0 }
 0x234   : > { %v6096_v9 = vpop.f32.mrf.mxu1  ;;  %v7967_v37 = vpop.f32.mrf.mxu0 }
 0x235   : > { %v3323_v0 = vadd.f32 %v6096_v9, %v6064_v53 }
 0x236   : > { %v3314_v62 = vpop.f32.mrf.mxu1  ;;  %v7974_v57 = vpop.f32.mrf.mxu0 }
 0x237   : > { %v3315_v51 = vadd.f32 %v3314_v62, %v3169_v36  ;;  %v7977_v29 = vadd.f32 %v7869_v4, %v3323_v0 }
 0x238   : > { %v6097_v3 = vpop.f32.mrf.mxu1  ;;  %v7982_v38 = vpop.f32.mrf.mxu0 }
 0x239   : > { %v3326_v43 = vadd.f32 %v6097_v3, %v6065_v52  ;;  %v7985_v13 = vadd.f32 %v7871_v39, %v3315_v51  ;;  %v5076_v51 = vld [vmem:[%s7890_s24 + $0x44] sm:$0x1] }
 0x23a   : > { %v3317_v17 = vpop.f32.mrf.mxu1  ;;  %v7991_v2 = vpop.f32.mrf.mxu0 }
 0x23b   : > { %v3318_v60 = vadd.f32 %v3317_v17, %v7881_v28  ;;  %v7994_v4 = vadd.f32 %v7873_v58, %v3326_v43  ;;  %v5068_v28 = vsel %vm7930_vm15, 0, %v5067_v49 }
 0x23c   : > { %v6100_v53 = vpop.f32.mrf.mxu1  ;;  %v7997_v52 = vpop.f32.mrf.mxu0  ;;  %5069 = vst [vmem:[%s7890_s24 + $0x20] sm:$0x1] %v5068_v28 }
 0x23d   : > { %v3339_v36 = vadd.f32 %v6100_v53, %v7892_v63  ;;  %v8000_v39 = vadd.f32 %v7875_v1, %v3318_v60 }
 0x23e   : > { %v3330_v32 = vpop.f32.mrf.mxu1  ;;  %v8006_v34 = vpop.f32.mrf.mxu0 }
 0x23f   : > { %v3331_v22 = vadd.f32 %v3330_v32, %v7894_v8  ;;  %v8009_v58 = vadd.f32 %v7877_v24, %v3339_v36  ;;  %v5051_v8 = vsel %vm7901_vm13, 0, %v5050_v7 }
 0x240   : > { %v6101_v63 = vpop.f32.mrf.mxu1  ;;  %v8013_v45 = vpop.f32.mrf.mxu0  ;;  %5052 = vst [vmem:[%s7890_s24 + $0x3c] sm:$0x1] %v5051_v8 }
 0x241   : > { %v3342_v5 = vadd.f32 %v6101_v63, %v7905_v30  ;;  %v8016_v1 = vadd.f32 %v7879_v21, %v3331_v22  ;;  %v5056_v63 = vld [vmem:[%s7890_s24 + $0x54] sm:$0x1] }
 0x242   : > { %v3333_v12 = vpop.f32.mrf.mxu1  ;;  %v8022_v24 = vpop.f32.mrf.mxu0 }
 0x243   : > { %v3334_v61 = vadd.f32 %v3333_v12, %v7912_v27  ;;  %v8025_v9 = vadd.f32 %v7883_v41, %v3342_v5 }
 0x244   : > { %v6104_v30 = vpop.f32.mrf.mxu1  ;;  %v8029_v0 = vpop.f32.mrf.mxu0 }
 0x245   : > { %v3355_v21 = vadd.f32 %v6104_v30, %v7916_v44  ;;  %v8032_v56 = vadd.f32 %v7896_v25, %v3334_v61  ;;  %v5048_v44 = vsel %vm7901_vm13, 0, %v5047_v10 }
 0x246   : > { %v3346_v46 = vpop.f32.mrf.mxu1  ;;  %v8035_v27 = vpop.f32.mrf.mxu0  ;;  %5049 = vst [vmem:[%s7890_s24 + $0x30] sm:$0x1] %v5048_v44 }
 0x247   : > { %v3347_v62 = vadd.f32 %v3346_v46, %v7920_v31  ;;  %v8038_v41 = vadd.f32 %v7907_v59, %v3355_v21  ;;  %v5073_v31 = vld [vmem:[%s7890_s24 + $0x38] sm:$0x1]  ;;  %v5077_v59 = vsel %vm7930_vm15, 0, %v5076_v51 }
 0x248   : > { %v6105_v35 = vpop.f32.mrf.mxu1  ;;  %v8045_v25 = vpop.f32.mrf.mxu0  ;;  %5078 = vst [vmem:[%s7890_s24 + $0x44] sm:$0x1] %v5077_v59 }
 0x249   : > { %v3358_v3 = vadd.f32 %v6105_v35, %v7924_v40  ;;  %v8048_v43 = vadd.f32 %v7914_v11, %v3347_v62  ;;  %v5074_v11 = vsel %vm7930_vm15, 0, %v5073_v31  ;;  %v5079_v35 = vld [vmem:[%s7890_s24 + $0x50] sm:$0x1] }
 0x24a   : > { %v3349_v55 = vpop.f32.mrf.mxu1  ;;  %v8055_v60 = vpop.f32.mrf.mxu0  ;;  %5075 = vst [vmem:[%s7890_s24 + $0x38] sm:$0x1] %v5074_v11 }
 0x24b   : > { %v3350_v17 = vadd.f32 %v3349_v55, %v7935_v33  ;;  %v8058_v53 = vadd.f32 %v7918_v54, %v3358_v3 }
 0x24c   : > { %v6108_v40 = vpop.f32.mrf.mxu1  ;;  %v8064_v49 = vpop.f32.mrf.mxu0 }
 0x24d   : > { %v3371_v36 = vadd.f32 %v6108_v40, %v7943_v23  ;;  %v8067_v32 = vadd.f32 %v7922_v42, %v3350_v17  ;;  %v5057_v23 = vsel %vm7901_vm13, 0, %v5056_v63  ;;  %v6477_v63 = vld [vmem:[#allocation2 + $0x18] sm:$0xf] }
 0x24e   : > { %v3362_v33 = vpop.f32.mrf.mxu1  ;;  %v8071_v22 = vpop.f32.mrf.mxu0  ;;  %5058 = vst [vmem:[%s7890_s24 + $0x54] sm:$0x1] %v5057_v23  ;;  %v4812_v23 = vshll.u32 %v6477_v63, 16 }
 0x24f   : > { %v3363_v28 = vadd.f32 %v3362_v33, %v7951_v16  ;;  %v8074_v54 = vadd.f32 %v7926_v19, %v3371_v36 }
 0x250   : > { %v6109_v5 = vpop.f32.mrf.mxu1 }
 0x251   : > { %v3374_v7 = vadd.f32 %v6109_v5, %v7958_v18  ;;  %v8080_v42 = vpop.f32.mrf.mxu0  ;;  %v8083_v12 = vadd.f32 %v7939_v15, %v3363_v28  ;;  %v5053_v15 = vld [vmem:[%s7890_s24 + $0x48] sm:$0x1]  ;;  %v4809_v5 = vshrl.u32 %v6477_v63, 16 }
 0x252   : > { %v3365_v16 = vpop.f32.mrf.mxu1  ;;  %v5054_v62 = vsel %vm7901_vm13, 0, %v5053_v15 }
 0x253   : > { %v3366_v19 = vadd.f32 %v3365_v16, %v7962_v6  ;;  %v8087_v8 = vpop.f32.mrf.mxu0  ;;  %v8090_v61 = vadd.f32 %v7947_v47, %v3374_v7  ;;  %v5082_v6 = vld [vmem:[%s7890_s24 + $0x5c] sm:$0x1]  ;;  %5055 = vst [vmem:[%s7890_s24 + $0x48] sm:$0x1] %v5054_v62 }
 0x254   : > { %8609 = vst [vmem:[#allocation4_spill] sm:$0xff] %v8087_v8  ;;  %v8092_v30 = vpop.f32.mrf.mxu1  ;;  %v5083_v51 = vsel %vm7930_vm15, 0, %v5082_v6  ;;  %v6479_v6 = vld [vmem:[#allocation2 + $0x1c] sm:$0xf] }
 0x255   : > { %v8094_v18 = vpop.f32.mrf.mxu0  ;;  %v8097_v21 = vadd.f32 %v7955_v48, %v3366_v19  ;;  %5084 = vst [vmem:[%s7890_s24 + $0x5c] sm:$0x1] %v5083_v51  ;;  %v5080_v48 = vsel %vm7930_vm15, 0, %v5079_v35  ;;  %v6478_v19 = vld [vmem:[#allocation2 + $0xc] sm:$0xf]  ;;  %v4818_v51 = vshll.u32 %v6479_v6, 16 }
 0x256   : > { %8610 = vst [vmem:[#allocation5_spill] sm:$0xff] %v8094_v18  ;;  %v8100_v46 = vpop.f32.mrf.mxu1  ;;  %5081 = vst [vmem:[%s7890_s24 + $0x50] sm:$0x1] %v5080_v48  ;;  %v4785_v15 = vshrl.u32 %v6478_v19, 16  ;;  %v6480_v35 = vld [vmem:[#allocation2 + $0x10] sm:$0xf] }
 0x257   : > { %v8105_v10 = vpop.f32.mrf.mxu0  ;;  %v4822_v48 = vshrl.u32 %v6479_v6, 16  ;;  %v8148_v6 = vrot.slane %v4818_v51, 5 }
 0x258   : > { %8611 = vst [vmem:[#allocation6_spill] sm:$0xff] %v8105_v10  ;;  %v8108_v47 = vpop.f32.mrf.mxu1 }
 0x259   : > { %v8118_v3 = vpop.f32.mrf.mxu0 }
 0x25a   : > { %v8114_v44 = vpop.f32.mrf.mxu1  ;;  %8612 = vst [vmem:[#allocation7_spill] sm:$0xff] %v8118_v3 }
 0x25b   : > { %v8125_v59 = vpop.f32.mrf.mxu0 }
 0x25c   : > { %v8121_v31 = vpop.f32.mrf.mxu1  ;;  %8613 = vst [vmem:[#allocation8_spill] sm:$0xff] %v8125_v59 }
 0x25d   : > { %v8128_v36 = vpop.f32.mrf.mxu0 }
 0x25e   : > { %v8123_v55 = vpop.f32.mrf.mxu1  ;;  %8614 = vst [vmem:[#allocation9_spill] sm:$0xff] %v8128_v36 }
 0x260   : > { %v6165_v17 = vpop.f32.mrf.mxu1 }
 0x261   : > { %v3773_v40 = vadd.f32 %v6165_v17, %v8025_v9  ;;  %v4788_v9 = vshll.u32 %v6478_v19, 16  ;;  %v8138_v17 = vpop.f32.mrf.mxu0  ;;  %v4787_v19 = vrot.slane %v4785_v15, 4 }
 0x262   : > { %v3722_v11 = vpop.f32.mrf.mxu1  ;;  %8616 = vst [vmem:[#allocation11_spill] sm:$0xff] %v8138_v17  ;;  %v4824_v17 = vrot.slane %v4822_v48, 4  ;;  %v6482_v48 = vld [vmem:[#allocation2 + $0x20] sm:$0x1] }
 0x263   : > { %v3771_v33 = vadd.f32 %v3722_v11, %v8032_v56  ;;  %v8132_v14 = vadd.f32 %v7997_v52, %v3773_v40  ;;  %v4794_v56 = vshll.u32 %v6480_v35, 16  ;;  %v4798_v52 = vshrl.u32 %v6480_v35, 16 }
 0x264   : > { %v6168_v28 = vpop.f32.mrf.mxu1  ;;  %v4790_v20 = vrot.slane %v4788_v9, 5 }
 0x265   : > { %v3776_v7 = vadd.f32 %v6168_v28, %v8038_v41  ;;  %v8136_v16 = vadd.f32 %v8006_v34, %v3771_v33  ;;  %v4811_v34 = vrot.slane %v4809_v5, 4  ;;  %v4814_v33 = vrot.slane %v4812_v23, 5 }
 0x266   : > { %v3735_v62 = vpop.f32.mrf.mxu1  ;;  %v8150_v35 = vrot.slane %v4794_v56, 5  ;;  %v4791_v56 = vor.u32 %v4790_v20, %v4787_v19 }
 0x267   : > { %8615 = vst [vmem:[#allocation10_spill] sm:$0xff] %v8136_v16  ;;  %v3774_v40 = vadd.f32 %v3735_v62, %v8048_v43  ;;  %v8142_v11 = vadd.f32 %v8013_v45, %v3776_v7  ;;  %v4800_v43 = vrot.slane %v4798_v52, 4  ;;  %v8152_v62 = vpop.f32.mrf.mxu0  ;;  %v4815_v15 = vor.u32 %v4814_v33, %v4811_v34 }
 0x268   : > { %v6169_v41 = vpop.f32.mrf.mxu1  ;;  %8619 = vst [vmem:[#allocation14_spill] sm:$0xff] %v8152_v62  ;;  %v4828_v52 = vshll.u32 %v6482_v48, 16  ;;  %v4792_v59 = vrot.slane %v4791_v56, 4  ;;  %v6486_v56 = vld [vmem:[#allocation2 + $0x28] sm:$0xf] }
 0x269   : > { %8617 = vst [vmem:[#allocation12_spill] sm:$0xff] %v8142_v11  ;;  %v3777_v28 = vadd.f32 %v6169_v41, %v8058_v53  ;;  %v8146_v63 = vadd.f32 %v8022_v24, %v3774_v40  ;;  %v6481_v53 = vld [vmem:[#allocation2 + $0x30] sm:$0xf]  ;;  %v8164_v62 = vpop.f32.mrf.mxu0  ;;  %v4816_v19 = vrot.slane %v4815_v15, 4 }
 0x26a   : > { %v3738_v36 = vpop.f32.mrf.mxu1  ;;  %v4857_v23 = vshrl.u32 %v6481_v53, 16  ;;  %v4860_v24 = vshll.u32 %v6481_v53, 16  ;;  %8622 = vst [vmem:[#allocation17_spill] sm:$0xff] %v8164_v62  ;;  %v4830_v62 = vrot.slane %v4828_v52, 5  ;;  %v4842_v52 = vshll.u32 %v6486_v56, 16 }
 0x26b   : > { %8618 = vst [vmem:[#allocation13_spill] sm:$0xff] %v8146_v63  ;;  %v3775_v45 = vadd.f32 %v3738_v36, %v8067_v32  ;;  %v8156_v5 = vadd.f32 %v8029_v0, %v3777_v28  ;;  %v4825_v32 = vor.u32 %v4824_v17, %v8148_v6  ;;  %v4801_v0 = vor.u32 %v4800_v43, %v8150_v35  ;;  %v6483_v36 = vld [vmem:[#allocation2 + $0x14] sm:$0x1] }
 0x26c   : > { %v6172_v7 = vpop.f32.mrf.mxu1  ;;  %v4804_v41 = vshll.u32 %v6483_v36, 16  ;;  %v6484_v28 = vld [vmem:[#allocation2 + $0x34] sm:$0xf]  ;;  %v4862_v20 = vrot.slane %v4860_v24, 5 }
 0x26d   : > { %8620 = vst [vmem:[#allocation15_spill] sm:$0xff] %v8156_v5  ;;  %v3780_v9 = vadd.f32 %v6172_v7, %v8074_v54  ;;  %v8160_v51 = vadd.f32 %v8035_v27, %v3775_v45  ;;  %v4866_v53 = vshll.u32 %v6484_v28, 16  ;;  %v4859_v27 = vrot.slane %v4857_v23, 4  ;;  %v6485_v45 = vld [vmem:[#allocation2 + $0x24] sm:$0xf]  ;;  %v8176_v23 = vpop.f32.mrf.mxu0 }
 0x26e   : > { %v3751_v40 = vpop.f32.mrf.mxu1  ;;  %v4833_v7 = vshrl.u32 %v6485_v45, 16  ;;  %v4836_v17 = vshll.u32 %v6485_v45, 16  ;;  %v4870_v48 = vshrl.u32 %v6484_v28, 16  ;;  %8625 = vst [vmem:[#allocation20_spill] sm:$0xff] %v8176_v23  ;;  %v6487_v45 = vld [vmem:[#allocation2 + $0x38] sm:$0x1] }
 0x26f   : > { %8621 = vst [vmem:[#allocation16_spill] sm:$0xff] %v8160_v51  ;;  %v3778_v34 = vadd.f32 %v3751_v40, %v8083_v12  ;;  %v8168_v54 = vadd.f32 %v8045_v25, %v3780_v9  ;;  %v4826_v12 = vrot.slane %v4825_v32, 4  ;;  %v4802_v40 = vrot.slane %v4801_v0, 4 }
 0x270   : > { %v6173_v33 = vpop.f32.mrf.mxu1  ;;  %v4806_v25 = vrot.slane %v4804_v41, 5  ;;  %v8174_v9 = vrot.slane %v4866_v53, 5  ;;  %v4835_v0 = vrot.slane %v4833_v7, 4  ;;  %v4838_v41 = vrot.slane %v4836_v17, 5 }
 0x271   : > { %8623 = vst [vmem:[#allocation18_spill] sm:$0xff] %v8168_v54  ;;  %v3781_v43 = vadd.f32 %v6173_v33, %v8090_v61  ;;  %v8172_v36 = vadd.f32 %v8055_v60, %v3778_v34  ;;  %v4863_v61 = vor.u32 %v4862_v20, %v4859_v27  ;;  %v4872_v28 = vrot.slane %v4870_v48, 4  ;;  %v8201_v27 = vpop.f32.mrf.mxu0 }
 0x272   : > { %v3754_v3 = vpop.f32.mrf.mxu1  ;;  %v4846_v53 = vshrl.u32 %v6486_v56, 16  ;;  %v4797_v34 = vsel %vm8184_vm2, %v4792_v59, %v8150_v35  ;;  %8630 = vst [vmem:[#allocation23_spill] sm:$0xff] %v8201_v27  ;;  %v4831_v20 = vsel %vm8184_vm2, %v4826_v12, %v4830_v62  ;;  %v4807_v33 = vsel %vm8184_vm2, %v4802_v40, %v4806_v25  ;;  %v6488_v35 = vld [vmem:[#allocation2 + $0x48] sm:$0xf]  ;;  %v6489_v40 = vld [vmem:[#allocation2 + $0x3c] sm:$0xf] }
 0x273   : > { %8624 = vst [vmem:[#allocation19_spill] sm:$0xff] %v8172_v36  ;;  %v3779_v24 = vadd.f32 %v3754_v3, %v8097_v21  ;;  %v8180_v15 = vadd.f32 %v8064_v49, %v3781_v43  ;;  %v4821_v3 = vsel %vm8184_vm2, %v4816_v19, %v8148_v6  ;;  %v4876_v7 = vshll.u32 %v6487_v45, 16  ;;  %v8220_v45 = vpop.f32.mrf.mxu0 }
 0x274   : > { %v8188_v32 = vpop.f32.mrf.mxu1  ;;  %v4839_v48 = vor.u32 %v4838_v41, %v4835_v0  ;;  %v8211_v6 = vrot.slane %v4842_v52, 5  ;;  %v4873_v19 = vor.u32 %v4872_v28, %v8174_v9  ;;  %v4848_v59 = vrot.slane %v4846_v53, 4  ;;  %8633 = vst [vmem:[#allocation26_spill] sm:$0xff] %v8220_v45 }
 0x275   : > { %8626 = vst [vmem:[#allocation21_spill] sm:$0xff] %v8180_v15  ;;  %v8191_v21 = vadd.f32 %v8071_v22, %v3779_v24  ;;  %v8207_v22 = vrot.slane %v4863_v61, 4  ;;  %v4905_v43 = vshrl.u32 %v6488_v35, 16  ;;  %v4908_v24 = vshll.u32 %v6488_v35, 16  ;;  %v8237_v27 = vpop.f32.mrf.mxu0 }
 0x276   : > { %v8193_v49 = vpop.f32.mrf.mxu1  ;;  %v8216_v62 = vunpack.c.l.bf16 %v4821_v3  ;;  %v8218_v12 = vunpack.c.l.bf16 %v4797_v34  ;;  %v4881_v25 = vshrl.u32 %v6489_v40, 16  ;;  %v4884_v61 = vshll.u32 %v6489_v40, 16  ;;  %v6490_v40 = vld [vmem:[#allocation2 + $0x2c] sm:$0x1]  ;;  %8636 = vst [vmem:[#allocation29_spill] sm:$0xff] %v8237_v27 }
 0x277   : > { %8629 = vst [vmem:[#allocation22_spill] sm:$0xff] %v8191_v21  ;;  %v8222_v0 = vunpack.c.l.bf16 %v4831_v20  ;;  %v8224_v52 = vunpack.c.l.bf16 %v4807_v33  ;;  %v4869_v41 = vsel %vm8184_vm2, %v8207_v22, %v8174_v9  ;;  %v8230_v28 = vrot.slane %v4876_v7, 5  ;;  %v6492_v9 = vld [vmem:[#allocation2 + $0x40] sm:$0xf]  ;;  %v8249_v18 = vpop.f32.mrf.mxu0 }
 0x278   : > { %v8209_v17 = vpop.f32.mrf.mxu1  ;;  %8631 = vst [vmem:[#allocation24_spill] sm:$0xff] %v8216_v62  ;;  %8632 = vst [vmem:[#allocation25_spill] sm:$0xff] %v8218_v12  ;;  %v4840_v3 = vrot.slane %v4839_v48, 4  ;;  %v4874_v34 = vrot.slane %v4873_v19, 4  ;;  %v4849_v35 = vor.u32 %v4848_v59, %v8211_v6  ;;  %v4852_v12 = vshll.u32 %v6490_v40, 16 }
 0x279   : > { %8634 = vst [vmem:[#allocation27_spill] sm:$0xff] %v8222_v0  ;;  %8635 = vst [vmem:[#allocation28_spill] sm:$0xff] %v8224_v52  ;;  %v4907_v62 = vrot.slane %v4905_v43, 4  ;;  %v4910_v20 = vrot.slane %v4908_v24, 5  ;;  %v6491_v0 = vld [vmem:[#allocation2 + $0x4c] sm:$0xf] }
 0x27a   : > { %v8214_v56 = vpop.f32.mrf.mxu1  ;;  %v4914_v33 = vshll.u32 %v6491_v0, 16  ;;  %v4918_v52 = vshrl.u32 %v6491_v0, 16  ;;  %v4883_v45 = vrot.slane %v4881_v25, 4  ;;  %v4886_v15 = vrot.slane %v4884_v61, 5  ;;  %v6493_v48 = vld [vmem:[#allocation2 + $0x60] sm:$0xf] }
 0x27b   : > { %v4890_v22 = vshll.u32 %v6492_v9, 16  ;;  %v4894_v7 = vshrl.u32 %v6492_v9, 16  ;;  %v4953_v19 = vshrl.u32 %v6493_v48, 16  ;;  %v4956_v23 = vshll.u32 %v6493_v48, 16  ;;  %v6494_v59 = vld [vmem:[#allocation2 + $0x54] sm:$0xf] }
 0x27c   : > { %v8232_v53 = vpop.f32.mrf.mxu1  ;;  %v4929_v36 = vshrl.u32 %v6494_v59, 16  ;;  %v4932_v40 = vshll.u32 %v6494_v59, 16  ;;  %v4845_v24 = vsel %vm8184_vm2, %v4840_v3, %v8211_v6  ;;  %v4879_v25 = vsel %vm8184_vm2, %v4874_v34, %v8230_v28  ;;  %v6495_v61 = vld [vmem:[#allocation2 + $0x64] sm:$0xf]  ;;  %8637 = vst [vmem:[#allocation30_spill] sm:$0xff] %v8249_v18 }
 0x27d   : > { %v4962_v0 = vshll.u32 %v6495_v61, 16  ;;  %v4966_v9 = vshrl.u32 %v6495_v61, 16  ;;  %v4850_v27 = vrot.slane %v4849_v35, 4  ;;  %v4854_v54 = vrot.slane %v4852_v12, 5  ;;  %v6496_v35 = vld [vmem:[#allocation2 + $0x58] sm:$0xf] }
 0x27e   : > { %v8235_v21 = vpop.f32.mrf.mxu1  ;;  %v4911_v10 = vor.u32 %v4910_v20, %v4907_v62  ;;  %v4916_v48 = vrot.slane %v4914_v33, 5  ;;  %v4887_v59 = vor.u32 %v4886_v15, %v4883_v45  ;;  %v4892_v5 = vrot.slane %v4890_v22, 5 }
 0x27f   : > { %v4920_v63 = vrot.slane %v4918_v52, 4  ;;  %v4896_v11 = vrot.slane %v4894_v7, 4  ;;  %v4955_v6 = vrot.slane %v4953_v19, 4  ;;  %v4958_v3 = vrot.slane %v4956_v23, 5  ;;  %v6497_v52 = vld [vmem:[#allocation2 + $0x50] sm:$0x1] }
 0x280   : > { %v8239_v43 = vpop.f32.mrf.mxu1  ;;  %v4931_v8 = vrot.slane %v4929_v36, 4  ;;  %v4934_v16 = vrot.slane %v4932_v40, 5  ;;  %v8253_v34 = vrot.slane %v4962_v0, 5  ;;  %v4938_v12 = vshll.u32 %v6496_v35, 16  ;;  %v6498_v40 = vld [vmem:[#allocation2 + $0x44] sm:$0x1]  ;;  %v8261_v0 = vpop.f32.mrf.mxu0 }
 0x281   : > { %v4968_v62 = vrot.slane %v4966_v9, 4  ;;  %v4942_v20 = vshrl.u32 %v6496_v35, 16  ;;  %v8255_v33 = vunpack.c.l.bf16 %v4869_v41  ;;  %v4855_v15 = vsel %vm8184_vm2, %v4850_v27, %v4854_v54  ;;  %v6499_v27 = vld [vmem:[#allocation2 + $0x68] sm:$0x1] }
 0x282   : > { %v8247_v51 = vpop.f32.mrf.mxu1  ;;  %v4912_v45 = vrot.slane %v4911_v10, 4  ;;  %v4924_v22 = vshll.u32 %v6497_v52, 16  ;;  %v4888_v36 = vrot.slane %v4887_v59, 4  ;;  %v4921_v23 = vor.u32 %v4920_v63, %v4916_v48 }
 0x283   : > { %8638 = vst [vmem:[#allocation31_spill] sm:$0xff] %v8255_v33  ;;  %v4897_v19 = vor.u32 %v4896_v11, %v4892_v5  ;;  %v4900_v61 = vshll.u32 %v6498_v40, 16  ;;  %v8263_v18 = vunpack.c.l.bf16 %v4845_v24  ;;  %v8265_v9 = vunpack.c.l.bf16 %v4879_v25 }
 0x284   : > { %v8251_v28 = vpop.f32.mrf.mxu1  ;;  %v4959_v41 = vor.u32 %v4958_v3, %v4955_v6  ;;  %v4935_v35 = vor.u32 %v4934_v16, %v4931_v8  ;;  %v4940_v10 = vrot.slane %v4938_v12, 5  ;;  %v4969_v54 = vor.u32 %v4968_v62, %v8253_v34 }
 0x285   : > { %v4972_v52 = vshll.u32 %v6499_v27, 16  ;;  %v4944_v59 = vrot.slane %v4942_v20, 4  ;;  %v3768_v11 = vadd.f32 %v8092_v30, %v7977_v29  ;;  %v8272_v63 = vunpack.c.l.bf16 %v4855_v15  ;;  %v6320_v29 = vpop.f32.mrf.mxu0 }
 0x286   : > { %v8259_v7 = vpop.f32.mrf.mxu1  ;;  %v4917_v24 = vsel %vm8184_vm2, %v4912_v45, %v4916_v48  ;;  %v4926_v25 = vrot.slane %v4924_v22, 5  ;;  %v4893_v8 = vsel %vm8184_vm2, %v4888_v36, %v4892_v5  ;;  %v4922_v16 = vrot.slane %v4921_v23, 4  ;;  %v6500_v22 = vld [vmem:[#allocation2 + $0x5c] sm:$0x1] }
 0x287   : > { %8639 = vst [vmem:[#allocation32_spill] sm:$0xff] %v8272_v63  ;;  %v4898_v6 = vrot.slane %v4897_v19, 4  ;;  %v4902_v3 = vrot.slane %v4900_v61, 5  ;;  %v3766_v12 = vadd.f32 %v8100_v46, %v7985_v13  ;;  %v3769_v62 = vadd.f32 %v8108_v47, %v7994_v4 }
 0x288   : > { %v8267_v33 = vpop.f32.mrf.mxu1  ;;  %v4960_v30 = vrot.slane %v4959_v41, 4  ;;  %v4936_v20 = vrot.slane %v4935_v35, 4  ;;  %v4970_v27 = vrot.slane %v4969_v54, 4  ;;  %v4974_v48 = vrot.slane %v4972_v52, 5 }
 0x289   : > { %v4945_v45 = vor.u32 %v4944_v59, %v4940_v10  ;;  %v4948_v63 = vshll.u32 %v6500_v22, 16  ;;  %v3767_v5 = vadd.f32 %v8114_v44, %v8000_v39  ;;  %v3772_v36 = vadd.f32 %v8121_v31, %v8009_v58  ;;  %v4631_v39 = vpop.f32.mrf.mxu0 }
 0x28a   : > { %v4113_v40 = vpop.f32.mrf.mxu1  ;;  %v3959_v13 = vadd.f32 %v7960_v26, %v3768_v11  ;;  %v8287_v46 = vunpack.c.l.bf16 %v4917_v24  ;;  %v3770_v4 = vadd.f32 %v8123_v55, %v8016_v1  ;;  %v8291_v23 = vunpack.c.l.bf16 %v4893_v8 }
 0x28b   : > { %v4927_v19 = vsel %vm8184_vm2, %v4922_v16, %v4926_v25  ;;  %v4903_v61 = vsel %vm8184_vm2, %v4898_v6, %v4902_v3  ;;  %v3957_v58 = vadd.f32 %v7964_v50, %v3766_v12  ;;  %v3960_v26 = vadd.f32 %v7967_v37, %v3769_v62  ;;  %v6321_v25 = vpop.f32.mrf.mxu0  ;;  %v8642_v62 = vld [vmem:[#allocation5_spill] sm:$0xff] }
 0x28c   : > { %v6236_v15 = vpop.f32.mrf.mxu1  ;;  %v4143_v44 = vadd.f32 %v8188_v32, %v3959_v13  ;;  %v4965_v1 = vsel %vm8184_vm2, %v4960_v30, %v8253_v34  ;;  %v4941_v55 = vsel %vm8184_vm2, %v4936_v20, %v4940_v10  ;;  %v4975_v41 = vsel %vm8184_vm2, %v4970_v27, %v4974_v48  ;;  %v8645_v27 = vld [vmem:[#allocation15_spill] sm:$0xff] }
 0x28d   : > { %v8307_v35 = vrot.slane %v4945_v45, 4  ;;  %v8309_v54 = vrot.slane %v4948_v63, 5  ;;  %v4141_v32 = vadd.f32 %v8193_v49, %v3957_v58  ;;  %v4144_v50 = vadd.f32 %v8209_v17, %v3960_v26  ;;  %v8646_v45 = vld [vmem:[#allocation16_spill] sm:$0xff]  ;;  %v8649_v58 = vld [vmem:[#allocation18_spill] sm:$0xff]  ;;  %v8650_v26 = vld [vmem:[#allocation19_spill] sm:$0xff] }
 0x28e   : > { %v4126_v47 = vpop.f32.mrf.mxu1  ;;  %v3958_v37 = vadd.f32 %v7974_v57, %v3767_v5  ;;  %v3963_v52 = vadd.f32 %v7982_v38, %v3772_v36  ;;  %v3961_v34 = vadd.f32 %v7991_v2, %v3770_v4  ;;  %v8316_v11 = vunpack.c.l.bf16 %v4927_v19  ;;  %v4634_v36 = vpop.f32.mrf.mxu0  ;;  %v8647_v19 = vld [vmem:[#allocation6_spill] sm:$0xff] }
 0x28f   : > { %v8318_v10 = vunpack.c.l.bf16 %v4903_v61  ;;  %v8320_v24 = vunpack.c.l.bf16 %v4965_v1  ;;  %v4321_v17 = vadd.f32 %v8080_v42, %v4143_v44  ;;  %v8325_v8 = vunpack.c.l.bf16 %v4941_v55  ;;  %v8641_v42 = vld [vmem:[#allocation4_spill] sm:$0xff] }
 0x290   : > { %v6237_v31 = vpop.f32.mrf.mxu1  ;;  %v4142_v63 = vadd.f32 %v8214_v56, %v3958_v37  ;;  %v4147_v49 = vadd.f32 %v8232_v53, %v3963_v52  ;;  %v4145_v57 = vadd.f32 %v8235_v21, %v3961_v34  ;;  %v4148_v38 = vadd.f32 %v8239_v43, %v8132_v14  ;;  %v8640_v56 = vld [vmem:[#allocation10_spill] sm:$0xff]  ;;  %v8643_v21 = vld [vmem:[#allocation12_spill] sm:$0xff]  ;;  %v8644_v14 = vld [vmem:[#allocation13_spill] sm:$0xff] }
 0x291   : > { %v8330_v16 = vunpack.c.l.bf16 %v4975_v41  ;;  %v4951_v6 = vsel %vm8184_vm2, %v8307_v35, %v8309_v54  ;;  %v4146_v53 = vadd.f32 %v8247_v51, %v8640_v56  ;;  %v4319_v12 = vadd.f32 %v8641_v42, %v4141_v32  ;;  %v8350_v51 = vld [vmem:[%s8578_s6] ss:$0 sm:$0xff]  ;;  %v8652_v41 = vld [vmem:[#allocation9_spill] sm:$0xff]  ;;  %v8653_v34 = vld [vmem:[#allocation11_spill] sm:$0xff] }
 0x292   : > { %v4129_v59 = vpop.f32.mrf.mxu1  ;;  %v4322_v30 = vadd.f32 %v8642_v62, %v4144_v50  ;;  %v4151_v20 = vadd.f32 %v8251_v28, %v8643_v21  ;;  %v4149_v43 = vadd.f32 %v8259_v7, %v8644_v14  ;;  %v4152_v48 = vadd.f32 %v8267_v33, %v8645_v27  ;;  %v8648_v28 = vld [vmem:[#allocation7_spill] sm:$0xff]  ;;  %v8651_v55 = vld [vmem:[#allocation8_spill] sm:$0xff] }
 0x293   : > { %v4150_v22 = vadd.f32 %v4113_v40, %v8646_v45  ;;  %v4320_v61 = vadd.f32 %v8647_v19, %v4142_v63  ;;  %v4325_v44 = vadd.f32 %v8648_v28, %v4147_v49  ;;  %v4155_v7 = vadd.f32 %v6236_v15, %v8649_v58  ;;  %v8655_v15 = vld [vmem:[#allocation17_spill] sm:$0xff] }
 0x294   : > { %v6288_v2 = vpop.f32.mrf.mxu1  ;;  %v4153_v1 = vadd.f32 %v4126_v47, %v8650_v26  ;;  %v4323_v40 = vadd.f32 %v8651_v55, %v4145_v57  ;;  %v4326_v32 = vadd.f32 %v8652_v41, %v4148_v38  ;;  %v8656_v47 = vld [vmem:[#allocation20_spill] sm:$0xff]  ;;  %v8657_v57 = vld [vmem:[#allocation23_spill] sm:$0xff] }
 0x295   : > { %v4512_v3 = vadd.f32 %v6288_v2, %v4321_v17  ;;  %v8654_v17 = vld [vmem:[#allocation14_spill] sm:$0xff]  ;;  %v8366_v2 = vadd.f32 %v8655_v15, %v4149_v43  ;;  %v8369_v56 = vadd.f32 %v8656_v47, %v4152_v48  ;;  %v8372_v38 = vadd.f32 %v8657_v57, %v4150_v22  ;;  %v8660_v43 = vld [vmem:[#allocation29_spill] sm:$0xff]  ;;  %v8665_v47 = vld [vmem:[#allocation27_spill] sm:$0xff] }
 0x296   : > { %v4447_v5 = vpop.f32.mrf.mxu1  ;;  %v8363_v49 = vadd.f32 %v8654_v17, %v4151_v20  ;;  %v8659_v20 = vld [vmem:[#allocation26_spill] sm:$0xff]  ;;  %v8380_v27 = vadd.f32 %v8660_v43, %v4153_v1  ;;  %v5296_v43 = vld [vmem:[%s7890_s24 + $0xc] sm:$0xf] }
 0x297   : > { %v4696_v13 = vadd.f32 %v6320_v29, %v4512_v3  ;;  %v4510_v4 = vadd.f32 %v4447_v5, %v4319_v12  ;;  %v8360_v29 = vadd.f32 %v8653_v34, %v4146_v53  ;;  %v6324_v3 = vpop.f32.mrf.mxu0  ;;  %v8658_v12 = vld [vmem:[#allocation21_spill] sm:$0xff]  ;;  %v8377_v14 = vadd.f32 %v8659_v20, %v4155_v7  ;;  %v8661_v5 = vld [vmem:[#allocation22_spill] sm:$0xff] }
 0x298   : > { %v6289_v33 = vpop.f32.mrf.mxu1  ;;  %v4156_v62 = vadd.f32 %v6237_v31, %v8658_v12 }
 0x299   : > { %v4719_v50 = vadd.f32 %v8350_v51, %v4696_v13  ;;  %v4694_v37 = vadd.f32 %v4631_v39, %v4510_v4  ;;  %v4513_v52 = vadd.f32 %v6289_v33, %v4322_v30  ;;  %v8384_v13 = vadd.f32 %v4129_v59, %v8661_v5  ;;  %v8662_v4 = vld [vmem:[#allocation24_spill] sm:$0xff]  ;;  %v4647_v28 = vpop.f32.mrf.mxu0  ;;  %v8663_v33 = vld [vmem:[#allocation25_spill] sm:$0xff] }
 0x29a   : > { %v4450_v63 = vpop.f32.mrf.mxu1 }
 0x29b   : > { %vm4735_vm4 = vcmp.gt.f32.partialorder %v4719_v50, 0.0  ;;  %v4751_v39 = vmul.f32 0.1, %v4719_v50  ;;  %v4717_v53 = vadd.f32 %v8350_v51, %v4694_v37  ;;  %v4697_v42 = vadd.f32 %v6321_v25, %v4513_v52 }
 0x29c   : > { %v4511_v30 = vadd.f32 %v4450_v63, %v4320_v61  ;;  %v6292_v21 = vpop.f32.mrf.mxu1  ;;  %v8664_v63 = vld [vmem:[#allocation30_spill] sm:$0xff] }
 0x29d   : > { %v4767_v48 = vsel %vm4735_vm4, %v4719_v50, %v4751_v39  ;;  %vm4733_vm7 = vcmp.gt.f32.partialorder %v4717_v53, 0.0  ;;  %v4749_v45 = vmul.f32 0.1, %v4717_v53  ;;  %v4720_v22 = vadd.f32 %v8350_v51, %v4697_v42  ;;  %v6325_v39 = vpop.f32.mrf.mxu0 }
 0x29e   : > { %v5010_v25 = vadd.f32 %v8662_v4, %v4767_v48  ;;  %v4695_v31 = vadd.f32 %v4634_v36, %v4511_v30  ;;  %v4516_v19 = vadd.f32 %v6292_v21, %v4325_v44  ;;  %v4463_v61 = vpop.f32.mrf.mxu1  ;;  %v8390_v17 = vadd.f32 %v8664_v63, %v4156_v62 }
 0x29f   : > { %v4765_v58 = vsel %vm4733_vm7, %v4717_v53, %v4749_v45  ;;  %vm4736_vm10 = vcmp.gt.f32.partialorder %v4720_v22, 0.0  ;;  %v4752_v7 = vmul.f32 0.1, %v4720_v22  ;;  %v4514_v26 = vadd.f32 %v4463_v61, %v4323_v40  ;;  %v5289_v61 = vld [vmem:[%s7890_s24] sm:$0xf] }
 0x2a0   : > { %v5828_v1 = vpack.c.bf16 %v5010_v25, %v5010_v25  ;;  %v5008_v55 = vadd.f32 %v8663_v33, %v4765_v58  ;;  %v4718_v41 = vadd.f32 %v8350_v51, %v4695_v31  ;;  %v4700_v50 = vadd.f32 %v6324_v3, %v4516_v19  ;;  %v6293_v37 = vpop.f32.mrf.mxu1  ;;  %v4650_v19 = vpop.f32.mrf.mxu0  ;;  %v8668_v58 = vld [vmem:[#allocation28_spill] sm:$0xff] }
 0x2a1   : > { %v4768_v59 = vsel %vm4736_vm10, %v4720_v22, %v4752_v7  ;;  %v4698_v52 = vadd.f32 %v4647_v28, %v4514_v26  ;;  %v4517_v34 = vadd.f32 %v6293_v37, %v4326_v32 }
 0x2a2   : > { %v5145_v36 = vshrl.u32 %v5828_v1, 16  ;;  %v5148_v44 = vshll.u32 %v5828_v1, 16  ;;  %v5826_v15 = vpack.c.bf16 %v5008_v55, %v5008_v55  ;;  %v5011_v57 = vadd.f32 %v8665_v47, %v4768_v59  ;;  %v4466_v40 = vpop.f32.mrf.mxu1 }
 0x2a3   : > { %vm4734_vm3 = vcmp.gt.f32.partialorder %v4718_v41, 0.0  ;;  %v4750_v53 = vmul.f32 0.1, %v4718_v41  ;;  %v4723_v42 = vadd.f32 %v8350_v51, %v4700_v50  ;;  %v4721_v3 = vadd.f32 %v8350_v51, %v4698_v52  ;;  %v5300_v52 = vld [vmem:[%s7890_s24 + $0x14] sm:$0x1] }
 0x2a4   : > { %v5147_v12 = vrot.slane %v5145_v36, 7  ;;  %v5128_v30 = vshrl.u32 %v5826_v15, 16  ;;  %v5131_v32 = vshll.u32 %v5826_v15, 16  ;;  %v5829_v62 = vpack.c.bf16 %v5011_v57, %v5011_v57  ;;  %v6296_v21 = vpop.f32.mrf.mxu1  ;;  %v8671_v36 = vld [vmem:[#allocation31_spill] sm:$0xff] }
 0x2a5   : > { %v4766_v48 = vsel %vm4734_vm3, %v4718_v41, %v4750_v53  ;;  %vm4739_vm8 = vcmp.gt.f32.partialorder %v4723_v42, 0.0  ;;  %v4755_v45 = vmul.f32 0.1, %v4723_v42  ;;  %vm4737_vm6 = vcmp.gt.f32.partialorder %v4721_v3, 0.0 }
 0x2a6   : > { %v5150_v22 = vor.u32 %v5148_v44, %v5147_v12  ;;  %v5151_v5 = vrot.slane %v5147_v12, 4  ;;  %v5130_v4 = vrot.slane %v5128_v30, 7  ;;  %v5153_v25 = vshrl.u32 %v5829_v62, 16  ;;  %v4479_v31 = vpop.f32.mrf.mxu1 }
 0x2a7   : > { %v5156_v28 = vshll.u32 %v5829_v62, 16  ;;  %v5009_v7 = vadd.f32 %v8668_v58, %v4766_v48  ;;  %v4771_v26 = vsel %vm4739_vm8, %v4723_v42, %v4755_v45  ;;  %v4753_v1 = vmul.f32 0.1, %v4721_v3  ;;  %v5293_v58 = vld [vmem:[%s7890_s24 + $0x8] sm:$0x1] }
 0x2a8   : > { %v5297_v33 = vsel %vm8397_vm11, %v5150_v22, %v5296_v43  ;;  %v5133_v55 = vor.u32 %v5131_v32, %v5130_v4  ;;  %v5134_v41 = vrot.slane %v5130_v4, 4  ;;  %v5155_v50 = vrot.slane %v5153_v25, 7  ;;  %v8406_v37 = vpop.f32.mrf.mxu1  ;;  %v6328_v32 = vpop.f32.mrf.mxu0 }
 0x2a9   : > { %5298 = vst [vmem:[%s7890_s24 + $0xc] sm:$0xf] %v5297_v33  ;;  %v5827_v63 = vpack.c.bf16 %v5009_v7, %v5009_v7  ;;  %v5014_v44 = vadd.f32 %v8671_v36, %v4771_v26  ;;  %v4769_v15 = vsel %vm4737_vm6, %v4721_v3, %v4753_v1  ;;  %v4701_v47 = vadd.f32 %v6325_v39, %v4517_v34 }
 0x2aa   : > { %v5290_v57 = vsel %vm8397_vm11, %v5133_v55, %v5289_v61  ;;  %v5158_v53 = vor.u32 %v5156_v28, %v5155_v50  ;;  %v5160_v42 = vrot.slane %v5155_v50, 4  ;;  %v5012_v12 = vadd.f32 %v8263_v18, %v4769_v15  ;;  %v4482_v30 = vpop.f32.mrf.mxu1  ;;  %v4663_v55 = vpop.f32.mrf.mxu0 }
 0x2ab   : > { %5291 = vst [vmem:[%s7890_s24] sm:$0xf] %v5290_v57  ;;  %v5136_v62 = vshrl.u32 %v5827_v63, 16  ;;  %v5139_v43 = vshll.u32 %v5827_v63, 16  ;;  %v5832_v48 = vpack.c.bf16 %v5014_v44, %v5014_v44  ;;  %v4724_v45 = vadd.f32 %v8350_v51, %v4701_v47  ;;  %v5310_v63 = vld [vmem:[%s7890_s24 + $0x24] sm:$0xf] }
 0x2ac   : > { %v5159_v34 = vsel %vm8411_vm14, %v5151_v5, %v5158_v53  ;;  %v5301_v3 = vsel %vm7901_vm13, %v5160_v42, %v5300_v52  ;;  %v5830_v22 = vpack.c.bf16 %v5012_v12, %v5012_v12  ;;  %v4515_v4 = vadd.f32 %v4466_v40, %v8360_v29  ;;  %v8428_v25 = vpop.f32.mrf.mxu1 }
 0x2ad   : > { %5299 = vst [vmem:[%s7890_s24 + $0x10] sm:$0xf] %v5159_v34  ;;  %5302 = vst [vmem:[%s7890_s24 + $0x14] sm:$0x1] %v5301_v3  ;;  %v5138_v18 = vrot.slane %v5136_v62, 7  ;;  %v5179_v61 = vshrl.u32 %v5832_v48, 16  ;;  %v4520_v52 = vadd.f32 %v6296_v21, %v8363_v49  ;;  %v4518_v47 = vadd.f32 %v4479_v31, %v8366_v2  ;;  %v6329_v62 = vpop.f32.mrf.mxu0 }
 0x2ae   : > { %v5182_v28 = vshll.u32 %v5832_v48, 16  ;;  %vm4740_vm12 = vcmp.gt.f32.partialorder %v4724_v45, 0.0  ;;  %v5162_v7 = vshrl.u32 %v5830_v22, 16  ;;  %v5165_v26 = vshll.u32 %v5830_v22, 16  ;;  %v4495_v33 = vpop.f32.mrf.mxu1  ;;  %v5303_v49 = vld [vmem:[%s7890_s24 + $0x18] sm:$0xf] }
 0x2af   : > { %v4756_v1 = vmul.f32 0.1, %v4724_v45  ;;  %v4699_v5 = vadd.f32 %v4650_v19, %v4515_v4  ;;  %v5141_v50 = vor.u32 %v5139_v43, %v5138_v18  ;;  %v5143_v29 = vrot.slane %v5138_v18, 4 }
 0x2b0   : > { %v8433_v40 = vrot.slane %v5179_v61, 7  ;;  %v8437_v36 = vrot.slane %v5162_v7, 7  ;;  %v8441_v19 = vpop.f32.mrf.mxu1  ;;  %v8451_v21 = vadd.f32 %v8261_v0, %v8384_v13  ;;  %v4702_v0 = vadd.f32 %v4663_v55, %v4518_v47 }
 0x2b1   : > { %v4772_v44 = vsel %vm4740_vm12, %v4724_v45, %v4756_v1  ;;  %v4722_v15 = vadd.f32 %v8350_v51, %v4699_v5  ;;  %v5142_v57 = vsel %vm8411_vm14, %v5134_v41, %v5141_v50  ;;  %v5294_v53 = vsel %vm7901_vm13, %v5143_v29, %v5293_v58  ;;  %v8673_v58 = vld [vmem:[#allocation32_spill] sm:$0xff]  ;;  %v4666_v5 = vpop.f32.mrf.mxu0  ;;  %v5314_v29 = vld [vmem:[%s7890_s24 + $0x2c] sm:$0x1] }
 0x2b2   : > { %v5184_v42 = vor.u32 %v5182_v28, %v8433_v40  ;;  %5292 = vst [vmem:[%s7890_s24 + $0x4] sm:$0xf] %v5142_v57  ;;  %5295 = vst [vmem:[%s7890_s24 + $0x8] sm:$0x1] %v5294_v53  ;;  %v5185_v2 = vrot.slane %v8433_v40, 4  ;;  %v5167_v31 = vor.u32 %v5165_v26, %v8437_v36  ;;  %v5015_v41 = vadd.f32 %v8265_v9, %v4772_v44  ;;  %v8458_v12 = vpop.f32.mrf.mxu1 }
 0x2b3   : > { %vm4738_vm15 = vcmp.gt.f32.partialorder %v4722_v15, 0.0  ;;  %v4754_v48 = vmul.f32 0.1, %v4722_v15  ;;  %v4704_v45 = vadd.f32 %v6328_v32, %v4520_v52  ;;  %v4521_v3 = vadd.f32 %v8406_v37, %v8369_v56 }
 0x2b4   : > { %v5311_v43 = vsel %vm8397_vm11, %v5184_v42, %v5310_v63  ;;  %v5304_v13 = vsel %vm8397_vm11, %v5167_v31, %v5303_v49  ;;  %v5833_v34 = vpack.c.bf16 %v5015_v41, %v5015_v41  ;;  %v4519_v9 = vadd.f32 %v4482_v30, %v8372_v38  ;;  %v6332_v1 = vpop.f32.mrf.mxu1 }
 0x2b5   : > { %5312 = vst [vmem:[%s7890_s24 + $0x24] sm:$0xf] %v5311_v43  ;;  %v5168_v22 = vrot.slane %v8437_v36, 4  ;;  %5305 = vst [vmem:[%s7890_s24 + $0x18] sm:$0xf] %v5304_v13  ;;  %v4770_v4 = vsel %vm4738_vm15, %v4722_v15, %v4754_v48  ;;  %v4727_v18 = vadd.f32 %v8350_v51, %v4704_v45  ;;  %v4725_v32 = vadd.f32 %v8350_v51, %v4702_v0 }
 0x2b6   : > { %v5187_v61 = vshrl.u32 %v5833_v34, 16  ;;  %v5190_v28 = vshll.u32 %v5833_v34, 16  ;;  %v5013_v7 = vadd.f32 %v8673_v58, %v4770_v4  ;;  %v4705_v26 = vadd.f32 %v6329_v62, %v4521_v3  ;;  %v4679_v53 = vpop.f32.mrf.mxu1  ;;  %v5324_v58 = vld [vmem:[%s7890_s24 + $0x3c] sm:$0xf] }
 0x2b7   : > { %vm4743_vm0 = vcmp.gt.f32.partialorder %v4727_v18, 0.0  ;;  %v4759_v56 = vmul.f32 0.1, %v4727_v18  ;;  %vm4741_vm1 = vcmp.gt.f32.partialorder %v4725_v32, 0.0  ;;  %v4757_v38 = vmul.f32 0.1, %v4725_v32 }
 0x2b8   : > { %v5189_v37 = vrot.slane %v5187_v61, 7  ;;  %v5831_v30 = vpack.c.bf16 %v5013_v7, %v5013_v7  ;;  %v4728_v55 = vadd.f32 %v8350_v51, %v4705_v26  ;;  %v4703_v50 = vadd.f32 %v4666_v5, %v4519_v9  ;;  %v6333_v0 = vpop.f32.mrf.mxu1  ;;  %v5317_v7 = vld [vmem:[%s7890_s24 + $0x30] sm:$0xf] }
 0x2b9   : > { %v4775_v40 = vsel %vm4743_vm0, %v4727_v18, %v4759_v56  ;;  %v4773_v52 = vsel %vm4741_vm1, %v4725_v32, %v4757_v38  ;;  %v4524_v63 = vadd.f32 %v8428_v25, %v8377_v14  ;;  %v4522_v36 = vadd.f32 %v4495_v33, %v8380_v27  ;;  %v5307_v33 = vld [vmem:[%s7890_s24 + $0x20] sm:$0x1] }
 0x2ba   : > { %v5192_v44 = vor.u32 %v5190_v28, %v5189_v37  ;;  %v5194_v15 = vrot.slane %v5189_v37, 4  ;;  %v5170_v47 = vshrl.u32 %v5831_v30, 16  ;;  %v5173_v57 = vshll.u32 %v5831_v30, 16  ;;  %v4682_v38 = vpop.f32.mrf.mxu1 }
 0x2bb   : > { %v5018_v42 = vadd.f32 %v8287_v46, %v4775_v40  ;;  %v5016_v49 = vadd.f32 %v8291_v23, %v4773_v52  ;;  %vm4744_vm5 = vcmp.gt.f32.partialorder %v4728_v55, 0.0  ;;  %v4760_v31 = vmul.f32 0.1, %v4728_v55 }
 0x2bc   : > { %v5193_v41 = vsel %vm8411_vm14, %v5185_v2, %v5192_v44  ;;  %v5315_v14 = vsel %vm7901_vm13, %v5194_v15, %v5314_v29  ;;  %v5172_v25 = vrot.slane %v5170_v47, 7  ;;  %v4726_v27 = vadd.f32 %v8350_v51, %v4703_v50 }
 0x2bd   : > { %5313 = vst [vmem:[%s7890_s24 + $0x28] sm:$0xf] %v5193_v41  ;;  %5316 = vst [vmem:[%s7890_s24 + $0x2c] sm:$0x1] %v5315_v14  ;;  %v5836_v62 = vpack.c.bf16 %v5018_v42, %v5018_v42  ;;  %v5834_v43 = vpack.c.bf16 %v5016_v49, %v5016_v49  ;;  %v4776_v46 = vsel %vm4744_vm5, %v4728_v55, %v4760_v31  ;;  %v5005_v42 = vunpack.c.l.bf16 %v4951_v6 }
 0x2be   : > { %v4525_v23 = vadd.f32 %v8441_v19, %v8390_v17  ;;  %v5175_v48 = vor.u32 %v5173_v57, %v5172_v25  ;;  %v5177_v45 = vrot.slane %v5172_v25, 4  ;;  %v5019_v2 = vadd.f32 %v8316_v11, %v4776_v46 }
 0x2bf   : > { %vm4742_vm4 = vcmp.gt.f32.partialorder %v4726_v27, 0.0  ;;  %v5213_v13 = vshrl.u32 %v5836_v62, 16  ;;  %v5216_v34 = vshll.u32 %v5836_v62, 16  ;;  %v5196_v3 = vshrl.u32 %v5834_v43, 16 }
 0x2c0   : > { %v5199_v9 = vshll.u32 %v5834_v43, 16  ;;  %v5176_v4 = vsel %vm8411_vm14, %v5168_v22, %v5175_v48  ;;  %v5308_v18 = vsel %vm7901_vm13, %v5177_v45, %v5307_v33  ;;  %v5837_v32 = vpack.c.bf16 %v5019_v2, %v5019_v2  ;;  %v5321_v43 = vld [vmem:[%s7890_s24 + $0x38] sm:$0x1] }
 0x2c1   : > { %v4758_v17 = vmul.f32 0.1, %v4726_v27  ;;  %5306 = vst [vmem:[%s7890_s24 + $0x1c] sm:$0xf] %v5176_v4  ;;  %5309 = vst [vmem:[%s7890_s24 + $0x20] sm:$0x1] %v5308_v18  ;;  %v4708_v61 = vadd.f32 %v6332_v1, %v4524_v63  ;;  %v4706_v28 = vadd.f32 %v4679_v53, %v4522_v36  ;;  %v4523_v22 = vadd.f32 %v8458_v12, %v8451_v21 }
 0x2c2   : > { %v5215_v19 = vrot.slane %v5213_v13, 7  ;;  %v5198_v11 = vrot.slane %v5196_v3, 7  ;;  %v5221_v26 = vshrl.u32 %v5837_v32, 16  ;;  %v4709_v56 = vadd.f32 %v6333_v0, %v4525_v23  ;;  %v5328_v12 = vld [vmem:[%s7890_s24 + $0x44] sm:$0x1] }
 0x2c3   : > { %v4774_v5 = vsel %vm4742_vm4, %v4726_v27, %v4758_v17  ;;  %v5224_v50 = vshll.u32 %v5837_v32, 16  ;;  %v4731_v40 = vadd.f32 %v8350_v51, %v4708_v61  ;;  %v4729_v52 = vadd.f32 %v8350_v51, %v4706_v28  ;;  %v5338_v17 = vld [vmem:[%s7890_s24 + $0x54] sm:$0xf] }
 0x2c4   : > { %v5218_v37 = vor.u32 %v5216_v34, %v5215_v19  ;;  %v5219_v30 = vrot.slane %v5215_v19, 4  ;;  %v5201_v55 = vor.u32 %v5199_v9, %v5198_v11  ;;  %v5223_v29 = vrot.slane %v5221_v26, 7 }
 0x2c5   : > { %v5017_v1 = vadd.f32 %v8318_v10, %v4774_v5  ;;  %v4732_v36 = vadd.f32 %v8350_v51, %v4709_v56  ;;  %v4707_v44 = vadd.f32 %v4682_v38, %v4523_v22  ;;  %vm4747_vm7 = vcmp.gt.f32.partialorder %v4731_v40, 0.0 }
 0x2c6   : > { %v5325_v63 = vsel %vm8397_vm11, %v5218_v37, %v5324_v58  ;;  %v5318_v21 = vsel %vm8397_vm11, %v5201_v55, %v5317_v7  ;;  %v5226_v15 = vor.u32 %v5224_v50, %v5223_v29  ;;  %v5228_v10 = vrot.slane %v5223_v29, 4  ;;  %v5331_v58 = vld [vmem:[%s7890_s24 + $0x48] sm:$0xf]  ;;  %v5342_v37 = vld [vmem:[%s7890_s24 + $0x5c] sm:$0x1] }
 0x2c7   : > { %5326 = vst [vmem:[%s7890_s24 + $0x3c] sm:$0xf] %v5325_v63  ;;  %5319 = vst [vmem:[%s7890_s24 + $0x30] sm:$0xf] %v5318_v21  ;;  %v5835_v47 = vpack.c.bf16 %v5017_v1, %v5017_v1  ;;  %v4763_v57 = vmul.f32 0.1, %v4731_v40  ;;  %v4730_v60 = vadd.f32 %v8350_v51, %v4707_v44 }
 0x2c8   : > { %vm4745_vm9 = vcmp.gt.f32.partialorder %v4729_v52, 0.0  ;;  %v4761_v53 = vmul.f32 0.1, %v4729_v52  ;;  %v5227_v49 = vsel %vm8411_vm14, %v5219_v30, %v5226_v15  ;;  %v5329_v31 = vsel %vm7901_vm13, %v5228_v10, %v5328_v12 }
 0x2c9   : > { %v5204_v41 = vshrl.u32 %v5835_v47, 16  ;;  %vm4748_vm10 = vcmp.gt.f32.partialorder %v4732_v36, 0.0  ;;  %5327 = vst [vmem:[%s7890_s24 + $0x40] sm:$0xf] %v5227_v49  ;;  %5330 = vst [vmem:[%s7890_s24 + $0x44] sm:$0x1] %v5329_v31  ;;  %v4779_v14 = vsel %vm4747_vm7, %v4731_v40, %v4763_v57 }
 0x2ca   : > { %v4777_v25 = vsel %vm4745_vm9, %v4729_v52, %v4761_v53  ;;  %v4764_v27 = vmul.f32 0.1, %v4732_v36  ;;  %v5207_v62 = vshll.u32 %v5835_v47, 16  ;;  %v5022_v35 = vadd.f32 %v8320_v24, %v4779_v14  ;;  %v5335_v52 = vld [vmem:[%s7890_s24 + $0x50] sm:$0x1] }
 0x2cb   : > { %v5206_v33 = vrot.slane %v5204_v41, 7  ;;  %v5020_v54 = vadd.f32 %v8325_v8, %v4777_v25  ;;  %v5202_v6 = vrot.slane %v5198_v11, 4  ;;  %vm4746_vm2 = vcmp.gt.f32.partialorder %v4730_v60, 0.0 }
 0x2cc   : > { %v4780_v46 = vsel %vm4748_vm10, %v4732_v36, %v4764_v27  ;;  %v4762_v23 = vmul.f32 0.1, %v4730_v60  ;;  %v5840_v2 = vpack.c.bf16 %v5022_v35, %v5022_v35 }
 0x2cd   : > { %v5209_v48 = vor.u32 %v5207_v62, %v5206_v33  ;;  %v5211_v45 = vrot.slane %v5206_v33, 4  ;;  %v5838_v0 = vpack.c.bf16 %v5020_v54, %v5020_v54  ;;  %v5023_v51 = vadd.f32 %v8330_v16, %v4780_v46 }
 0x2ce   : > { %v4778_v13 = vsel %vm4746_vm2, %v4730_v60, %v4762_v23  ;;  %v5247_v34 = vshrl.u32 %v5840_v2, 16  ;;  %v5250_v32 = vshll.u32 %v5840_v2, 16 }
 0x2cf   : > { %v5210_v24 = vsel %vm8411_vm14, %v5202_v6, %v5209_v48  ;;  %v5322_v8 = vsel %vm7901_vm13, %v5211_v45, %v5321_v43  ;;  %v5230_v3 = vshrl.u32 %v5838_v0, 16  ;;  %v5841_v9 = vpack.c.bf16 %v5023_v51, %v5023_v51 }
 0x2d0   : > { %5320 = vst [vmem:[%s7890_s24 + $0x34] sm:$0xf] %v5210_v24  ;;  %5323 = vst [vmem:[%s7890_s24 + $0x38] sm:$0x1] %v5322_v8  ;;  %v5021_v4 = vadd.f32 %v5005_v42, %v4778_v13  ;;  %v5249_v18 = vrot.slane %v5247_v34, 7  ;;  %v5233_v19 = vshll.u32 %v5838_v0, 16 }
 0x2d1   : > { %v5232_v16 = vrot.slane %v5230_v3, 7  ;;  %v5255_v11 = vshrl.u32 %v5841_v9, 16  ;;  %v5258_v5 = vshll.u32 %v5841_v9, 16 }
 0x2d2   : > { %v5839_v61 = vpack.c.bf16 %v5021_v4, %v5021_v4  ;;  %v5252_v28 = vor.u32 %v5250_v32, %v5249_v18  ;;  %v5253_v56 = vrot.slane %v5249_v18, 4 }
 0x2d3   : > { %v5235_v7 = vor.u32 %v5233_v19, %v5232_v16  ;;  %v5257_v26 = vrot.slane %v5255_v11, 7  ;;  %v5236_v40 = vrot.slane %v5232_v16, 4 }
 0x2d4   : > { %v5238_v22 = vshrl.u32 %v5839_v61, 16  ;;  %v5339_v38 = vsel %vm8397_vm11, %v5252_v28, %v5338_v17  ;;  %v5241_v30 = vshll.u32 %v5839_v61, 16 }
 0x2d5   : > { %5340 = vst [vmem:[%s7890_s24 + $0x54] sm:$0xf] %v5339_v38  ;;  %v5332_v55 = vsel %vm8397_vm11, %v5235_v7, %v5331_v58  ;;  %v5260_v50 = vor.u32 %v5258_v5, %v5257_v26  ;;  %v5262_v29 = vrot.slane %v5257_v26, 4 }
 0x2d6   : > { %v5240_v1 = vrot.slane %v5238_v22, 7  ;;  %5333 = vst [vmem:[%s7890_s24 + $0x48] sm:$0xf] %v5332_v55 }
 0x2d7   : > { %v5261_v63 = vsel %vm8411_vm14, %v5253_v56, %v5260_v50  ;;  %v5343_v21 = vsel %vm7901_vm13, %v5262_v29, %v5342_v37 }
 0x2d8   : > { %v5243_v12 = vor.u32 %v5241_v30, %v5240_v1  ;;  %v5245_v36 = vrot.slane %v5240_v1, 4  ;;  %5341 = vst [vmem:[%s7890_s24 + $0x58] sm:$0xf] %v5261_v63  ;;  %5344 = vst [vmem:[%s7890_s24 + $0x5c] sm:$0x1] %v5343_v21 }
 0x2da   : > { %v5244_v20 = vsel %vm8411_vm14, %v5236_v40, %v5243_v12  ;;  %v5336_v44 = vsel %vm7901_vm13, %v5245_v36, %v5335_v52 }
 0x2db   : > { %5334 = vst [vmem:[%s7890_s24 + $0x4c] sm:$0xf] %v5244_v20  ;;  %5337 = vst [vmem:[%s7890_s24 + $0x50] sm:$0x1] %v5336_v44 }
 0x2dc PF: > { %s17_s28 = sadd.s32 1, %s6563_s28   ;;  %s8674_s24 = smov %s6555_s26 }
 0x2dd   : > { %p14_p13 = scmp.ge.s32.totalorder %s17_s28, 6   ;;  %s8675_s25 = smov %s6559_s27 }
 0x2de   : > { %s8676_s26 = smov %s8679_s29  ;;  %s8677_s27 = smov %s8683_s30 }
 0x2df   :  { %16 = sbr.rel (!%p14_p13) target bundleno = 3 (0x3), region = 94 }

</bundles_post_ra>
